<compile_context>
chip_gen: v5e
topology: v5e:2x2
jax: 0.10.0
libtpu: 0.0.40
codegen_flags: <defaults>
</compile_context>

<pallas_src>
import functools

import jax
import jax.numpy as jnp
from jax.experimental import pallas as pl
from jax.experimental.pallas import tpu as pltpu

_LANES = 128                       # vreg lane width
_S_TILE_MAX = 2048                 # fp32 lanes per streaming block (multiple of 128)


def _vmem_capacity_bytes():
    """Per-core VMEM capacity; conservative 64 MiB (v7x per-TC) fallback."""
    try:
        info = pltpu.get_tpu_info()
        cap = getattr(info, "vmem_capacity_bytes", None)
        if cap:
            return int(cap)
    except Exception:
        pass
    return 64 << 20


def _choose_s_tile(S, s_tile_max, itemsize, vmem_cap):
    cap = s_tile_max * max(1, 4 // max(1, itemsize))   # dtype-aware lane cap
    if vmem_cap >= (96 << 20):                         # v5e / v6e: 128 MiB VMEM
        cap *= 2
    return S if S <= cap else cap                      # full-dim or multiple of 128


# ----------------------------------------------------- fused single-pass kernel
def _fused_kernel(x_ref, w1_ref, b1_ref, w2_ref, b2_ref, o_ref, *, inv_s):
    x = x_ref[0]                                                          # (C, S)
    pooled = jnp.sum(x.astype(jnp.float32), axis=1, keepdims=True) * inv_s  # (C, 1)
    h = jnp.dot(w1_ref[...], pooled, preferred_element_type=jnp.float32) + b1_ref[...]
    h = jnp.maximum(h, 0.0)                                               # (H1, 1)
    a = jnp.dot(w2_ref[...], h, preferred_element_type=jnp.float32) + b2_ref[...]
    a = jax.nn.sigmoid(a)                                                 # (C, 1) in (0,1)
    o_ref[0] = (x * a.astype(x.dtype)).astype(o_ref.dtype)


def _fused_forward(x_bcs, w1, b1, w2, b2, vmem_limit):
    B, C, S = x_bcs.shape
    H1 = w1.shape[0]
    wbytes = w1.nbytes + b1.nbytes + w2.nbytes + b2.nbytes
    ce = pl.CostEstimate(
        flops=int(2 * B * C * S + 4 * B * H1 * C),
        transcendentals=int(2 * B * C),
        bytes_accessed=int(2 * x_bcs.nbytes + wbytes),
    )

    def const(shape):
        return pl.BlockSpec(shape, lambda b: (0,) * len(shape))

    return pl.pallas_call(
        functools.partial(_fused_kernel, inv_s=1.0 / S),
        out_shape=jax.ShapeDtypeStruct((B, C, S), x_bcs.dtype),
        grid_spec=pltpu.PrefetchScalarGridSpec(
            num_scalar_prefetch=0,
            grid=(B,),
            in_specs=[pl.BlockSpec((1, C, S), lambda b: (b, 0, 0)),
                      const((H1, C)), const((H1, 1)),
                      const((C, H1)), const((C, 1))],
            out_specs=pl.BlockSpec((1, C, S), lambda b: (b, 0, 0)),
        ),
        compiler_params=pltpu.CompilerParams(
            dimension_semantics=("parallel",),
            vmem_limit_bytes=int(vmem_limit)),
        cost_estimate=ce,
    )(x_bcs, w1, b1, w2, b2)


# ----------------------------------- pass 1 (large S): GAP + SE-MLP in finalize
def _gap_scale_kernel(x_ref, w1_ref, b1_ref, w2_ref, b2_ref, scale_ref, acc_ref, *,
                      s_total, s_tile, inv_s, needs_mask):
    s = pl.program_id(1)
    last = pl.num_programs(1) - 1

    @pl.when(s == 0)
    def _():
        acc_ref[...] = jnp.zeros_like(acc_ref)

    def accumulate(mask_tail):
        x = x_ref[0].astype(jnp.float32)                     # (C, s_tile)
        if mask_tail:
            lane = jax.lax.broadcasted_iota(jnp.int32, x.shape, 1) + s * s_tile
            x = jnp.where(lane < s_total, x, 0.0)            # select, not 0/1 multiply
        if s_tile % _LANES == 0:
            # Lane-dense fold: pure VALU adds into the (C, 128) scratch.
            acc = acc_ref[...]
            for g in range(s_tile // _LANES):
                acc = acc + x[:, g * _LANES:(g + 1) * _LANES]
            acc_ref[...] = acc
        else:
            # Rare path (s_tile not a multiple of 128, e.g. forced tiny S).
            acc_ref[:, 0:1] = acc_ref[:, 0:1] + jnp.sum(x, axis=1, keepdims=True)

    if needs_mask:
        @pl.when(s < last)
        def _():
            accumulate(False)                                 # no mask on interior tiles

        @pl.when(s == last)
        def _():
            accumulate(True)                                  # mask only on the tail tile
    else:
        accumulate(False)

    @pl.when(s == last)
    def _():
        # Finalize: one cross-lane reduce, mean, and the tiny SE MLP (column form,
        # PyTorch (out, in) weight layout -> no transposes anywhere).
        pooled = jnp.sum(acc_ref[...], axis=1, keepdims=True) * inv_s     # (C, 1)
        h = jnp.dot(w1_ref[...], pooled, preferred_element_type=jnp.float32) + b1_ref[...]
        h = jnp.maximum(h, 0.0)                                           # (H1, 1)
        a = jnp.dot(w2_ref[...], h, preferred_element_type=jnp.float32) + b2_ref[...]
        scale_ref[0] = jax.nn.sigmoid(a)                                  # (C, 1) fp32


def _gap_scale(x_bcs, w1, b1, w2, b2, s_tile, vmem_limit):
    # TODO(synk): on v7x (2 TCs) add a size-2 "parallel" split of the S axis so
    # pass 1 keeps both cores busy when B == 1 or B is odd (review opt #5).
    B, C, S = x_bcs.shape
    H1 = w1.shape[0]
    n_s = pl.cdiv(S, s_tile)
    wbytes = w1.nbytes + b1.nbytes + w2.nbytes + b2.nbytes
    ce = pl.CostEstimate(
        flops=int(B * C * S + 4 * B * H1 * C),
        transcendentals=int(2 * B * C),
        bytes_accessed=int(x_bcs.nbytes + wbytes + B * C * 4),
    )
    kernel = functools.partial(
        _gap_scale_kernel, s_total=S, s_tile=s_tile, inv_s=1.0 / S,
        needs_mask=(S % s_tile != 0))

    def const(shape):
        return pl.BlockSpec(shape, lambda b, s: (0,) * len(shape))

    return pl.pallas_call(
        kernel,
        out_shape=jax.ShapeDtypeStruct((B, C, 1), jnp.float32),
        grid_spec=pltpu.PrefetchScalarGridSpec(
            num_scalar_prefetch=0,
            grid=(B, n_s),
            in_specs=[pl.BlockSpec((1, C, s_tile), lambda b, s: (b, 0, s)),
                      const((H1, C)), const((H1, 1)),
                      const((C, H1)), const((C, 1))],
            out_specs=pl.BlockSpec((1, C, 1), lambda b, s: (b, 0, 0)),
            scratch_shapes=[pltpu.VMEM((C, _LANES), jnp.float32)],
        ),
        compiler_params=pltpu.CompilerParams(
            dimension_semantics=("parallel", "arbitrary"),
            vmem_limit_bytes=int(vmem_limit)),
        cost_estimate=ce,
    )(x_bcs, w1, b1, w2, b2)


# --------------------------------------------------------- pass 2: streaming scale
def _scale_kernel(x_ref, a_ref, o_ref):
    # x block (1, C, s_tile), a block (1, C, 1): column broadcast over the lane axis.
    x = x_ref[0]                                              # native dtype
    o_ref[0] = (x * a_ref[0].astype(x.dtype)).astype(o_ref.dtype)


def _apply_scale(x_bcs, scale_bc1, s_tile, vmem_limit):
    B, C, S = x_bcs.shape
    n_s = pl.cdiv(S, s_tile)
    ce = pl.CostEstimate(
        flops=int(B * C * S),
        transcendentals=0,
        bytes_accessed=int(2 * x_bcs.nbytes + scale_bc1.nbytes),
    )
    return pl.pallas_call(
        _scale_kernel,
        out_shape=jax.ShapeDtypeStruct((B, C, S), x_bcs.dtype),
        grid_spec=pltpu.PrefetchScalarGridSpec(
            num_scalar_prefetch=0,
            grid=(B, n_s),
            in_specs=[pl.BlockSpec((1, C, s_tile), lambda b, s: (b, 0, s)),
                      pl.BlockSpec((1, C, 1), lambda b, s: (b, 0, 0))],
            out_specs=pl.BlockSpec((1, C, s_tile), lambda b, s: (b, 0, s)),
        ),
        compiler_params=pltpu.CompilerParams(
            dimension_semantics=("parallel", "parallel"),
            vmem_limit_bytes=int(vmem_limit)),
        cost_estimate=ce,
    )(x_bcs, scale_bc1)


# ------------------------------------------------------------------------ wrapper
def temporal_channel_aware_block(x, w1, b1, w2, b2, *,
                                 s_tile_max=_S_TILE_MAX, fused=None):
    """x: (B, C, D, H, W) with C == 512 (the PyTorch broadcast requires it).

    Weights use PyTorch Linear layout (out_features, in_features):
      w1 (128, C), b1 (128,), w2 (512, 128), b2 (512,).
    Output keeps x's dtype (PyTorch promotes half/bf16 x to fp32 — intentional
    divergence, documented).  `fused=None` auto-dispatches between the fused
    single-pass kernel (one batch item fits VMEM) and the two-pass streaming
    path; True/False forces a path.
    """
    B, C, D, H, W = x.shape
    C_out, H1 = w2.shape
    assert C == 512 and C_out == 512, "dense2 outputs 512 channels; broadcast requires C == 512"
    assert w1.shape == (H1, C)
    S = D * H * W

    # Native layout: (B, C, D, H, W) -> (B, C, S) is a free reshape.
    x_bcs = x.reshape(B, C, S)
    w1f = w1.astype(jnp.float32)
    w2f = w2.astype(jnp.float32)
    b1c = b1.reshape(H1, 1).astype(jnp.float32)
    b2c = b2.reshape(C_out, 1).astype(jnp.float32)

    itemsize = x.dtype.itemsize
    vmem_cap = _vmem_capacity_bytes()
    # Per-generation budget: ~40 MiB on v7x (64 MiB VMEM), ~96 MiB on v5e/v6e (128 MiB).
    fused_budget = max(min(vmem_cap * 3 // 4, vmem_cap - (24 << 20)), 32 << 20)
    wbytes = w1f.nbytes + b1c.nbytes + w2f.nbytes + b2c.nbytes
    block_bytes = C * S * itemsize
    f32_work = 0 if itemsize >= 4 else C * S * 4      # fp32 upcast for the GAP sum
    need = 4 * block_bytes + f32_work + 2 * wbytes + (2 << 20)
    use_fused = (need <= fused_budget) if fused is None else bool(fused)

    if use_fused:
        limit = min(max(fused_budget, need), vmem_cap - (8 << 20))
        out_bcs = _fused_forward(x_bcs, w1f, b1c, w2f, b2c, vmem_limit=limit)
    else:
        s_tile = _choose_s_tile(S, s_tile_max, itemsize, vmem_cap)
        limit = min(48 << 20, fused_budget)
        scale = _gap_scale(x_bcs, w1f, b1c, w2f, b2c, s_tile, limit)   # (B, C, 1) fp32
        out_bcs = _apply_scale(x_bcs, scale, s_tile, limit)
    return out_bcs.reshape(B, C, D, H, W)


# --------------------------------------------------------------------- reference
def _reference(x, w1, b1, w2, b2):
    a = jnp.mean(x.astype(jnp.float32), axis=(2, 3, 4))      # (B, C)
    a = jnp.maximum(a @ w1.T + b1, 0.0)                      # (B, 128)
    a = jax.nn.sigmoid(a @ w2.T + b2)                        # (B, 512)
    return (x.astype(jnp.float32) * a[:, :, None, None, None]).astype(x.dtype)


if __name__ == "__main__":
    key = jax.random.PRNGKey(0)
    kx, k1, k2, k3, k4, kx2 = jax.random.split(key, 6)

    # Small shapes consistent with the module: C must be 512 for the broadcast.
    B, C, D, H, W = 2, 512, 2, 4, 4
    x = jax.random.normal(kx, (B, C, D, H, W), dtype=jnp.float32)

    # Deterministic synthetic parameters in PyTorch Linear layout (out, in).
    w1 = jax.random.normal(k1, (128, C), dtype=jnp.float32) * (1.0 / jnp.sqrt(C))
    b1 = jax.random.normal(k2, (128,), dtype=jnp.float32) * 0.01
    w2 = jax.random.normal(k3, (512, 128), dtype=jnp.float32) * (1.0 / jnp.sqrt(128.0))
    b2 = jax.random.normal(k4, (512,), dtype=jnp.float32) * 0.01

    # Small S -> auto-dispatch takes the fused single-pass kernel.
    out = jax.block_until_ready(temporal_channel_aware_block(x, w1, b1, w2, b2))
    ref = _reference(x, w1, b1, w2, b2)
    assert out.shape == (B, C, D, H, W)
    assert jnp.allclose(out, ref, atol=1e-5, rtol=1e-5), "mismatch (fused path)"

    # Force the two-pass streaming path with a masked partial last tile
    # (S = 320 with 128/256-lane tiles) to exercise GAP+MLP finalize and pass 2.
    x2 = jax.random.normal(kx2, (B, C, 2, 10, 16), dtype=jnp.float32)
    out2 = jax.block_until_ready(
        temporal_channel_aware_block(x2, w1, b1, w2, b2, s_tile_max=128, fused=False))
    ref2 = _reference(x2, w1, b1, w2, b2)
    assert jnp.allclose(out2, ref2, atol=1e-5, rtol=1e-5), "mismatch (tiled path)"

    print("KERNEL_OK")
</pallas_src>

<mosaic_0001>
module attributes {stable_mosaic.version = 11 : i64} {
  func.func @_fused_kernel(%arg0: i32, %arg1: memref<1x512x32xf32, #tpu.memory_space<vmem>>, %arg2: memref<128x512xf32, #tpu.memory_space<vmem>>, %arg3: memref<128x1xf32, #tpu.memory_space<vmem>>, %arg4: memref<512x128xf32, #tpu.memory_space<vmem>>, %arg5: memref<512x1xf32, #tpu.memory_space<vmem>>, %arg6: memref<1x512x32xf32, #tpu.memory_space<vmem>>) attributes {dimension_semantics = [#tpu.dimension_semantics<parallel>], iteration_bounds = array<i64: 2>, scalar_prefetch = 0 : i64, scratch_operands = 0 : i64, tpu.core_type = #tpu.core_type<tc>, window_params = [{transform_indices = @transform_0, window_bounds = array<i64: 1, 512, 32>}, {pipeline_mode = #tpu.pipeline_mode<synchronous>, transform_indices = @transform_1, window_bounds = array<i64: 128, 512>}, {pipeline_mode = #tpu.pipeline_mode<synchronous>, transform_indices = @transform_2, window_bounds = array<i64: 128, 1>}, {pipeline_mode = #tpu.pipeline_mode<synchronous>, transform_indices = @transform_3, window_bounds = array<i64: 512, 128>}, {pipeline_mode = #tpu.pipeline_mode<synchronous>, transform_indices = @transform_4, window_bounds = array<i64: 512, 1>}, {transform_indices = @transform_5, window_bounds = array<i64: 1, 512, 32>}]} {
    %c0 = arith.constant 0 : index
    %c0_0 = arith.constant 0 : index
    %c0_1 = arith.constant 0 : index
    %0 = vector.load %arg1[%c0, %c0_0, %c0_1] : memref<1x512x32xf32, #tpu.memory_space<vmem>>, vector<1x512x32xf32>
    %1 = vector.shape_cast %0 : vector<1x512x32xf32> to vector<512x32xf32>
    %cst = arith.constant dense<0.000000e+00> : vector<512xf32>
    %2 = vector.multi_reduction <add>, %1, %cst [1] : vector<512x32xf32> to vector<512xf32>
    %3 = vector.shape_cast %2 : vector<512xf32> to vector<512x1xf32>
    %cst_2 = arith.constant 3.125000e-02 : f32
    %4 = vector.broadcast %cst_2 : f32 to vector<512x1xf32>
    %5 = arith.mulf %3, %4 : vector<512x1xf32>
    %c0_3 = arith.constant 0 : index
    %c0_4 = arith.constant 0 : index
    %6 = vector.load %arg2[%c0_3, %c0_4] : memref<128x512xf32, #tpu.memory_space<vmem>>, vector<128x512xf32>
    %cst_5 = arith.constant dense<0.000000e+00> : vector<128x1xf32>
    %7 = tpu.matmul %6, %5, %cst_5 {dimension_numbers = #tpu.dot_dimension_numbers<[1], [0], [0], [1], [0, 0, 1, 1], [], []>} : vector<128x512xf32>, vector<512x1xf32>, vector<128x1xf32> -> vector<128x1xf32>
    %c0_6 = arith.constant 0 : index
    %c0_7 = arith.constant 0 : index
    %8 = vector.load %arg3[%c0_6, %c0_7] : memref<128x1xf32, #tpu.memory_space<vmem>>, vector<128x1xf32>
    %9 = arith.addf %7, %8 : vector<128x1xf32>
    %cst_8 = arith.constant 0.000000e+00 : f32
    %10 = vector.broadcast %cst_8 : f32 to vector<128x1xf32>
    %11 = arith.maximumf %9, %10 : vector<128x1xf32>
    %c0_9 = arith.constant 0 : index
    %c0_10 = arith.constant 0 : index
    %12 = vector.load %arg4[%c0_9, %c0_10] : memref<512x128xf32, #tpu.memory_space<vmem>>, vector<512x128xf32>
    %cst_11 = arith.constant dense<0.000000e+00> : vector<512x1xf32>
    %13 = tpu.matmul %12, %11, %cst_11 {dimension_numbers = #tpu.dot_dimension_numbers<[1], [0], [0], [1], [0, 0, 1, 1], [], []>} : vector<512x128xf32>, vector<128x1xf32>, vector<512x1xf32> -> vector<512x1xf32>
    %c0_12 = arith.constant 0 : index
    %c0_13 = arith.constant 0 : index
    %14 = vector.load %arg5[%c0_12, %c0_13] : memref<512x1xf32, #tpu.memory_space<vmem>>, vector<512x1xf32>
    %15 = arith.addf %13, %14 : vector<512x1xf32>
    %16 = arith.negf %15 : vector<512x1xf32>
    %17 = math.exp %16 : vector<512x1xf32>
    %cst_14 = arith.constant 1.000000e+00 : f32
    %18 = vector.broadcast %cst_14 : f32 to vector<512x1xf32>
    %19 = arith.addf %18, %17 : vector<512x1xf32>
    %20 = arith.divf %18, %19 : vector<512x1xf32>
    %21 = vector.broadcast %20 : vector<512x1xf32> to vector<512x32xf32>
    %22 = arith.mulf %1, %21 : vector<512x32xf32>
    %c0_15 = arith.constant 0 : index
    %c0_16 = arith.constant 0 : index
    %c0_17 = arith.constant 0 : index
    %23 = vector.load %arg6[%c0_15, %c0_16, %c0_17] : memref<1x512x32xf32, #tpu.memory_space<vmem>>, vector<1x512x32xf32>
    %24 = vector.shape_cast %23 : vector<1x512x32xf32> to vector<512x32xf32>
    %25 = vector.shape_cast %22 : vector<512x32xf32> to vector<1x512x32xf32>
    tpu.vector_store %arg6[%c0_15, %c0_16, %c0_17], %25 {strides = array<i32>} : memref<1x512x32xf32, #tpu.memory_space<vmem>>, vector<1x512x32xf32>,
    return
  }
  func.func @transform_0(%arg0: i32) -> (i32, i32, i32) {
    %c0_i32 = arith.constant 0 : i32
    %c0_i32_0 = arith.constant 0 : i32
    %c0_i32_1 = arith.constant 0 : i32
    return %arg0, %c0_i32, %c0_i32_0 : i32, i32, i32
  }
  func.func @transform_1(%arg0: i32) -> (i32, i32) {
    %c0_i32 = arith.constant 0 : i32
    %c0_i32_0 = arith.constant 0 : i32
    %c0_i32_1 = arith.constant 0 : i32
    return %c0_i32, %c0_i32_0 : i32, i32
  }
  func.func @transform_2(%arg0: i32) -> (i32, i32) {
    %c0_i32 = arith.constant 0 : i32
    %c0_i32_0 = arith.constant 0 : i32
    %c0_i32_1 = arith.constant 0 : i32
    return %c0_i32, %c0_i32_0 : i32, i32
  }
  func.func @transform_3(%arg0: i32) -> (i32, i32) {
    %c0_i32 = arith.constant 0 : i32
    %c0_i32_0 = arith.constant 0 : i32
    %c0_i32_1 = arith.constant 0 : i32
    return %c0_i32, %c0_i32_0 : i32, i32
  }
  func.func @transform_4(%arg0: i32) -> (i32, i32) {
    %c0_i32 = arith.constant 0 : i32
    %c0_i32_0 = arith.constant 0 : i32
    %c0_i32_1 = arith.constant 0 : i32
    return %c0_i32, %c0_i32_0 : i32, i32
  }
  func.func @transform_5(%arg0: i32) -> (i32, i32, i32) {
    %c0_i32 = arith.constant 0 : i32
    %c0_i32_0 = arith.constant 0 : i32
    %c0_i32_1 = arith.constant 0 : i32
    return %arg0, %c0_i32, %c0_i32_0 : i32, i32, i32
  }
}

</mosaic_0001>

<bundles_post_ra>
// kernel: tpu_custom_call.1
= control target key start
LH: loop header
LB: loop body
LE: loop exit
PB: predicated region body
PF: predicated region fallthrough
CT: control target
= control target key end

     0   :  { %s3422_s18 = smov 0   ;;  %s5985_s0 = inlined_call_operand.vmem [shape: f32[2,512,32], index: 0, kind: input, shape index: {}]   ;;  %s5986_s1 = inlined_call_operand.vmem [shape: f32[128,512], index: 1, kind: input, shape index: {}]   ;;  %s5987_s2 = inlined_call_operand.vmem [shape: f32[128,1], index: 2, kind: input, shape index: {}]   ;;  %s5988_s3 = inlined_call_operand.vmem [shape: f32[512,128], index: 3, kind: input, shape index: {}]   ;;  %s5989_s4 = inlined_call_operand.vmem [shape: f32[512,1], index: 4, kind: input, shape index: {}]   ;;  %s5990_s5 = inlined_call_operand.vmem [shape: f32[2,512,32], index: 5, kind: output, shape index: {}]  }
   0x1 LB: > { %s2958_s19 = sadd.s32 4294967295, %s3389_s18   ;;  %p2962_p0 = scmp.ge.s32.totalorder %s3389_s18, 1  ;;  %s3389_s18 = sphi %s3422_s18, %s15_s18  }
   0x2   : > { %p187_p1 = scmp.lt.s32.totalorder %s3389_s18, 3 }
   0x4   : > { %p188_p2 = pnand %p2962_p0, %p187_p1 }
   0x5   : > { %p215_p3 = scmp.lt.s32.totalorder (!%p188_p2), %s2958_s19, 1 }
   0x6   : > { %191 = sbr.rel (%p188_p2) target bundleno = 1171 (0x493), region = 40 }
   0xb   : > { %s6114_s19 = smov (!%p215_p3, %s2958_s19), 1  ;;  %vm289_vm0 = vcmask 261120  }
   0xc   : > { %s3033_s20 = sshll.u32 %s6114_s19, 9 }
   0xd   : > { %s3438_s23 = scalar_lea.vmem %s5985_s0, %s3033_s20  ;;  %s4827_s22 = scalar_lea.vmem %s5990_s5, %s3033_s20 }
   0xe   : > { %v272_v0 = vld [vmem:[%s3438_s23 + $0x178] sm:$0xff]  ;;  %v271_v1 = vld [vmem:[%s3438_s23 + $0x170] sm:$0xff]  ;;  %v270_v2 = vld [vmem:[%s3438_s23 + $0x168] sm:$0xff] }
   0xf   : > { %v431_v3 = vsel %vm289_vm0, %v272_v0, 0.0  ;;  %v428_v4 = vsel %vm289_vm0, %v271_v1, 0.0  ;;  %v425_v5 = vsel %vm289_vm0, %v270_v2, 0.0  ;;  %v240_v6 = vld [vmem:[%s3438_s23 + $0x78] sm:$0xff]  ;;  %v239_v7 = vld [vmem:[%s3438_s23 + $0x70] sm:$0xff]  ;;  %v238_v8 = vld [vmem:[%s3438_s23 + $0x68] sm:$0xff] }
  0x10   : > { %432 = vadd.xlane.f32.xlu0 %v431_v3  ;;  %429 = vadd.xlane.f32.xlu1 %v428_v4  ;;  %v335_v9 = vsel %vm289_vm0, %v240_v6, 0.0  ;;  %v332_v10 = vsel %vm289_vm0, %v239_v7, 0.0  ;;  %v329_v11 = vsel %vm289_vm0, %v238_v8, 0.0  ;;  %v269_v12 = vld [vmem:[%s3438_s23 + $0x160] sm:$0xff]  ;;  %v268_v14 = vld [vmem:[%s3438_s23 + $0x158] sm:$0xff]  ;;  %v267_v18 = vld [vmem:[%s3438_s23 + $0x150] sm:$0xff] }
  0x11   : > { %426 = vadd.xlane.f32.xlu2 %v425_v5  ;;  %v237_v13 = vld [vmem:[%s3438_s23 + $0x60] sm:$0xff]  ;;  %v422_v15 = vsel %vm289_vm0, %v269_v12, 0.0  ;;  %v419_v17 = vsel %vm289_vm0, %v268_v14, 0.0  ;;  %v236_v19 = vld [vmem:[%s3438_s23 + $0x58] sm:$0xff]  ;;  %v235_v20 = vld [vmem:[%s3438_s23 + $0x50] sm:$0xff]  ;;  %v416_v21 = vsel %vm289_vm0, %v267_v18, 0.0 }
  0x12   : > { %v326_v16 = vsel %vm289_vm0, %v237_v13, 0.0  ;;  %v323_v22 = vsel %vm289_vm0, %v236_v19, 0.0  ;;  %v320_v23 = vsel %vm289_vm0, %v235_v20, 0.0  ;;  %v266_v24 = vld [vmem:[%s3438_s23 + $0x148] sm:$0xff]  ;;  %v265_v26 = vld [vmem:[%s3438_s23 + $0x140] sm:$0xff]  ;;  %v264_v30 = vld [vmem:[%s3438_s23 + $0x138] sm:$0xff] }
  0x13   : > { %v234_v25 = vld [vmem:[%s3438_s23 + $0x48] sm:$0xff]  ;;  %v413_v27 = vsel %vm289_vm0, %v266_v24, 0.0  ;;  %v410_v29 = vsel %vm289_vm0, %v265_v26, 0.0  ;;  %v233_v31 = vld [vmem:[%s3438_s23 + $0x40] sm:$0xff]  ;;  %v232_v32 = vld [vmem:[%s3438_s23 + $0x38] sm:$0xff]  ;;  %v407_v33 = vsel %vm289_vm0, %v264_v30, 0.0 }
  0x14   : > { %v317_v28 = vsel %vm289_vm0, %v234_v25, 0.0  ;;  %v314_v34 = vsel %vm289_vm0, %v233_v31, 0.0  ;;  %v311_v35 = vsel %vm289_vm0, %v232_v32, 0.0  ;;  %v263_v36 = vld [vmem:[%s3438_s23 + $0x130] sm:$0xff]  ;;  %v262_v38 = vld [vmem:[%s3438_s23 + $0x128] sm:$0xff]  ;;  %v261_v42 = vld [vmem:[%s3438_s23 + $0x120] sm:$0xff] }
  0x15   : > { %v231_v37 = vld [vmem:[%s3438_s23 + $0x30] sm:$0xff]  ;;  %v404_v39 = vsel %vm289_vm0, %v263_v36, 0.0  ;;  %v401_v41 = vsel %vm289_vm0, %v262_v38, 0.0  ;;  %v230_v43 = vld [vmem:[%s3438_s23 + $0x28] sm:$0xff]  ;;  %v229_v44 = vld [vmem:[%s3438_s23 + $0x20] sm:$0xff]  ;;  %v398_v45 = vsel %vm289_vm0, %v261_v42, 0.0 }
  0x16   : > { %v308_v40 = vsel %vm289_vm0, %v231_v37, 0.0  ;;  %v305_v46 = vsel %vm289_vm0, %v230_v43, 0.0  ;;  %v302_v47 = vsel %vm289_vm0, %v229_v44, 0.0  ;;  %v260_v48 = vld [vmem:[%s3438_s23 + $0x118] sm:$0xff]  ;;  %v259_v50 = vld [vmem:[%s3438_s23 + $0x110] sm:$0xff]  ;;  %v258_v54 = vld [vmem:[%s3438_s23 + $0x108] sm:$0xff] }
  0x17   : > { %v228_v49 = vld [vmem:[%s3438_s23 + $0x18] sm:$0xff]  ;;  %v395_v51 = vsel %vm289_vm0, %v260_v48, 0.0  ;;  %v392_v53 = vsel %vm289_vm0, %v259_v50, 0.0  ;;  %v227_v55 = vld [vmem:[%s3438_s23 + $0x10] sm:$0xff]  ;;  %v226_v56 = vld [vmem:[%s3438_s23 + $0x8] sm:$0xff]  ;;  %v389_v57 = vsel %vm289_vm0, %v258_v54, 0.0 }
  0x18   : > { %336 = vadd.xlane.f32.xlu0 %v335_v9  ;;  %333 = vadd.xlane.f32.xlu1 %v332_v10  ;;  %v299_v52 = vsel %vm289_vm0, %v228_v49, 0.0  ;;  %v296_v58 = vsel %vm289_vm0, %v227_v55, 0.0  ;;  %v293_v59 = vsel %vm289_vm0, %v226_v56, 0.0  ;;  %v257_v60 = vld [vmem:[%s3438_s23 + $0x100] sm:$0xff]  ;;  %v288_v62 = vld [vmem:[%s3438_s23 + $0x1f8] sm:$0xff]  ;;  %v287_v3 = vld [vmem:[%s3438_s23 + $0x1f0] sm:$0xff] }
  0x19   : > { %330 = vadd.xlane.f32.xlu2 %v329_v11  ;;  %v225_v61 = vld [vmem:[%s3438_s23] sm:$0xff]  ;;  %v386_v63 = vsel %vm289_vm0, %v257_v60, 0.0  ;;  %v479_v1 = vsel %vm289_vm0, %v288_v62, 0.0  ;;  %v256_v2 = vld [vmem:[%s3438_s23 + $0xf8] sm:$0xff]  ;;  %v255_v4 = vld [vmem:[%s3438_s23 + $0xf0] sm:$0xff]  ;;  %v476_v6 = vsel %vm289_vm0, %v287_v3, 0.0 }
  0x1a   : > { %v290_v0 = vsel %vm289_vm0, %v225_v61, 0.0  ;;  %v383_v5 = vsel %vm289_vm0, %v256_v2, 0.0  ;;  %v380_v7 = vsel %vm289_vm0, %v255_v4, 0.0  ;;  %v286_v8 = vld [vmem:[%s3438_s23 + $0x1e8] sm:$0xff]  ;;  %v285_v10 = vld [vmem:[%s3438_s23 + $0x1e0] sm:$0xff]  ;;  %v283_v20 = vld [vmem:[%s3438_s23 + $0x1d0] sm:$0xff] }
  0x1b   : > { %v254_v9 = vld [vmem:[%s3438_s23 + $0xe8] sm:$0xff]  ;;  %v473_v11 = vsel %vm289_vm0, %v286_v8, 0.0  ;;  %v470_v13 = vsel %vm289_vm0, %v285_v10, 0.0  ;;  %v253_v14 = vld [vmem:[%s3438_s23 + $0xe0] sm:$0xff]  ;;  %v280_v38 = vld [vmem:[%s3438_s23 + $0x1b8] sm:$0xff] }
  0x1c   : > { %v377_v12 = vsel %vm289_vm0, %v254_v9, 0.0  ;;  %v250_v26 = vld [vmem:[%s3438_s23 + $0xc8] sm:$0xff]  ;;  %v249_v30 = vld [vmem:[%s3438_s23 + $0xc0] sm:$0xff]  ;;  %v279_v48 = vld [vmem:[%s3438_s23 + $0x1b0] sm:$0xff] }
  0x1d   : > { %v362_v37 = vsel %vm289_vm0, %v249_v30, 0.0  ;;  %v452_v49 = vsel %vm289_vm0, %v279_v48, 0.0  ;;  %v247_v50 = vld [vmem:[%s3438_s23 + $0xb0] sm:$0xff]  ;;  %v277_v4 = vld [vmem:[%s3438_s23 + $0x1a0] sm:$0xff] }
  0x20   : > { %423 = vadd.xlane.f32.xlu0 %v422_v15  ;;  %327 = vadd.xlane.f32.xlu1 %v326_v16  ;;  %v284_v15 = vld [vmem:[%s3438_s23 + $0x1d8] sm:$0xff] }
  0x21   : > { %420 = vadd.xlane.f32.xlu2 %v419_v17  ;;  %v252_v16 = vld [vmem:[%s3438_s23 + $0xd8] sm:$0xff]  ;;  %v374_v17 = vsel %vm289_vm0, %v253_v14, 0.0  ;;  %v467_v18 = vsel %vm289_vm0, %v284_v15, 0.0 }
  0x22   : > { %v371_v19 = vsel %vm289_vm0, %v252_v16, 0.0  ;;  %v276_v14 = vld [vmem:[%s3438_s23 + $0x198] sm:$0xff] }
  0x23   : > { %v244_v15 = vld [vmem:[%s3438_s23 + $0x98] sm:$0xff]  ;;  %v443_v16 = vsel %vm289_vm0, %v276_v14, 0.0  ;;  %v554_v14 = vld [vmem:[%s5986_s1 + $0x40] sm:$0xff] }
  0x28   : > { %417 = vadd.xlane.f32.xlu1 %v416_v21  ;;  %324 = vadd.xlane.f32.xlu0 %v323_v22  ;;  %v251_v21 = vld [vmem:[%s3438_s23 + $0xd0] sm:$0xff]  ;;  %v282_v22 = vld [vmem:[%s3438_s23 + $0x1c8] sm:$0xff] }
  0x29   : > { %321 = vadd.xlane.f32.xlu2 %v320_v23  ;;  %v464_v23 = vsel %vm289_vm0, %v283_v20, 0.0  ;;  %v368_v24 = vsel %vm289_vm0, %v251_v21, 0.0  ;;  %v461_v25 = vsel %vm289_vm0, %v282_v22, 0.0 }
  0x30   : > { %414 = vadd.xlane.f32.xlu0 %v413_v27  ;;  %318 = vadd.xlane.f32.xlu1 %v317_v28 }
  0x31   : > { %411 = vadd.xlane.f32.xlu2 %v410_v29  ;;  %v281_v29 = vld [vmem:[%s3438_s23 + $0x1c0] sm:$0xff] }
  0x32   : > { %v458_v36 = vsel %vm289_vm0, %v281_v29, 0.0 }
  0x38   : > { %408 = vadd.xlane.f32.xlu1 %v407_v33  ;;  %315 = vadd.xlane.f32.xlu0 %v314_v34  ;;  %v365_v34 = vsel %vm289_vm0, %v250_v26, 0.0 }
  0x39   : > { %312 = vadd.xlane.f32.xlu2 %v311_v35 }
  0x40   : > { %405 = vadd.xlane.f32.xlu0 %v404_v39  ;;  %309 = vadd.xlane.f32.xlu1 %v308_v40 }
  0x41   : > { %402 = vadd.xlane.f32.xlu2 %v401_v41  ;;  %v248_v41 = vld [vmem:[%s3438_s23 + $0xb8] sm:$0xff] }
  0x48   : > { %399 = vadd.xlane.f32.xlu1 %v398_v45  ;;  %306 = vadd.xlane.f32.xlu0 %v305_v46  ;;  %v455_v45 = vsel %vm289_vm0, %v280_v38, 0.0 }
  0x49   : > { %303 = vadd.xlane.f32.xlu2 %v302_v47  ;;  %v359_v47 = vsel %vm289_vm0, %v248_v41, 0.0 }
  0x50   : > { %396 = vadd.xlane.f32.xlu0 %v395_v51  ;;  %300 = vadd.xlane.f32.xlu1 %v299_v52 }
  0x51   : > { %393 = vadd.xlane.f32.xlu2 %v392_v53 }
  0x58   : > { %390 = vadd.xlane.f32.xlu1 %v389_v57  ;;  %297 = vadd.xlane.f32.xlu0 %v296_v58  ;;  %v356_v57 = vsel %vm289_vm0, %v247_v50, 0.0  ;;  %v278_v58 = vld [vmem:[%s3438_s23 + $0x1a8] sm:$0xff] }
  0x59   : > { %294 = vadd.xlane.f32.xlu2 %v293_v59  ;;  %v246_v59 = vld [vmem:[%s3438_s23 + $0xa8] sm:$0xff]  ;;  %v449_v60 = vsel %vm289_vm0, %v278_v58, 0.0 }
  0x5a   : > { %v353_v61 = vsel %vm289_vm0, %v246_v59, 0.0 }
  0x60   : > { %387 = vadd.xlane.f32.xlu0 %v386_v63  ;;  %291 = vadd.xlane.f32.xlu1 %v290_v0 }
  0x61   : > { %480 = vadd.xlane.f32.xlu2 %v479_v1 }
  0x68   : > { %384 = vadd.xlane.f32.xlu0 %v383_v5  ;;  %477 = vadd.xlane.f32.xlu1 %v476_v6  ;;  %v245_v5 = vld [vmem:[%s3438_s23 + $0xa0] sm:$0xff]  ;;  %v446_v6 = vsel %vm289_vm0, %v277_v4, 0.0 }
  0x69   : > { %381 = vadd.xlane.f32.xlu2 %v380_v7  ;;  %v350_v7 = vsel %vm289_vm0, %v245_v5, 0.0 }
  0x70   : > { %474 = vadd.xlane.f32.xlu0 %v473_v11  ;;  %378 = vadd.xlane.f32.xlu1 %v377_v12 }
  0x71   : > { %471 = vadd.xlane.f32.xlu2 %v470_v13 }
  0x78   : > { %375 = vadd.xlane.f32.xlu0 %v374_v17  ;;  %468 = vadd.xlane.f32.xlu1 %v467_v18  ;;  %v347_v17 = vsel %vm289_vm0, %v244_v15, 0.0  ;;  %v556_v15 = vld [vmem:[%s5986_s1 + $0x50] sm:$0xff] }
  0x79   : > { %372 = vadd.xlane.f32.xlu2 %v371_v19 }
  0x80   : > { %465 = vadd.xlane.f32.xlu0 %v464_v23  ;;  %369 = vadd.xlane.f32.xlu1 %v368_v24  ;;  %v275_v24 = vld [vmem:[%s3438_s23 + $0x190] sm:$0xff] }
  0x81   : > { %462 = vadd.xlane.f32.xlu2 %v461_v25  ;;  %v243_v25 = vld [vmem:[%s3438_s23 + $0x90] sm:$0xff]  ;;  %v440_v26 = vsel %vm289_vm0, %v275_v24, 0.0 }
  0x83   : > { %v433_v27 = vpop.xlane.xlu0 %432  ;;  %v430_v28 = vpop.xlane.xlu1 %429 }
  0x84   : > { %v528_v31 = vmul.f32 0.03125, %v430_v28  ;;  %v529_v32 = vmul.f32 0.03125, %v433_v27  ;;  %v427_v33 = vpop.xlane.xlu2 %426  ;;  %v344_v27 = vsel %vm289_vm0, %v243_v25, 0.0 }
  0x85   : > { %v527_v35 = vmul.f32 0.03125, %v427_v33  ;;  %v274_v33 = vld [vmem:[%s3438_s23 + $0x188] sm:$0xff] }
  0x86   : > { %756 = vmatpush.msra.mxu3 %v529_v32 }
  0x88   : > { %757 = vmatpush.msra.mxu3 %v528_v31  ;;  %366 = vadd.xlane.f32.xlu0 %v365_v34 }
  0x89   : > { %459 = vadd.xlane.f32.xlu1 %v458_v36  ;;  %363 = vadd.xlane.f32.xlu2 %v362_v37  ;;  %v242_v36 = vld [vmem:[%s3438_s23 + $0x88] sm:$0xff] }
  0x8a   : > { %758 = vmatpush.msra.mxu3 %v527_v35  ;;  %v437_v35 = vsel %vm289_vm0, %v274_v33, 0.0  ;;  %v341_v37 = vsel %vm289_vm0, %v242_v36, 0.0 }
  0x8b   : > { %v337_v39 = vpop.xlane.xlu0 %336  ;;  %v334_v40 = vpop.xlane.xlu1 %333 }
  0x8c   : > { %v496_v42 = vmul.f32 0.03125, %v334_v40  ;;  %v497_v43 = vmul.f32 0.03125, %v337_v39  ;;  %v331_v44 = vpop.xlane.xlu2 %330 }
  0x8d   : > { %v495_v46 = vmul.f32 0.03125, %v331_v44 }
  0x8e   : > { %626 = vmatpush.msra.mxu1 %v497_v43  ;;  %v273_v43 = vld [vmem:[%s3438_s23 + $0x180] sm:$0xff] }
  0x90   : > { %627 = vmatpush.msra.mxu1 %v496_v42  ;;  %456 = vadd.xlane.f32.xlu0 %v455_v45  ;;  %v434_v45 = vsel %vm289_vm0, %v273_v43, 0.0 }
  0x91   : > { %360 = vadd.xlane.f32.xlu1 %v359_v47  ;;  %453 = vadd.xlane.f32.xlu2 %v452_v49 }
  0x92   : > { %628 = vmatpush.msra.mxu1 %v495_v46  ;;  %v241_v46 = vld [vmem:[%s3438_s23 + $0x80] sm:$0xff] }
  0x93   : > { %v424_v51 = vpop.xlane.xlu0 %423  ;;  %v328_v52 = vpop.xlane.xlu1 %327  ;;  %v338_v47 = vsel %vm289_vm0, %v241_v46, 0.0  ;;  %v572_v46 = vld [vmem:[%s5986_s1 + $0xd0] sm:$0xff] }
  0x94   : > { %v526_v53 = vmul.f32 0.03125, %v424_v51  ;;  %v494_v54 = vmul.f32 0.03125, %v328_v52  ;;  %v421_v55 = vpop.xlane.xlu2 %420 }
  0x95   : > { %v525_v56 = vmul.f32 0.03125, %v421_v55 }
  0x96   : > { %759 = vmatpush.msra.mxu3 %v526_v53  ;;  %629 = vmatpush.msra.mxu1 %v494_v54 }
  0x98   : > { %760 = vmatpush.msra.mxu3 %v525_v56  ;;  %357 = vadd.xlane.f32.xlu0 %v356_v57 }
  0x99   : > { %450 = vadd.xlane.f32.xlu1 %v449_v60  ;;  %354 = vadd.xlane.f32.xlu2 %v353_v61 }
  0x9b   : > { %v418_v62 = vpop.xlane.xlu1 %417  ;;  %v325_v63 = vpop.xlane.xlu0 %324 }
  0x9c   : > { %v524_v0 = vmul.f32 0.03125, %v418_v62  ;;  %v493_v1 = vmul.f32 0.03125, %v325_v63  ;;  %v322_v2 = vpop.xlane.xlu2 %321 }
  0x9d   : > { %v492_v3 = vmul.f32 0.03125, %v322_v2 }
  0x9e   : > { %630 = vmatpush.msra.mxu1 %v493_v1  ;;  %761 = vmatpush.msra.mxu3 %v524_v0  ;;  %v546_v0 = vld [vmem:[%s5986_s1] sm:$0xff]  ;;  %v548_v1 = vld [vmem:[%s5986_s1 + $0x10] sm:$0xff] }
  0xa0   : > { %631 = vmatpush.msra.mxu1 %v492_v3  ;;  %447 = vadd.xlane.f32.xlu0 %v446_v6 }
  0xa1   : > { %351 = vadd.xlane.f32.xlu1 %v350_v7  ;;  %444 = vadd.xlane.f32.xlu2 %v443_v16  ;;  %v550_v7 = vld [vmem:[%s5986_s1 + $0x20] sm:$0xff] }
  0xa3   : > { %v415_v8 = vpop.xlane.xlu0 %414  ;;  %v319_v9 = vpop.xlane.xlu1 %318 }
  0xa4   : > { %v523_v10 = vmul.f32 0.03125, %v415_v8  ;;  %v491_v11 = vmul.f32 0.03125, %v319_v9  ;;  %v412_v12 = vpop.xlane.xlu2 %411  ;;  %v552_v8 = vld [vmem:[%s5986_s1 + $0x30] sm:$0xff] }
  0xa5   : > { %v522_v13 = vmul.f32 0.03125, %v412_v12 }
  0xa6   : > { %762 = vmatpush.msra.mxu3 %v523_v10  ;;  %632 = vmatpush.msra.mxu1 %v491_v11 }
  0xa8   : > { %763 = vmatpush.msra.mxu3 %v522_v13  ;;  %348 = vadd.xlane.f32.xlu0 %v347_v17 }
  0xa9   : > { %441 = vadd.xlane.f32.xlu1 %v440_v26  ;;  %345 = vadd.xlane.f32.xlu2 %v344_v27 }
  0xab   : > { %v409_v18 = vpop.xlane.xlu1 %408  ;;  %v316_v19 = vpop.xlane.xlu0 %315 }
  0xac   : > { %v521_v20 = vmul.f32 0.03125, %v409_v18  ;;  %v490_v21 = vmul.f32 0.03125, %v316_v19  ;;  %v313_v22 = vpop.xlane.xlu2 %312 }
  0xad   : > { %v489_v23 = vmul.f32 0.03125, %v313_v22  ;;  %v558_v22 = vld [vmem:[%s5986_s1 + $0x60] sm:$0xff] }
  0xae   : > { %633 = vmatpush.msra.mxu1 %v490_v21  ;;  %764 = vmatpush.msra.mxu3 %v521_v20 }
  0xb0   : > { %634 = vmatpush.msra.mxu1 %v489_v23  ;;  %438 = vadd.xlane.f32.xlu0 %v437_v35  ;;  %v560_v23 = vld [vmem:[%s5986_s1 + $0x70] sm:$0xff] }
  0xb1   : > { %342 = vadd.xlane.f32.xlu1 %v341_v37  ;;  %435 = vadd.xlane.f32.xlu2 %v434_v45  ;;  %v566_v37 = vld [vmem:[%s5986_s1 + $0xa0] sm:$0xff] }
  0xb2   : > { %v570_v45 = vld [vmem:[%s5986_s1 + $0xc0] sm:$0xff] }
  0xb3   : > { %v406_v28 = vpop.xlane.xlu0 %405  ;;  %v310_v29 = vpop.xlane.xlu1 %309 }
  0xb4   : > { %v520_v30 = vmul.f32 0.03125, %v406_v28  ;;  %v488_v31 = vmul.f32 0.03125, %v310_v29  ;;  %v403_v32 = vpop.xlane.xlu2 %402 }
  0xb5   : > { %v519_v34 = vmul.f32 0.03125, %v403_v32 }
  0xb6   : > { %765 = vmatpush.msra.mxu3 %v520_v30  ;;  %635 = vmatpush.msra.mxu1 %v488_v31  ;;  %v562_v30 = vld [vmem:[%s5986_s1 + $0x80] sm:$0xff]  ;;  %v564_v31 = vld [vmem:[%s5986_s1 + $0x90] sm:$0xff] }
  0xb8   : > { %766 = vmatpush.msra.mxu3 %v519_v34  ;;  %339 = vadd.xlane.f32.xlu0 %v338_v47 }
  0xbb   : > { %v400_v38 = vpop.xlane.xlu1 %399  ;;  %v307_v39 = vpop.xlane.xlu0 %306 }
  0xbc   : > { %v518_v40 = vmul.f32 0.03125, %v400_v38  ;;  %v487_v41 = vmul.f32 0.03125, %v307_v39  ;;  %v304_v42 = vpop.xlane.xlu2 %303  ;;  %v568_v38 = vld [vmem:[%s5986_s1 + $0xb0] sm:$0xff] }
  0xbd   : > { %v486_v44 = vmul.f32 0.03125, %v304_v42 }
  0xbe   : > { %636 = vmatpush.msra.mxu1 %v487_v41  ;;  %767 = vmatpush.msra.mxu3 %v518_v40 }
  0xc0   : > { %637 = vmatpush.msra.mxu1 %v486_v44 }
  0xc3   : > { %v397_v48 = vpop.xlane.xlu0 %396  ;;  %v301_v49 = vpop.xlane.xlu1 %300 }
  0xc4   : > { %v517_v50 = vmul.f32 0.03125, %v397_v48  ;;  %v485_v51 = vmul.f32 0.03125, %v301_v49  ;;  %v394_v52 = vpop.xlane.xlu2 %393 }
  0xc5   : > { %v516_v53 = vmul.f32 0.03125, %v394_v52 }
  0xc6   : > { %768 = vmatpush.msra.mxu3 %v517_v50  ;;  %638 = vmatpush.msra.mxu1 %v485_v51 }
  0xc8   : > { %769 = vmatpush.msra.mxu3 %v516_v53  ;;  %v574_v53 = vld [vmem:[%s5986_s1 + $0xe0] sm:$0xff] }
  0xcb   : > { %v391_v54 = vpop.xlane.xlu1 %390  ;;  %v298_v55 = vpop.xlane.xlu0 %297 }
  0xcc   : > { %v515_v56 = vmul.f32 0.03125, %v391_v54  ;;  %v484_v57 = vmul.f32 0.03125, %v298_v55  ;;  %v295_v58 = vpop.xlane.xlu2 %294  ;;  %v576_v54 = vld [vmem:[%s5986_s1 + $0xf0] sm:$0xff] }
  0xcd   : > { %v483_v59 = vmul.f32 0.03125, %v295_v58 }
  0xce   : > { %639 = vmatpush.msra.mxu1 %v484_v57  ;;  %770 = vmatpush.msra.mxu3 %v515_v56 }
  0xd0   : > { %640 = vmatpush.msra.mxu1 %v483_v59 }
  0xd3   : > { %v388_v60 = vpop.xlane.xlu0 %387  ;;  %v292_v61 = vpop.xlane.xlu1 %291 }
  0xd4   : > { %v514_v62 = vmul.f32 0.03125, %v388_v60  ;;  %v482_v63 = vmul.f32 0.03125, %v292_v61  ;;  %v481_v2 = vpop.xlane.xlu2 %480  ;;  %v578_v61 = vld [vmem:[%s5986_s1 + $0x100] sm:$0xff] }
  0xd5   : > { %v545_v3 = vmul.f32 0.03125, %v481_v2 }
  0xd6   : > { %641 = vmatpush.msra.mxu1 %v482_v63  ;;  %771 = vmatpush.msra.mxu3 %v514_v62  ;;  %v580_v62 = vld [vmem:[%s5986_s1 + $0x110] sm:$0xff] }
  0xd7   : > { %642 = vmatmul.f32.vlgmr.msra.gmra.mxu1 %v546_v0  ;;  %772 = vmatmul.f32.vlgmr.msra.gmra.mxu3 %v548_v1 }
  0xd8   : > { %821 = vmatpush.msrb.mxu3 %v545_v3  ;;  %v582_v3 = vld [vmem:[%s5986_s1 + $0x120] sm:$0xff] }
  0xdb   : > { %v385_v4 = vpop.xlane.xlu0 %384  ;;  %v478_v5 = vpop.xlane.xlu1 %477 }
  0xdc   : > { %v513_v6 = vmul.f32 0.03125, %v385_v4  ;;  %v544_v9 = vmul.f32 0.03125, %v478_v5  ;;  %v382_v10 = vpop.xlane.xlu2 %381  ;;  %v584_v4 = vld [vmem:[%s5986_s1 + $0x130] sm:$0xff] }
  0xdd   : > { %v512_v11 = vmul.f32 0.03125, %v382_v10  ;;  %v588_v10 = vld [vmem:[%s5986_s1 + $0x150] sm:$0xff] }
  0xde   : > { %691 = vmatpush.msrb.mxu1 %v513_v6  ;;  %822 = vmatpush.msrb.mxu3 %v544_v9  ;;  %v586_v9 = vld [vmem:[%s5986_s1 + $0x140] sm:$0xff] }
  0xdf   : > { %645 = vmatmul.f32.gmra.mxu1 %v550_v7  ;;  %775 = vmatmul.f32.gmra.mxu3 %v552_v8 }
  0xe0   : > { %692 = vmatpush.msrb.mxu1 %v512_v11 }
  0xe3   : > { %v475_v12 = vpop.xlane.xlu0 %474  ;;  %v379_v13 = vpop.xlane.xlu1 %378 }
  0xe4   : > { %v543_v16 = vmul.f32 0.03125, %v475_v12  ;;  %v511_v17 = vmul.f32 0.03125, %v379_v13  ;;  %v472_v18 = vpop.xlane.xlu2 %471 }
  0xe5   : > { %v542_v19 = vmul.f32 0.03125, %v472_v18 }
  0xe6   : > { %823 = vmatpush.msrb.mxu3 %v543_v16  ;;  %693 = vmatpush.msrb.mxu1 %v511_v17  ;;  %v590_v16 = vld [vmem:[%s5986_s1 + $0x160] sm:$0xff]  ;;  %v592_v17 = vld [vmem:[%s5986_s1 + $0x170] sm:$0xff] }
  0xe7   : > { %648 = vmatmul.f32.gmra.mxu1 %v554_v14  ;;  %778 = vmatmul.f32.gmra.mxu3 %v556_v15 }
  0xe8   : > { %824 = vmatpush.msrb.mxu3 %v542_v19 }
  0xeb   : > { %v376_v20 = vpop.xlane.xlu0 %375  ;;  %v469_v21 = vpop.xlane.xlu1 %468 }
  0xec   : > { %v510_v24 = vmul.f32 0.03125, %v376_v20  ;;  %v541_v25 = vmul.f32 0.03125, %v469_v21  ;;  %v373_v26 = vpop.xlane.xlu2 %372 }
  0xed   : > { %v509_v27 = vmul.f32 0.03125, %v373_v26  ;;  %v598_v26 = vld [vmem:[%s5986_s1 + $0x1a0] sm:$0xff] }
  0xee   : > { %694 = vmatpush.msrb.mxu1 %v510_v24  ;;  %825 = vmatpush.msrb.mxu3 %v541_v25  ;;  %v596_v24 = vld [vmem:[%s5986_s1 + $0x190] sm:$0xff] }
  0xef   : > { %651 = vmatmul.f32.gmra.mxu1 %v558_v22  ;;  %781 = vmatmul.f32.gmra.mxu3 %v560_v23  ;;  %v594_v23 = vld [vmem:[%s5986_s1 + $0x180] sm:$0xff] }
  0xf0   : > { %695 = vmatpush.msrb.mxu1 %v509_v27  ;;  %v600_v27 = vld [vmem:[%s5986_s1 + $0x1b0] sm:$0xff] }
  0xf3   : > { %v466_v28 = vpop.xlane.xlu0 %465  ;;  %v370_v29 = vpop.xlane.xlu1 %369 }
  0xf4   : > { %v540_v32 = vmul.f32 0.03125, %v466_v28  ;;  %v508_v33 = vmul.f32 0.03125, %v370_v29  ;;  %v463_v34 = vpop.xlane.xlu2 %462  ;;  %v602_v28 = vld [vmem:[%s5986_s1 + $0x1c0] sm:$0xff]  ;;  %v604_v29 = vld [vmem:[%s5986_s1 + $0x1d0] sm:$0xff] }
  0xf5   : > { %v539_v35 = vmul.f32 0.03125, %v463_v34  ;;  %v549_v34 = vld [vmem:[%s5986_s1 + $0x18] sm:$0xff] }
  0xf6   : > { %826 = vmatpush.msrb.mxu3 %v540_v32  ;;  %696 = vmatpush.msrb.mxu1 %v508_v33  ;;  %v547_v33 = vld [vmem:[%s5986_s1 + $0x8] sm:$0xff] }
  0xf7   : > { %654 = vmatmul.f32.gmra.mxu1 %v562_v30  ;;  %784 = vmatmul.f32.gmra.mxu3 %v564_v31  ;;  %v606_v30 = vld [vmem:[%s5986_s1 + $0x1e0] sm:$0xff]  ;;  %v608_v31 = vld [vmem:[%s5986_s1 + $0x1f0] sm:$0xff] }
  0xf8   : > { %827 = vmatpush.msrb.mxu3 %v539_v35 }
  0xfb   : > { %v367_v36 = vpop.xlane.xlu0 %366 }
  0xfc   : > { %v507_v39 = vmul.f32 0.03125, %v367_v36  ;;  %v460_v40 = vpop.xlane.xlu1 %459  ;;  %v364_v41 = vpop.xlane.xlu2 %363 }
  0xfd   : > { %v538_v42 = vmul.f32 0.03125, %v460_v40  ;;  %v506_v43 = vmul.f32 0.03125, %v364_v41  ;;  %v555_v41 = vld [vmem:[%s5986_s1 + $0x48] sm:$0xff] }
  0xfe   : > { %697 = vmatpush.msrb.mxu1 %v507_v39 }
  0xff   : > { %657 = vmatmul.f32.gmra.mxu1 %v566_v37  ;;  %787 = vmatmul.f32.gmra.mxu3 %v568_v38  ;;  %v551_v37 = vld [vmem:[%s5986_s1 + $0x28] sm:$0xff]  ;;  %v553_v38 = vld [vmem:[%s5986_s1 + $0x38] sm:$0xff] }
 0x100   : > { %828 = vmatpush.msrb.mxu3 %v538_v42  ;;  %698 = vmatpush.msrb.mxu1 %v506_v43  ;;  %v557_v42 = vld [vmem:[%s5986_s1 + $0x58] sm:$0xff] }
 0x103   : > { %v457_v44 = vpop.xlane.xlu0 %456 }
 0x104   : > { %v537_v47 = vmul.f32 0.03125, %v457_v44  ;;  %v361_v48 = vpop.xlane.xlu1 %360  ;;  %v454_v49 = vpop.xlane.xlu2 %453 }
 0x105   : > { %v505_v50 = vmul.f32 0.03125, %v361_v48  ;;  %v536_v51 = vmul.f32 0.03125, %v454_v49  ;;  %v563_v49 = vld [vmem:[%s5986_s1 + $0x88] sm:$0xff] }
 0x106   : > { %829 = vmatpush.msrb.mxu3 %v537_v47 }
 0x107   : > { %660 = vmatmul.f32.gmra.mxu1 %v570_v45  ;;  %790 = vmatmul.f32.gmra.mxu3 %v572_v46  ;;  %v559_v45 = vld [vmem:[%s5986_s1 + $0x68] sm:$0xff]  ;;  %v561_v46 = vld [vmem:[%s5986_s1 + $0x78] sm:$0xff] }
 0x108   : > { %699 = vmatpush.msrb.mxu1 %v505_v50  ;;  %830 = vmatpush.msrb.mxu3 %v536_v51  ;;  %v565_v50 = vld [vmem:[%s5986_s1 + $0x98] sm:$0xff] }
 0x10b   : > { %v358_v52 = vpop.xlane.xlu0 %357 }
 0x10c   : > { %v504_v55 = vmul.f32 0.03125, %v358_v52  ;;  %v451_v56 = vpop.xlane.xlu1 %450  ;;  %v355_v57 = vpop.xlane.xlu2 %354 }
 0x10d   : > { %v535_v58 = vmul.f32 0.03125, %v451_v56  ;;  %v503_v59 = vmul.f32 0.03125, %v355_v57  ;;  %v571_v57 = vld [vmem:[%s5986_s1 + $0xc8] sm:$0xff] }
 0x10e   : > { %700 = vmatpush.msrb.mxu1 %v504_v55 }
 0x10f   : > { %663 = vmatmul.f32.gmra.mxu1 %v574_v53  ;;  %793 = vmatmul.f32.gmra.mxu3 %v576_v54  ;;  %v567_v53 = vld [vmem:[%s5986_s1 + $0xa8] sm:$0xff]  ;;  %v569_v54 = vld [vmem:[%s5986_s1 + $0xb8] sm:$0xff] }
 0x110   : > { %831 = vmatpush.msrb.mxu3 %v535_v58  ;;  %701 = vmatpush.msrb.mxu1 %v503_v59  ;;  %v573_v58 = vld [vmem:[%s5986_s1 + $0xd8] sm:$0xff] }
 0x113   : > { %v448_v60 = vpop.xlane.xlu0 %447 }
 0x114   : > { %v534_v63 = vmul.f32 0.03125, %v448_v60  ;;  %v352_v0 = vpop.xlane.xlu1 %351  ;;  %v445_v2 = vpop.xlane.xlu2 %444 }
 0x115   : > { %v502_v1 = vmul.f32 0.03125, %v352_v0  ;;  %v533_v5 = vmul.f32 0.03125, %v445_v2  ;;  %v581_v2 = vld [vmem:[%s5986_s1 + $0x118] sm:$0xff] }
 0x116   : > { %832 = vmatpush.msrb.mxu3 %v534_v63 }
 0x117   : > { %666 = vmatmul.f32.gmra.mxu1 %v578_v61  ;;  %796 = vmatmul.f32.gmra.mxu3 %v580_v62  ;;  %v575_v61 = vld [vmem:[%s5986_s1 + $0xe8] sm:$0xff]  ;;  %v577_v62 = vld [vmem:[%s5986_s1 + $0xf8] sm:$0xff] }
 0x118   : > { %702 = vmatpush.msrb.mxu1 %v502_v1  ;;  %833 = vmatpush.msrb.mxu3 %v533_v5  ;;  %v579_v1 = vld [vmem:[%s5986_s1 + $0x108] sm:$0xff] }
 0x119   : > { %v583_v5 = vld [vmem:[%s5986_s1 + $0x128] sm:$0xff] }
 0x11b   : > { %v349_v6 = vpop.xlane.xlu0 %348 }
 0x11c   : > { %v501_v7 = vmul.f32 0.03125, %v349_v6  ;;  %v442_v8 = vpop.xlane.xlu1 %441  ;;  %v346_v12 = vpop.xlane.xlu2 %345  ;;  %v585_v6 = vld [vmem:[%s5986_s1 + $0x138] sm:$0xff] }
 0x11d   : > { %v532_v11 = vmul.f32 0.03125, %v442_v8  ;;  %v500_v13 = vmul.f32 0.03125, %v346_v12 }
 0x11e   : > { %703 = vmatpush.msrb.mxu1 %v501_v7 }
 0x11f   : > { %669 = vmatmul.f32.gmra.mxu1 %v582_v3  ;;  %799 = vmatmul.f32.gmra.mxu3 %v584_v4 }
 0x120   : > { %834 = vmatpush.msrb.mxu3 %v532_v11  ;;  %704 = vmatpush.msrb.mxu1 %v500_v13  ;;  %v591_v13 = vld [vmem:[%s5986_s1 + $0x168] sm:$0xff] }
 0x123   : > { %v439_v14 = vpop.xlane.xlu0 %438 }
 0x124   : > { %v531_v15 = vmul.f32 0.03125, %v439_v14  ;;  %v343_v18 = vpop.xlane.xlu1 %342  ;;  %v436_v20 = vpop.xlane.xlu2 %435  ;;  %v593_v14 = vld [vmem:[%s5986_s1 + $0x178] sm:$0xff] }
 0x125   : > { %v499_v19 = vmul.f32 0.03125, %v343_v18  ;;  %v530_v21 = vmul.f32 0.03125, %v436_v20  ;;  %v597_v18 = vld [vmem:[%s5986_s1 + $0x198] sm:$0xff] }
 0x126   : > { %835 = vmatpush.msrb.mxu3 %v531_v15 }
 0x127   : > { %672 = vmatmul.f32.gmra.mxu1 %v586_v9  ;;  %802 = vmatmul.f32.gmra.mxu3 %v588_v10  ;;  %v587_v9 = vld [vmem:[%s5986_s1 + $0x148] sm:$0xff]  ;;  %v589_v10 = vld [vmem:[%s5986_s1 + $0x158] sm:$0xff] }
 0x128   : > { %705 = vmatpush.msrb.mxu1 %v499_v19  ;;  %836 = vmatpush.msrb.mxu3 %v530_v21  ;;  %v599_v21 = vld [vmem:[%s5986_s1 + $0x1a8] sm:$0xff] }
 0x12b   : > { %v340_v22 = vpop.xlane.xlu0 %339 }
 0x12c   : > { %v498_v25 = vmul.f32 0.03125, %v340_v22  ;;  %v601_v22 = vld [vmem:[%s5986_s1 + $0x1b8] sm:$0xff] }
 0x12e   : > { %706 = vmatpush.msrb.mxu1 %v498_v25  ;;  %v603_v25 = vld [vmem:[%s5986_s1 + $0x1c8] sm:$0xff] }
 0x12f   : > { %675 = vmatmul.f32.gmra.mxu1 %v590_v16  ;;  %805 = vmatmul.f32.gmra.mxu3 %v592_v17  ;;  %v595_v17 = vld [vmem:[%s5986_s1 + $0x188] sm:$0xff] }
 0x137   : > { %678 = vmatmul.f32.gmra.mxu1 %v594_v23  ;;  %808 = vmatmul.f32.gmra.mxu3 %v596_v24 }
 0x13f   : > { %681 = vmatmul.f32.gmra.mxu1 %v598_v26  ;;  %811 = vmatmul.f32.gmra.mxu3 %v600_v27  ;;  %v605_v26 = vld [vmem:[%s5986_s1 + $0x1d8] sm:$0xff] }
 0x147   : > { %684 = vmatmul.f32.gmra.mxu1 %v602_v28  ;;  %814 = vmatmul.f32.gmra.mxu3 %v604_v29  ;;  %v607_v29 = vld [vmem:[%s5986_s1 + $0x1e8] sm:$0xff] }
 0x14f   : > { %687 = vmatmul.f32.gmra.mxu1 %v606_v30  ;;  %817 = vmatmul.f32.gmra.mxu3 %v608_v31  ;;  %v609_v30 = vld [vmem:[%s5986_s1 + $0x1f8] sm:$0xff]  ;;  %v610_v31 = vld [vmem:[%s5987_s2] sm:$0xff] }
 0x154   : > { %v3664_v32 = vpop.f32.mrf.mxu1 }
 0x157   : > { %707 = vmatmul.f32.vlgmr.msrb.gmra.mxu1 %v547_v33  ;;  %837 = vmatmul.f32.vlgmr.msrb.gmra.mxu3 %v549_v34  ;;  %v644_v34 = vadd.f32 %v3664_v32, %v610_v31 }
 0x15a   : > { %v3672_v35 = vpop.f32.mrf.mxu3 }
 0x15c   : > { %v3674_v36 = vpop.f32.mrf.mxu1 }
 0x15f   : > { %710 = vmatmul.f32.gmra.mxu1 %v551_v37  ;;  %840 = vmatmul.f32.gmra.mxu3 %v553_v38 }
 0x162   : > { %v3682_v39 = vpop.f32.mrf.mxu3 }
 0x164   : > { %v3684_v40 = vpop.f32.mrf.mxu1 }
 0x167   : > { %713 = vmatmul.f32.gmra.mxu1 %v555_v41  ;;  %843 = vmatmul.f32.gmra.mxu3 %v557_v42  ;;  %v611_v41 = vld [vmem:[%s5987_s2 + $0x8] sm:$0xff] }
 0x16a   : > { %v3692_v43 = vpop.f32.mrf.mxu3 }
 0x16c   : > { %v3694_v44 = vpop.f32.mrf.mxu1 }
 0x16f   : > { %716 = vmatmul.f32.gmra.mxu1 %v559_v45  ;;  %846 = vmatmul.f32.gmra.mxu3 %v561_v46  ;;  %v647_v46 = vadd.f32 %v3674_v36, %v611_v41  ;;  %v613_v36 = vld [vmem:[%s5987_s2 + $0x18] sm:$0xff] }
 0x172   : > { %v3702_v47 = vpop.f32.mrf.mxu3 }
 0x174   : > { %v3704_v48 = vpop.f32.mrf.mxu1 }
 0x177   : > { %719 = vmatmul.f32.gmra.mxu1 %v563_v49  ;;  %849 = vmatmul.f32.gmra.mxu3 %v565_v50 }
 0x17a   : > { %v3712_v51 = vpop.f32.mrf.mxu3 }
 0x17c   : > { %v3714_v52 = vpop.f32.mrf.mxu1 }
 0x17f   : > { %722 = vmatmul.f32.gmra.mxu1 %v567_v53  ;;  %852 = vmatmul.f32.gmra.mxu3 %v569_v54  ;;  %v612_v54 = vld [vmem:[%s5987_s2 + $0x10] sm:$0xff] }
 0x182   : > { %v3722_v55 = vpop.f32.mrf.mxu3 }
 0x184   : > { %v3724_v56 = vpop.f32.mrf.mxu1 }
 0x187   : > { %725 = vmatmul.f32.gmra.mxu1 %v571_v57  ;;  %855 = vmatmul.f32.gmra.mxu3 %v573_v58  ;;  %v650_v58 = vadd.f32 %v3684_v40, %v612_v54  ;;  %v614_v40 = vld [vmem:[%s5987_s2 + $0x20] sm:$0xff] }
 0x18a   : > { %v3732_v59 = vpop.f32.mrf.mxu3 }
 0x18c   : > { %v3734_v60 = vpop.f32.mrf.mxu1 }
 0x18f   : > { %728 = vmatmul.f32.gmra.mxu1 %v575_v61  ;;  %858 = vmatmul.f32.gmra.mxu3 %v577_v62 }
 0x192   : > { %v3742_v63 = vpop.f32.mrf.mxu3 }
 0x194   : > { %v3744_v0 = vpop.f32.mrf.mxu1 }
 0x197   : > { %731 = vmatmul.f32.gmra.mxu1 %v579_v1  ;;  %861 = vmatmul.f32.gmra.mxu3 %v581_v2 }
 0x19a   : > { %v3752_v3 = vpop.f32.mrf.mxu3 }
 0x19c   : > { %v3754_v4 = vpop.f32.mrf.mxu1 }
 0x19f   : > { %734 = vmatmul.f32.gmra.mxu1 %v583_v5  ;;  %864 = vmatmul.f32.gmra.mxu3 %v585_v6  ;;  %v653_v5 = vadd.f32 %v3694_v44, %v613_v36  ;;  %v615_v44 = vld [vmem:[%s5987_s2 + $0x28] sm:$0xff] }
 0x1a2   : > { %v3762_v7 = vpop.f32.mrf.mxu3 }
 0x1a4   : > { %v3764_v8 = vpop.f32.mrf.mxu1 }
 0x1a7   : > { %737 = vmatmul.f32.gmra.mxu1 %v587_v9  ;;  %867 = vmatmul.f32.gmra.mxu3 %v589_v10 }
 0x1aa   : > { %v3772_v11 = vpop.f32.mrf.mxu3 }
 0x1ac   : > { %v3774_v12 = vpop.f32.mrf.mxu1 }
 0x1af   : > { %740 = vmatmul.f32.gmra.mxu1 %v591_v13  ;;  %870 = vmatmul.f32.gmra.mxu3 %v593_v14  ;;  %v656_v14 = vadd.f32 %v3704_v48, %v614_v40  ;;  %v616_v48 = vld [vmem:[%s5987_s2 + $0x30] sm:$0xff] }
 0x1b2   : > { %v3782_v15 = vpop.f32.mrf.mxu3 }
 0x1b4   : > { %v3784_v16 = vpop.f32.mrf.mxu1 }
 0x1b7   : > { %743 = vmatmul.f32.gmra.mxu1 %v595_v17  ;;  %873 = vmatmul.f32.gmra.mxu3 %v597_v18 }
 0x1ba   : > { %v3792_v19 = vpop.f32.mrf.mxu3 }
 0x1bc   : > { %v3794_v20 = vpop.f32.mrf.mxu1 }
 0x1bf   : > { %746 = vmatmul.f32.gmra.mxu1 %v599_v21  ;;  %876 = vmatmul.f32.gmra.mxu3 %v601_v22 }
 0x1c2   : > { %v3802_v23 = vpop.f32.mrf.mxu3 }
 0x1c4   : > { %v3804_v24 = vpop.f32.mrf.mxu1 }
 0x1c7   : > { %749 = vmatmul.f32.gmra.mxu1 %v603_v25  ;;  %879 = vmatmul.f32.gmra.mxu3 %v605_v26  ;;  %v659_v25 = vadd.f32 %v3714_v52, %v615_v44  ;;  %v617_v52 = vld [vmem:[%s5987_s2 + $0x38] sm:$0xff] }
 0x1ca   : > { %v3812_v27 = vpop.f32.mrf.mxu3 }
 0x1cc   : > { %v3814_v28 = vpop.f32.mrf.mxu1 }
 0x1cf   : > { %752 = vmatmul.f32.gmra.mxu1 %v607_v29  ;;  %882 = vmatmul.f32.gmra.mxu3 %v609_v30 }
 0x1d2   : > { %v3825_v33 = vpop.f32.mrf.mxu3 }
 0x1d4   : > { %v708_v37 = vpop.f32.mrf.mxu1 }
 0x1d5   : > { %v709_v38 = vadd.f32 %v708_v37, %v644_v34  ;;  %v662_v34 = vadd.f32 %v3724_v56, %v616_v48  ;;  %v618_v56 = vld [vmem:[%s5987_s2 + $0x40] sm:$0xff] }
 0x1d7   : > { %v774_v42 = vadd.f32 %v3672_v35, %v709_v38 }
 0x1da   : > { %v838_v45 = vpop.f32.mrf.mxu3 }
 0x1db   : > { %v3833_v49 = vadd.f32 %v838_v45, %v774_v42  ;;  %v665_v45 = vadd.f32 %v3734_v60, %v617_v52 }
 0x1dc   : > { %v711_v50 = vpop.f32.mrf.mxu1 }
 0x1dd   : > { %v712_v53 = vadd.f32 %v711_v50, %v647_v46 }
 0x1df   : > { %v777_v32 = vadd.f32 %v3682_v39, %v712_v53 }
 0x1e2   : > { %v841_v57 = vpop.f32.mrf.mxu3 }
 0x1e3   : > { %v3840_v61 = vadd.f32 %v841_v57, %v777_v32  ;;  %v668_v32 = vadd.f32 %v3744_v0, %v618_v56 }
 0x1e4   : > { %v714_v62 = vpop.f32.mrf.mxu1 }
 0x1e5   : > { %v715_v35 = vadd.f32 %v714_v62, %v650_v58 }
 0x1e7   : > { %v780_v1 = vadd.f32 %v3692_v43, %v715_v35 }
 0x1ea   : > { %v844_v2 = vpop.f32.mrf.mxu3 }
 0x1eb   : > { %v3847_v6 = vadd.f32 %v844_v2, %v780_v1 }
 0x1ec   : > { %v717_v9 = vpop.f32.mrf.mxu1 }
 0x1ed   : > { %v718_v39 = vadd.f32 %v717_v9, %v653_v5 }
 0x1ef   : > { %v783_v10 = vadd.f32 %v3702_v47, %v718_v39 }
 0x1f2   : > { %v847_v13 = vpop.f32.mrf.mxu3 }
 0x1f3   : > { %v3854_v17 = vadd.f32 %v847_v13, %v783_v10 }
 0x1f4   : > { %v720_v18 = vpop.f32.mrf.mxu1 }
 0x1f5   : > { %v721_v43 = vadd.f32 %v720_v18, %v656_v14  ;;  %v624_v14 = vld [vmem:[%s5987_s2 + $0x70] sm:$0xff]  ;;  %v623_v18 = vld [vmem:[%s5987_s2 + $0x68] sm:$0xff] }
 0x1f6   : > { %v686_v44 = vadd.f32 %v3804_v24, %v624_v14  ;;  %v907_v14 = vld [vmem:[%s5988_s3 + $0x28] sm:$0xff] }
 0x1f7   : > { %v786_v21 = vadd.f32 %v3712_v51, %v721_v43 }
 0x1fa   : > { %v850_v22 = vpop.f32.mrf.mxu3 }
 0x1fb   : > { %v3861_v26 = vadd.f32 %v850_v22, %v786_v21  ;;  %v622_v22 = vld [vmem:[%s5987_s2 + $0x60] sm:$0xff] }
 0x1fc   : > { %v723_v29 = vpop.f32.mrf.mxu1  ;;  %v680_v24 = vadd.f32 %v3784_v16, %v622_v22  ;;  %v910_v22 = vld [vmem:[%s5988_s3 + $0x40] sm:$0xff] }
 0x1fd   : > { %v724_v47 = vadd.f32 %v723_v29, %v659_v25  ;;  %v683_v29 = vadd.f32 %v3794_v20, %v623_v18  ;;  %v908_v18 = vld [vmem:[%s5988_s3 + $0x30] sm:$0xff] }
 0x1ff   : > { %v789_v30 = vadd.f32 %v3722_v55, %v724_v47 }
 0x202   : > { %v853_v31 = vpop.f32.mrf.mxu3 }
 0x203   : > { %v3868_v37 = vadd.f32 %v853_v31, %v789_v30  ;;  %v621_v30 = vld [vmem:[%s5987_s2 + $0x58] sm:$0xff]  ;;  %v620_v31 = vld [vmem:[%s5987_s2 + $0x50] sm:$0xff] }
 0x204   : > { %v726_v38 = vpop.f32.mrf.mxu1 }
 0x205   : > { %v727_v51 = vadd.f32 %v726_v38, %v662_v34  ;;  %v619_v34 = vld [vmem:[%s5987_s2 + $0x48] sm:$0xff]  ;;  %v677_v38 = vadd.f32 %v3774_v12, %v621_v30  ;;  %v944_v30 = vld [vmem:[%s5988_s3 + $0x150] sm:$0xff] }
 0x206   : > { %v671_v56 = vadd.f32 %v3754_v4, %v619_v34  ;;  %v946_v34 = vld [vmem:[%s5988_s3 + $0x160] sm:$0xff] }
 0x207   : > { %v792_v41 = vadd.f32 %v3732_v59, %v727_v51 }
 0x20a   : > { %v856_v42 = vpop.f32.mrf.mxu3 }
 0x20b   : > { %v3875_v46 = vadd.f32 %v856_v42, %v792_v41  ;;  %v674_v41 = vadd.f32 %v3764_v8, %v620_v31  ;;  %v913_v31 = vld [vmem:[%s5988_s3 + $0x58] sm:$0xff] }
 0x20c   : > { %v729_v50 = vpop.f32.mrf.mxu1 }
 0x20d   : > { %v730_v55 = vadd.f32 %v729_v50, %v665_v45 }
 0x20f   : > { %v795_v53 = vadd.f32 %v3742_v63, %v730_v55 }
 0x212   : > { %v859_v54 = vpop.f32.mrf.mxu3 }
 0x213   : > { %v3882_v57 = vadd.f32 %v859_v54, %v795_v53 }
 0x214   : > { %v732_v58 = vpop.f32.mrf.mxu1 }
 0x215   : > { %v733_v59 = vadd.f32 %v732_v58, %v668_v32 }
 0x217   : > { %v798_v62 = vadd.f32 %v3752_v3, %v733_v59  ;;  %v625_v3 = vld [vmem:[%s5987_s2 + $0x78] sm:$0xff] }
 0x218   : > { %v689_v21 = vadd.f32 %v3814_v28, %v625_v3  ;;  %v939_v3 = vld [vmem:[%s5988_s3 + $0x128] sm:$0xff] }
 0x21a   : > { %v862_v60 = vpop.f32.mrf.mxu3 }
 0x21b   : > { %v3885_v35 = vadd.f32 %v862_v60, %v798_v62 }
 0x21c   : > { %v735_v36 = vpop.f32.mrf.mxu1 }
 0x21d   : > { %v736_v58 = vadd.f32 %v735_v36, %v671_v56  ;;  %v950_v56 = vld [vmem:[%s5988_s3 + $0x180] sm:$0xff] }
 0x21f   : > { %v801_v4 = vadd.f32 %v3762_v7, %v736_v58  ;;  %v893_v7 = vmax.f32 %v3882_v57, 0.0  ;;  %v888_v57 = vmax.f32 %v3847_v6, 0.0  ;;  %v904_v6 = vld [vmem:[%s5988_s3 + $0x10] sm:$0xff]  ;;  %v967_v58 = vld [vmem:[%s5989_s4 + $0x8] sm:$0xff] }
 0x222   : > { %v865_v1 = vpop.f32.mrf.mxu3 }
 0x224   : > { %v738_v2 = vpop.f32.mrf.mxu1 }
 0x225   : > { %v739_v53 = vadd.f32 %v738_v2, %v674_v41  ;;  %v917_v41 = vld [vmem:[%s5988_s3 + $0x78] sm:$0xff] }
 0x227   : > { %v804_v8 = vadd.f32 %v3772_v11, %v739_v53  ;;  %v894_v11 = vmax.f32 %v3885_v35, 0.0  ;;  %v889_v35 = vmax.f32 %v3854_v17, 0.0  ;;  %v934_v17 = vld [vmem:[%s5988_s3 + $0x100] sm:$0xff] }
 0x22a   : > { %v868_v5 = vpop.f32.mrf.mxu3 }
 0x22b   : > { %v869_v60 = vadd.f32 %v868_v5, %v804_v8  ;;  %v892_v5 = vmax.f32 %v3875_v46, 0.0  ;;  %v887_v46 = vmax.f32 %v3840_v61, 0.0  ;;  %v903_v61 = vld [vmem:[%s5988_s3 + $0x8] sm:$0xff] }
 0x22c   : > { %v741_v9 = vpop.f32.mrf.mxu1  ;;  %v951_v8 = vld [vmem:[%s5988_s3 + $0x188] sm:$0xff] }
 0x22d   : > { %v742_v45 = vadd.f32 %v741_v9, %v677_v38  ;;  %v915_v38 = vld [vmem:[%s5988_s3 + $0x68] sm:$0xff] }
 0x232   : > { %v871_v39 = vpop.f32.mrf.mxu3 }
 0x234   : > { %v744_v40 = vpop.f32.mrf.mxu1 }
 0x235   : > { %v745_v20 = vadd.f32 %v744_v40, %v680_v24  ;;  %v936_v40 = vld [vmem:[%s5988_s3 + $0x110] sm:$0xff]  ;;  %v945_v24 = vld [vmem:[%s5988_s3 + $0x158] sm:$0xff] }
 0x237   : > { %v810_v54 = vadd.f32 %v3792_v19, %v745_v20  ;;  %v866_v19 = vadd.f32 %v865_v1, %v801_v4  ;;  %v891_v1 = vmax.f32 %v3868_v37, 0.0  ;;  %v886_v37 = vmax.f32 %v3833_v49, 0.0  ;;  %v935_v49 = vld [vmem:[%s5988_s3 + $0x108] sm:$0xff] }
 0x238   : > { %v947_v20 = vld [vmem:[%s5988_s3 + $0x168] sm:$0xff] }
 0x239   : > { %v895_v9 = vmax.f32 %v866_v19, 0.0  ;;  %v999_v19 = vld [vmem:[%s5989_s4 + $0x108] sm:$0xff] }
 0x23a   : > { %v874_v63 = vpop.f32.mrf.mxu3 }
 0x23b   : > { %v875_v59 = vadd.f32 %v874_v63, %v810_v54  ;;  %v905_v63 = vld [vmem:[%s5988_s3 + $0x18] sm:$0xff] }
 0x23c   : > { %v747_v10 = vpop.f32.mrf.mxu1 }
 0x23d   : > { %v748_v28 = vadd.f32 %v747_v10, %v683_v29  ;;  %v898_v2 = vmax.f32 %v875_v59, 0.0  ;;  %v937_v10 = vld [vmem:[%s5988_s3 + $0x118] sm:$0xff]  ;;  %v911_v29 = vld [vmem:[%s5988_s3 + $0x48] sm:$0xff] }
 0x23f   : > { %v813_v50 = vadd.f32 %v3802_v23, %v748_v28  ;;  %v914_v28 = vld [vmem:[%s5988_s3 + $0x60] sm:$0xff] }
 0x242   : > { %v877_v13 = vpop.f32.mrf.mxu3 }
 0x243   : > { %v878_v32 = vadd.f32 %v877_v13, %v813_v50  ;;  %v906_v13 = vld [vmem:[%s5988_s3 + $0x20] sm:$0xff]  ;;  %v3391_v50 = vmov 0  }
 0x244   : > { %v750_v0 = vpop.f32.mrf.mxu1  ;;  %3060 = vset.pattern.permute.xlu1 %v3391_v50  ;;  %3061 = vset.pattern.permute.xlu2 %v3391_v50 }
 0x245   : > { %v751_v47 = vadd.f32 %v750_v0, %v686_v44  ;;  %v899_v23 = vmax.f32 %v878_v32, 0.0  ;;  %v938_v0 = vld [vmem:[%s5988_s3 + $0x120] sm:$0xff]  ;;  %v909_v44 = vld [vmem:[%s5988_s3 + $0x38] sm:$0xff]  ;;  %3062 = vset.pattern.permute.xlu0 %v3391_v50 }
 0x246   : > { %v998_v32 = vld [vmem:[%s5989_s4 + $0x100] sm:$0xff] }
 0x247   : > { %v816_v51 = vadd.f32 %v3812_v27, %v751_v47  ;;  %v807_v27 = vadd.f32 %v3782_v15, %v742_v45  ;;  %v896_v15 = vmax.f32 %v869_v60, 0.0  ;;  %v943_v47 = vld [vmem:[%s5988_s3 + $0x148] sm:$0xff]  ;;  %v966_v45 = vld [vmem:[%s5989_s4] sm:$0xff] }
 0x249   : > { %v872_v62 = vadd.f32 %v871_v39, %v807_v27  ;;  %v890_v39 = vmax.f32 %v3861_v26, 0.0  ;;  %v902_v26 = vld [vmem:[%s5988_s3] sm:$0xff] }
 0x24a   : > { %v880_v43 = vpop.f32.mrf.mxu3 }
 0x24b   : > { %v881_v55 = vadd.f32 %v880_v43, %v816_v51  ;;  %v897_v36 = vmax.f32 %v872_v62, 0.0  ;;  %v940_v43 = vld [vmem:[%s5988_s3 + $0x130] sm:$0xff] }
 0x24c   : > { %v753_v25 = vpop.f32.mrf.mxu1  ;;  %v916_v51 = vld [vmem:[%s5988_s3 + $0x70] sm:$0xff] }
 0x24d   : > { %v754_v48 = vadd.f32 %v753_v25, %v689_v21  ;;  %v941_v21 = vld [vmem:[%s5988_s3 + $0x138] sm:$0xff]  ;;  %v942_v25 = vld [vmem:[%s5988_s3 + $0x140] sm:$0xff] }
 0x24f   : > { %v819_v52 = vadd.f32 %v3825_v33, %v754_v48  ;;  %v900_v33 = vmax.f32 %v881_v55, 0.0  ;;  %v912_v48 = vld [vmem:[%s5988_s3 + $0x50] sm:$0xff] }
 0x252   : > { %v883_v42 = vpop.f32.mrf.mxu3 }
 0x253   : > { %v884_v16 = vadd.f32 %v883_v42, %v819_v52  ;;  %v948_v52 = vld [vmem:[%s5988_s3 + $0x170] sm:$0xff]  ;;  %v949_v42 = vld [vmem:[%s5988_s3 + $0x178] sm:$0xff] }
 0x255   : > { %v901_v12 = vmax.f32 %v884_v16, 0.0  ;;  %v918_v16 = vld [vmem:[%s5988_s3 + $0x80] sm:$0xff] }
 0x257   : > { %1030 = vmatpush.msra.mxu0 %v901_v12  ;;  %3035 = vmatpush.msra.mxu2 %v901_v12 }
 0x259   : > { %1031 = vmatpush.msra.mxu0 %v900_v33  ;;  %3036 = vmatpush.msra.mxu2 %v900_v33  ;;  %v919_v33 = vld [vmem:[%s5988_s3 + $0x88] sm:$0xff] }
 0x25b   : > { %1032 = vmatpush.msra.mxu0 %v899_v23  ;;  %3037 = vmatpush.msra.mxu2 %v899_v23 }
 0x25d   : > { %1033 = vmatpush.msra.mxu0 %v898_v2  ;;  %3038 = vmatpush.msra.mxu2 %v898_v2 }
 0x25f   : > { %1034 = vmatpush.msra.mxu0 %v897_v36  ;;  %3039 = vmatpush.msra.mxu2 %v897_v36 }
 0x261   : > { %1035 = vmatpush.msra.mxu0 %v896_v15  ;;  %3040 = vmatpush.msra.mxu2 %v896_v15  ;;  %v968_v15 = vld [vmem:[%s5989_s4 + $0x10] sm:$0xff] }
 0x263   : > { %1036 = vmatpush.msra.mxu0 %v895_v9  ;;  %3041 = vmatpush.msra.mxu2 %v895_v9 }
 0x265   : > { %1037 = vmatpush.msra.mxu0 %v894_v11  ;;  %3042 = vmatpush.msra.mxu2 %v894_v11 }
 0x267   : > { %1038 = vmatpush.msra.mxu0 %v893_v7  ;;  %3043 = vmatpush.msra.mxu2 %v893_v7  ;;  %v920_v7 = vld [vmem:[%s5988_s3 + $0x90] sm:$0xff] }
 0x269   : > { %1039 = vmatpush.msra.mxu0 %v892_v5  ;;  %3044 = vmatpush.msra.mxu2 %v892_v5  ;;  %v952_v5 = vld [vmem:[%s5988_s3 + $0x190] sm:$0xff] }
 0x26b   : > { %1040 = vmatpush.msra.mxu0 %v891_v1  ;;  %3045 = vmatpush.msra.mxu2 %v891_v1 }
 0x26d   : > { %1041 = vmatpush.msra.mxu0 %v890_v39  ;;  %3046 = vmatpush.msra.mxu2 %v890_v39 }
 0x26f   : > { %1042 = vmatpush.msra.mxu0 %v889_v35  ;;  %3047 = vmatpush.msra.mxu2 %v889_v35 }
 0x271   : > { %1043 = vmatpush.msra.mxu0 %v888_v57  ;;  %3048 = vmatpush.msra.mxu2 %v888_v57 }
 0x273   : > { %1044 = vmatpush.msra.mxu0 %v887_v46  ;;  %3049 = vmatpush.msra.mxu2 %v887_v46 }
 0x275   : > { %1045 = vmatpush.msra.mxu0 %v886_v37  ;;  %3050 = vmatpush.msra.mxu2 %v886_v37 }
 0x276   : > { %1046 = vmatmul.f32.vlgmr.msra.gmra.mxu0 %v902_v26  ;;  %1142 = vmatmul.f32.vlgmr.msra.gmra.mxu2 %v934_v17 }
 0x27e   : > { %1049 = vmatmul.f32.gmra.mxu0 %v903_v61  ;;  %1145 = vmatmul.f32.gmra.mxu2 %v935_v49  ;;  %v1000_v61 = vld [vmem:[%s5989_s4 + $0x110] sm:$0xff] }
 0x286   : > { %1052 = vmatmul.f32.gmra.mxu0 %v904_v6  ;;  %1148 = vmatmul.f32.gmra.mxu2 %v936_v40 }
 0x28e   : > { %1055 = vmatmul.f32.gmra.mxu0 %v905_v63  ;;  %1151 = vmatmul.f32.gmra.mxu2 %v937_v10  ;;  %v969_v63 = vld [vmem:[%s5989_s4 + $0x18] sm:$0xff] }
 0x296   : > { %1058 = vmatmul.f32.gmra.mxu0 %v906_v13  ;;  %1154 = vmatmul.f32.gmra.mxu2 %v938_v0 }
 0x29e   : > { %1061 = vmatmul.f32.gmra.mxu0 %v907_v14  ;;  %1157 = vmatmul.f32.gmra.mxu2 %v939_v3  ;;  %v921_v3 = vld [vmem:[%s5988_s3 + $0x98] sm:$0xff] }
 0x2a6   : > { %1064 = vmatmul.f32.gmra.mxu0 %v908_v18  ;;  %1160 = vmatmul.f32.gmra.mxu2 %v940_v43  ;;  %v953_v18 = vld [vmem:[%s5988_s3 + $0x198] sm:$0xff] }
 0x2ae   : > { %1067 = vmatmul.f32.gmra.mxu0 %v909_v44  ;;  %1163 = vmatmul.f32.gmra.mxu2 %v941_v21 }
 0x2b6   : > { %1070 = vmatmul.f32.gmra.mxu0 %v910_v22  ;;  %1166 = vmatmul.f32.gmra.mxu2 %v942_v25 }
 0x2be   : > { %1073 = vmatmul.f32.gmra.mxu0 %v911_v29  ;;  %1169 = vmatmul.f32.gmra.mxu2 %v943_v47 }
 0x2c6   : > { %1076 = vmatmul.f32.gmra.mxu0 %v912_v48  ;;  %1172 = vmatmul.f32.gmra.mxu2 %v944_v30 }
 0x2ce   : > { %1079 = vmatmul.f32.gmra.mxu0 %v913_v31  ;;  %1175 = vmatmul.f32.gmra.mxu2 %v945_v24 }
 0x2d6   : > { %1082 = vmatmul.f32.gmra.mxu0 %v914_v28  ;;  %1178 = vmatmul.f32.gmra.mxu2 %v946_v34 }
 0x2de   : > { %1085 = vmatmul.f32.gmra.mxu0 %v915_v38  ;;  %1181 = vmatmul.f32.gmra.mxu2 %v947_v20 }
 0x2e6   : > { %1088 = vmatmul.f32.gmra.mxu0 %v916_v51  ;;  %1184 = vmatmul.f32.gmra.mxu2 %v948_v52  ;;  %v1001_v52 = vld [vmem:[%s5989_s4 + $0x118] sm:$0xff] }
 0x2ee   : > { %1091 = vmatmul.f32.gmra.mxu0 %v917_v41  ;;  %1187 = vmatmul.f32.gmra.mxu2 %v949_v42 }
 0x2f3   : > { %v1047_v55 = vpop.f32.mrf.mxu0 }
 0x2f4   : > { %v1048_v53 = vadd.f32 %v1047_v55, %v966_v45 }
 0x2f6   : > { %v2967_v54 = vmul.f32 -1.442695, %v1048_v53  ;;  %1094 = vmatmul.f32.gmra.mxu0 %v918_v16  ;;  %1190 = vmatmul.f32.gmra.mxu2 %v950_v56  ;;  %v970_v56 = vld [vmem:[%s5989_s4 + $0x20] sm:$0xff] }
 0x2f8   : > { %3063 = vpow2.f32 %v2967_v54 }
 0x2f9   : > { %v1143_v12 = vpop.f32.mrf.mxu2 }
 0x2fa   : > { %v1144_v27 = vadd.f32 %v1143_v12, %v998_v32 }
 0x2fb   : > { %v1050_v59 = vpop.f32.mrf.mxu0 }
 0x2fc   : > { %v2999_v62 = vmul.f32 -1.442695, %v1144_v27  ;;  %v1051_v23 = vadd.f32 %v1050_v59, %v967_v58  ;;  %v922_v59 = vld [vmem:[%s5988_s3 + $0xa0] sm:$0xff] }
 0x2fe   : > { %v3064_v4 = vpop.eup %3063  ;;  %3065 = vpow2.f32 %v2999_v62  ;;  %v2968_v60 = vmul.f32 -1.442695, %v1051_v23  ;;  %1097 = vmatmul.f32.gmra.mxu0 %v919_v33  ;;  %1193 = vmatmul.f32.gmra.mxu2 %v951_v8  ;;  %v954_v33 = vld [vmem:[%s5988_s3 + $0x1a0] sm:$0xff] }
 0x2ff   : > { %v1431_v2 = vadd.f32 1.0, %v3064_v4 }
 0x300   : > { %3067 = vpow2.f32 %v2968_v60 }
 0x301   : > { %3069 = vrcp.f32 %v1431_v2  ;;  %v1146_v36 = vpop.f32.mrf.mxu2  ;;  %v1504_v49 = vand.u32 2147483647, %v1431_v2  ;;  %v1506_v10 = vand.u32 2147483648, %v1431_v2  ;;  %vm1500_vm1 = vweird.f32 %v1431_v2 }
 0x302   : > { %v1147_v9 = vadd.f32 %v1146_v36, %v999_v19 }
 0x303   : > { %v1053_v11 = vpop.f32.mrf.mxu0  ;;  %vm4078_vm2 = vcmp.eq.f32.partialorder %v1504_v49, 8.507059e+37  ;;  %v1507_v48 = vor.u32 1.1754944e-38, %v1506_v10 }
 0x304   : > { %v3066_v1 = vpop.eup %3065  ;;  %v3000_v39 = vmul.f32 -1.442695, %v1147_v9  ;;  %v1054_v35 = vadd.f32 %v1053_v11, %v968_v15 }
 0x305   : > { %v4060_v57 = vadd.f32 1.0, %v3066_v1 }
 0x306   : > { %v3068_v46 = vpop.eup %3067  ;;  %3071 = vpow2.f32 %v3000_v39  ;;  %v2969_v37 = vmul.f32 -1.442695, %v1054_v35  ;;  %1100 = vmatmul.f32.gmra.mxu0 %v920_v7  ;;  %1196 = vmatmul.f32.gmra.mxu2 %v952_v5 }
 0x307   : > { %v3070_v26 = vpop.eup %3069  ;;  %3073 = vrcp.f32 %v4060_v57  ;;  %v4063_v17 = vadd.f32 1.0, %v3068_v46  ;;  %v1984_v30 = vand.u32 2147483647, %v4060_v57  ;;  %v1986_v31 = vand.u32 2147483648, %v4060_v57 }
 0x308   : > { %3075 = vpow2.f32 %v2969_v37  ;;  %v1496_v6 = vmul.f32 %v3070_v26, %v1431_v2  ;;  %vm1501_vm3 = vweird.f32 %v3070_v26  ;;  %vm1980_vm5 = vweird.f32 %v4060_v57 }
 0x309   : > { %3077 = vrcp.f32 %v4063_v17  ;;  %v1149_v40 = vpop.f32.mrf.mxu2  ;;  %vm1502_vm4 = vmor %vm1500_vm1, %vm1501_vm3  ;;  %v1519_v41 = vand.u32 2147483647, %v4063_v17  ;;  %v1521_v42 = vand.u32 2147483648, %v4063_v17  ;;  %vm1515_vm6 = vweird.f32 %v4063_v17 }
 0x30a   : > { %v1150_v13 = vadd.f32 %v1149_v40, %v1000_v61  ;;  %v1497_v0 = vsub.f32 1.0, %v1496_v6  ;;  %vm4112_vm7 = vcmp.eq.f32.partialorder %v1984_v30, 8.507059e+37  ;;  %v1987_v58 = vor.u32 1.1754944e-38, %v1986_v31  ;;  %v1002_v61 = vld [vmem:[%s5989_s4 + $0x120] sm:$0xff] }
 0x30b   : > { %v1056_v14 = vpop.f32.mrf.mxu0  ;;  %vm4122_vm8 = vcmp.eq.f32.partialorder %v1519_v41, 8.507059e+37  ;;  %v1522_v62 = vor.u32 1.1754944e-38, %v1521_v42 }
 0x30c   : > { %v3072_v44 = vpop.eup %3071  ;;  %v3001_v21 = vmul.f32 -1.442695, %v1150_v13  ;;  %v1057_v22 = vadd.f32 %v1056_v14, %v969_v63  ;;  %v1498_v25 = vmul.f32 %v3070_v26, %v1497_v0  ;;  %v971_v0 = vld [vmem:[%s5989_s4 + $0x28] sm:$0xff] }
 0x30d   : > { %v4082_v29 = vpop.eup %3073  ;;  %v4084_v47 = vadd.f32 1.0, %v3072_v44 }
 0x30e   : > { %v3076_v24 = vpop.eup %3075  ;;  %3079 = vpow2.f32 %v3001_v21  ;;  %v2970_v28 = vmul.f32 -1.442695, %v1057_v22  ;;  %1103 = vmatmul.f32.gmra.mxu0 %v921_v3  ;;  %1199 = vmatmul.f32.gmra.mxu2 %v953_v18  ;;  %v1499_v34 = vadd.f32 %v3070_v26, %v1498_v25  ;;  %v1976_v38 = vmul.f32 %v4082_v29, %v4060_v57  ;;  %v923_v21 = vld [vmem:[%s5988_s3 + $0xa8] sm:$0xff] }
 0x30f   : > { %v4090_v20 = vpop.eup %3077  ;;  %3081 = vrcp.f32 %v4084_v47  ;;  %v4093_v51 = vadd.f32 1.0, %v3076_v24  ;;  %vm1981_vm9 = vweird.f32 %v4082_v29  ;;  %vm1995_vm11 = vweird.f32 %v4084_v47  ;;  %v955_v22 = vld [vmem:[%s5988_s3 + $0x1a8] sm:$0xff] }
 0x310   : > { %3083 = vpow2.f32 %v2970_v28  ;;  %v1503_v45 = vsel %vm1502_vm4, %v3070_v26, %v1499_v34  ;;  %v1511_v50 = vmul.f32 %v4090_v20, %v4063_v17  ;;  %v1977_v53 = vsub.f32 1.0, %v1976_v38  ;;  %vm4143_vm12 = vmor %vm1980_vm5, %vm1981_vm9  ;;  %v925_v34 = vld [vmem:[%s5988_s3 + $0xb8] sm:$0xff] }
 0x311   : > { %3085 = vrcp.f32 %v4093_v51  ;;  %v1152_v55 = vpop.f32.mrf.mxu2  ;;  %v1508_v16 = vsel %vm4078_vm2, %v1507_v48, %v1503_v45  ;;  %vm1516_vm10 = vweird.f32 %v4090_v20  ;;  %v1999_v11 = vand.u32 2147483647, %v4084_v47 }
 0x312   : > { %v1153_v54 = vadd.f32 %v1152_v55, %v1001_v52  ;;  %2457 = vperm.xlu1 %3060, %v1508_v16   ;;  %v1512_v32 = vsub.f32 1.0, %v1511_v50  ;;  %v1978_v23 = vmul.f32 %v4082_v29, %v1977_v53  ;;  %v2001_v7 = vand.u32 2147483648, %v4084_v47  ;;  %vm1517_vm14 = vmor %vm1515_vm6, %vm1516_vm10 }
 0x313   : > { %v1059_v27 = vpop.f32.mrf.mxu0  ;;  %vm1530_vm13 = vweird.f32 %v4093_v51  ;;  %v1536_v49 = vand.u32 2147483648, %v4093_v51  ;;  %v1534_v63 = vand.u32 2147483647, %v4093_v51  ;;  %vm4180_vm1 = vcmp.eq.f32.partialorder %v1999_v11, 8.507059e+37 }
 0x314   : > { %v3080_v4 = vpop.eup %3079  ;;  %v3002_v60 = vmul.f32 -1.442695, %v1153_v54  ;;  %v1060_v2 = vadd.f32 %v1059_v27, %v970_v56  ;;  %v1513_v19 = vmul.f32 %v4090_v20, %v1512_v32  ;;  %v1979_v9 = vadd.f32 %v4082_v29, %v1978_v23  ;;  %v1003_v32 = vld [vmem:[%s5989_s4 + $0x128] sm:$0xff] }
 0x315   : > { %v4131_v36 = vpop.eup %3081  ;;  %v4133_v15 = vadd.f32 1.0, %v3080_v4  ;;  %v2002_v25 = vor.u32 1.1754944e-38, %v2001_v7  ;;  %v1537_v48 = vor.u32 1.1754944e-38, %v1536_v49  ;;  %vm4192_vm3 = vcmp.eq.f32.partialorder %v1534_v63, 8.507059e+37 }
 0x316   : > { %v3084_v5 = vpop.eup %3083  ;;  %3087 = vpow2.f32 %v3002_v60  ;;  %v2971_v1 = vmul.f32 -1.442695, %v1060_v2  ;;  %1106 = vmatmul.f32.gmra.mxu0 %v922_v59  ;;  %1202 = vmatmul.f32.gmra.mxu2 %v954_v33  ;;  %v1514_v39 = vadd.f32 %v4090_v20, %v1513_v19  ;;  %v1991_v46 = vmul.f32 %v4131_v36, %v4084_v47  ;;  %v972_v33 = vld [vmem:[%s5989_s4 + $0x30] sm:$0xff] }
 0x317   : > { %v4150_v37 = vpop.eup %3085  ;;  %3089 = vrcp.f32 %v4133_v15  ;;  %v4153_v26 = vadd.f32 1.0, %v3084_v5  ;;  %v1983_v57 = vsel %vm4143_vm12, %v4082_v29, %v1979_v9  ;;  %vm1996_vm15 = vweird.f32 %v4131_v36  ;;  %v956_v9 = vld [vmem:[%s5988_s3 + $0x1b0] sm:$0xff] }
 0x318   : > { %3091 = vpow2.f32 %v2971_v1  ;;  %v1518_v6 = vsel %vm1517_vm14, %v4090_v20, %v1514_v39  ;;  %v1992_v40 = vsub.f32 1.0, %v1991_v46  ;;  %v1988_v17 = vsel %vm4112_vm7, %v1987_v58, %v1983_v57  ;;  %vm1997_vm5 = vmor %vm1995_vm11, %vm1996_vm15 }
 0x319   : > { %3093 = vrcp.f32 %v4153_v26  ;;  %v1155_v10 = vpop.f32.mrf.mxu2  ;;  %v1523_v13 = vsel %vm4122_vm8, %v1522_v62, %v1518_v6  ;;  %v1526_v14 = vmul.f32 %v4150_v37, %v4093_v51  ;;  %vm1531_vm2 = vweird.f32 %v4150_v37 }
 0x31a   : > { %v1156_v3 = vadd.f32 %v1155_v10, %v1002_v61  ;;  %2462 = vperm.xlu2 %3061, %v1523_v13   ;;  %2617 = vperm.xlu1 %3060, %v1988_v17   ;;  %v1993_v18 = vmul.f32 %v4131_v36, %v1992_v40  ;;  %vm2010_vm4 = vweird.f32 %v4133_v15  ;;  %v2014_v38 = vand.u32 2147483647, %v4133_v15  ;;  %vm4234_vm7 = vmor %vm1530_vm13, %vm1531_vm2 }
 0x31b   : > { %v1062_v44 = vpop.f32.mrf.mxu0  ;;  %v1527_v29 = vsub.f32 1.0, %v1526_v14  ;;  %v2016_v42 = vand.u32 2147483648, %v4133_v15  ;;  %v1549_v45 = vand.u32 2147483647, %v4153_v26  ;;  %vm1545_vm6 = vweird.f32 %v4153_v26 }
 0x31c   : > { %v3088_v30 = vpop.eup %3087  ;;  %v3003_v31 = vmul.f32 -1.442695, %v1156_v3  ;;  %v1063_v24 = vadd.f32 %v1062_v44, %v971_v0  ;;  %v1994_v28 = vadd.f32 %v4131_v36, %v1993_v18  ;;  %vm4239_vm9 = vcmp.eq.f32.partialorder %v2014_v38, 8.507059e+37  ;;  %v1004_v3 = vld [vmem:[%s5989_s4 + $0x130] sm:$0xff]  ;;  %v957_v38 = vld [vmem:[%s5988_s3 + $0x1b8] sm:$0xff] }
 0x31d   : > { %v4198_v20 = vpop.eup %3089  ;;  %v4200_v52 = vadd.f32 1.0, %v3088_v30  ;;  %v1528_v41 = vmul.f32 %v4150_v37, %v1527_v29  ;;  %v1551_v23 = vand.u32 2147483648, %v4153_v26  ;;  %v2017_v11 = vor.u32 1.1754944e-38, %v2016_v42 }
 0x31e   : > { %v3092_v50 = vpop.eup %3091  ;;  %3095 = vpow2.f32 %v3003_v31  ;;  %v2972_v55 = vmul.f32 -1.442695, %v1063_v24  ;;  %1109 = vmatmul.f32.gmra.mxu0 %v923_v21  ;;  %1205 = vmatmul.f32.gmra.mxu2 %v955_v22  ;;  %v1998_v16 = vsel %vm1997_vm5, %v4131_v36, %v1994_v28  ;;  %v2006_v56 = vmul.f32 %v4198_v20, %v4133_v15  ;;  %v924_v36 = vld [vmem:[%s5988_s3 + $0xb0] sm:$0xff]  ;;  %v973_v22 = vld [vmem:[%s5989_s4 + $0x38] sm:$0xff] }
 0x31f   : > { %v4212_v53 = vpop.eup %3093  ;;  %3097 = vrcp.f32 %v4200_v52  ;;  %v4215_v47 = vadd.f32 1.0, %v3092_v50  ;;  %v2003_v54 = vsel %vm4180_vm1, %v2002_v25, %v1998_v16  ;;  %v1529_v12 = vadd.f32 %v4150_v37, %v1528_v41 }
 0x320   : > { %3099 = vpow2.f32 %v2972_v55  ;;  %2622 = vperm.xlu0 %3062, %v2003_v54   ;;  %v2007_v58 = vsub.f32 1.0, %v2006_v56  ;;  %v1541_v27 = vmul.f32 %v4212_v53, %v4153_v26  ;;  %vm2011_vm8 = vweird.f32 %v4198_v20 }
 0x321   : > { %3101 = vrcp.f32 %v4215_v47  ;;  %v1158_v59 = vpop.f32.mrf.mxu2  ;;  %v1533_v60 = vsel %vm4234_vm7, %v4150_v37, %v1529_v12  ;;  %vm1546_vm10 = vweird.f32 %v4212_v53  ;;  %vm4255_vm11 = vcmp.eq.f32.partialorder %v1549_v45, 8.507059e+37  ;;  %vm2012_vm12 = vmor %vm2010_vm4, %vm2011_vm8 }
 0x322   : > { %v1159_v4 = vadd.f32 %v1158_v59, %v1003_v32  ;;  %v2008_v2 = vmul.f32 %v4198_v20, %v2007_v58  ;;  %v1542_v51 = vsub.f32 1.0, %v1541_v27  ;;  %v2029_v5 = vand.u32 2147483647, %v4200_v52  ;;  %vm4289_vm13 = vmor %vm1545_vm6, %vm1546_vm10 }
 0x323   : > { %v1065_v19 = vpop.f32.mrf.mxu0  ;;  %v1538_v49 = vsel %vm4192_vm3, %v1537_v48, %v1533_v60  ;;  %v1552_v6 = vor.u32 1.1754944e-38, %v1551_v23  ;;  %v2031_v40 = vand.u32 2147483648, %v4200_v52  ;;  %vm2025_vm14 = vweird.f32 %v4200_v52 }
 0x324   : > { %v3096_v1 = vpop.eup %3095  ;;  %v3004_v39 = vmul.f32 -1.442695, %v1159_v4  ;;  %v1066_v35 = vadd.f32 %v1065_v19, %v972_v33  ;;  %v2009_v46 = vadd.f32 %v4198_v20, %v2008_v2  ;;  %v1543_v37 = vmul.f32 %v4212_v53, %v1542_v51  ;;  %v1005_v4 = vld [vmem:[%s5989_s4 + $0x138] sm:$0xff] }
 0x325   : > { %v4262_v61 = vpop.eup %3097  ;;  %v4264_v57 = vadd.f32 1.0, %v3096_v1  ;;  %vm4299_vm15 = vcmp.eq.f32.partialorder %v2029_v5, 8.507059e+37  ;;  %v2032_v29 = vor.u32 1.1754944e-38, %v2031_v40  ;;  %vm1560_vm1 = vweird.f32 %v4215_v47 }
 0x326   : > { %v3100_v63 = vpop.eup %3099  ;;  %3103 = vpow2.f32 %v3004_v39  ;;  %v2973_v10 = vmul.f32 -1.442695, %v1066_v35  ;;  %1112 = vmatmul.f32.gmra.mxu0 %v924_v36  ;;  %1208 = vmatmul.f32.gmra.mxu2 %v956_v9  ;;  %v2013_v13 = vsel %vm2012_vm12, %v4198_v20, %v2009_v46  ;;  %v1544_v17 = vadd.f32 %v4212_v53, %v1543_v37  ;;  %v974_v9 = vld [vmem:[%s5989_s4 + $0x40] sm:$0xff] }
 0x327   : > { %v4275_v0 = vpop.eup %3101  ;;  %3105 = vrcp.f32 %v4264_v57  ;;  %v4278_v14 = vadd.f32 1.0, %v3100_v63  ;;  %v2018_v15 = vsel %vm4239_vm9, %v2017_v11, %v2013_v13  ;;  %v2021_v43 = vmul.f32 %v4262_v61, %v4200_v52 }
 0x328   : > { %3107 = vpow2.f32 %v2973_v10  ;;  %2467 = vperm.xlu0 %3062, %v1538_v49   ;;  %2627 = vperm.xlu2 %3061, %v2018_v15   ;;  %v1548_v44 = vsel %vm4289_vm13, %v4212_v53, %v1544_v17  ;;  %v2044_v30 = vand.u32 2147483647, %v4264_v57  ;;  %v2046_v31 = vand.u32 2147483648, %v4264_v57  ;;  %v958_v49 = vld [vmem:[%s5988_s3 + $0x1c0] sm:$0xff] }
 0x329   : > { %3109 = vrcp.f32 %v4278_v14  ;;  %v1161_v26 = vpop.f32.mrf.mxu2  ;;  %v2022_v25 = vsub.f32 1.0, %v2021_v43  ;;  %v1556_v24 = vmul.f32 %v4275_v0, %v4215_v47  ;;  %v1553_v20 = vsel %vm4255_vm11, %v1552_v6, %v1548_v44 }
 0x32a   : > { %v1162_v48 = vadd.f32 %v1161_v26, %v1004_v3  ;;  %vm2026_vm2 = vweird.f32 %v4262_v61  ;;  %v1564_v42 = vand.u32 2147483647, %v4215_v47  ;;  %vm2040_vm3 = vweird.f32 %v4264_v57 }
 0x32b   : > { %v1068_v28 = vpop.f32.mrf.mxu0  ;;  %v2023_v41 = vmul.f32 %v4262_v61, %v2022_v25  ;;  %v1557_v16 = vsub.f32 1.0, %v1556_v24  ;;  %vm1561_vm4 = vweird.f32 %v4275_v0  ;;  %v4330_v32 = vor.u32 1.1754944e-38, %v2046_v31  ;;  %vm2027_vm5 = vmor %vm2025_vm14, %vm2026_vm2 }
 0x32c   : > { %v3104_v45 = vpop.eup %3103  ;;  %v3005_v50 = vmul.f32 -1.442695, %v1162_v48  ;;  %v1069_v55 = vadd.f32 %v1068_v28, %v973_v22  ;;  %v1566_v12 = vand.u32 2147483648, %v4215_v47  ;;  %vm4339_vm6 = vcmp.eq.f32.partialorder %v2044_v30, 8.507059e+37  ;;  %vm4372_vm9 = vmor %vm1560_vm1, %vm1561_vm4  ;;  %v1006_v48 = vld [vmem:[%s5989_s4 + $0x140] sm:$0xff] }
 0x32d   : > { %v4325_v56 = vpop.eup %3105  ;;  %v4327_v53 = vadd.f32 1.0, %v3104_v45  ;;  %v2024_v54 = vadd.f32 %v4262_v61, %v2023_v41  ;;  %vm4343_vm7 = vcmp.eq.f32.partialorder %v1564_v42, 8.507059e+37  ;;  %v1558_v60 = vmul.f32 %v4275_v0, %v1557_v16  ;;  %v927_v16 = vld [vmem:[%s5988_s3 + $0xc8] sm:$0xff] }
 0x32e   : > { %v3108_v58 = vpop.eup %3107  ;;  %3111 = vpow2.f32 %v3005_v50  ;;  %v2974_v27 = vmul.f32 -1.442695, %v1069_v55  ;;  %1115 = vmatmul.f32.gmra.mxu0 %v925_v34  ;;  %1211 = vmatmul.f32.gmra.mxu2 %v957_v38  ;;  %v2036_v59 = vmul.f32 %v4325_v56, %v4264_v57  ;;  %vm2041_vm8 = vweird.f32 %v4325_v56  ;;  %v975_v38 = vld [vmem:[%s5989_s4 + $0x48] sm:$0xff] }
 0x32f   : > { %v4347_v62 = vpop.eup %3109  ;;  %3113 = vrcp.f32 %v4327_v53  ;;  %v4350_v23 = vadd.f32 1.0, %v3108_v58  ;;  %v2028_v52 = vsel %vm2027_vm5, %v4262_v61, %v2024_v54  ;;  %v1559_v11 = vadd.f32 %v4275_v0, %v1558_v60  ;;  %v926_v61 = vld [vmem:[%s5988_s3 + $0xc0] sm:$0xff]  ;;  %vm2042_vm13 = vmor %vm2040_vm3, %vm2041_vm8 }
 0x330   : > { %3115 = vpow2.f32 %v2974_v27  ;;  %2472 = vperm.xlu2 %3061, %v1553_v20   ;;  %v2033_v2 = vsel %vm4299_vm15, %v2032_v29, %v2028_v52  ;;  %v2037_v51 = vsub.f32 1.0, %v2036_v59  ;;  %v1571_v19 = vmul.f32 %v4347_v62, %v4278_v14 }
 0x331   : > { %3117 = vrcp.f32 %v4350_v23  ;;  %2632 = vperm.xlu1 %3060, %v2033_v2   ;;  %v1164_v36 = vpop.f32.mrf.mxu2  ;;  %v1567_v7 = vor.u32 1.1754944e-38, %v1566_v12  ;;  %v1579_v46 = vand.u32 2147483647, %v4278_v14  ;;  %v1563_v47 = vsel %vm4372_vm9, %v4275_v0, %v1559_v11  ;;  %v1007_v11 = vld [vmem:[%s5989_s4 + $0x148] sm:$0xff] }
 0x332   : > { %v1165_v5 = vadd.f32 %v1164_v36, %v1005_v4  ;;  %v2038_v1 = vmul.f32 %v4325_v56, %v2037_v51  ;;  %v1572_v35 = vsub.f32 1.0, %v1571_v19  ;;  %vm1575_vm10 = vweird.f32 %v4278_v14 }
 0x333   : > { %v1071_v37 = vpop.f32.mrf.mxu0  ;;  %vm1576_vm11 = vweird.f32 %v4347_v62  ;;  %v1581_v6 = vand.u32 2147483648, %v4278_v14  ;;  %vm2055_vm12 = vweird.f32 %v4327_v53  ;;  %v2059_v17 = vand.u32 2147483647, %v4327_v53 }
 0x334   : > { %v3112_v40 = vpop.eup %3111  ;;  %v3006_v63 = vmul.f32 -1.442695, %v1165_v5  ;;  %v1072_v10 = vadd.f32 %v1071_v37, %v974_v9  ;;  %v2039_v13 = vadd.f32 %v4325_v56, %v2038_v1  ;;  %v1568_v0 = vsel %vm4343_vm7, %v1567_v7, %v1563_v47  ;;  %vm1577_vm15 = vmor %vm1575_vm10, %vm1576_vm11 }
 0x335   : > { %v4392_v15 = vpop.eup %3113  ;;  %v4394_v3 = vadd.f32 1.0, %v3112_v40  ;;  %v1573_v18 = vmul.f32 %v4347_v62, %v1572_v35  ;;  %vm4403_vm14 = vcmp.eq.f32.partialorder %v1579_v46, 8.507059e+37  ;;  %v1582_v31 = vor.u32 1.1754944e-38, %v1581_v6 }
 0x336   : > { %v3116_v44 = vpop.eup %3115  ;;  %3119 = vpow2.f32 %v3006_v63  ;;  %v2975_v21 = vmul.f32 -1.442695, %v1072_v10  ;;  %1118 = vmatmul.f32.gmra.mxu0 %v926_v61  ;;  %1214 = vmatmul.f32.gmra.mxu2 %v958_v49  ;;  %v2043_v26 = vsel %vm2042_vm13, %v4325_v56, %v2039_v13  ;;  %v2051_v57 = vmul.f32 %v4392_v15, %v4327_v53  ;;  %v959_v56 = vld [vmem:[%s5988_s3 + $0x1c8] sm:$0xff]  ;;  %v976_v61 = vld [vmem:[%s5989_s4 + $0x50] sm:$0xff] }
 0x337   : > { %v4410_v22 = vpop.eup %3117  ;;  %3121 = vrcp.f32 %v4394_v3  ;;  %v4413_v25 = vadd.f32 1.0, %v3116_v44  ;;  %v2048_v29 = vsel %vm4339_vm6, %v4330_v32, %v2043_v26  ;;  %v1574_v30 = vadd.f32 %v4347_v62, %v1573_v18  ;;  %v928_v10 = vld [vmem:[%s5988_s3 + $0xd0] sm:$0xff] }
 0x338   : > { %3123 = vpow2.f32 %v2975_v21  ;;  %2637 = vperm.xlu0 %3062, %v2048_v29   ;;  %v2052_v24 = vsub.f32 1.0, %v2051_v57  ;;  %vm2056_vm1 = vweird.f32 %v4392_v15  ;;  %v2061_v20 = vand.u32 2147483648, %v4327_v53  ;;  %v960_v13 = vld [vmem:[%s5988_s3 + $0x1d0] sm:$0xff] }
 0x339   : > { %3125 = vrcp.f32 %v4413_v25  ;;  %2477 = vperm.xlu1 %3060, %v1568_v0   ;;  %v1167_v28 = vpop.f32.mrf.mxu2  ;;  %v1578_v34 = vsel %vm1577_vm15, %v4347_v62, %v1574_v30  ;;  %v1586_v14 = vmul.f32 %v4410_v22, %v4350_v23  ;;  %vm4438_vm2 = vcmp.eq.f32.partialorder %v2059_v17, 8.507059e+37  ;;  %vm4460_vm4 = vmor %vm2055_vm12, %vm2056_vm1 }
 0x33a   : > { %v1168_v41 = vadd.f32 %v1167_v28, %v1006_v48  ;;  %v1583_v42 = vsel %vm4403_vm14, %v1582_v31, %v1578_v34  ;;  %v2053_v45 = vmul.f32 %v4392_v15, %v2052_v24  ;;  %v2062_v54 = vor.u32 1.1754944e-38, %v2061_v20 }
 0x33b   : > { %2482 = vperm.xlu2 %3061, %v1583_v42   ;;  %v1074_v55 = vpop.f32.mrf.mxu0  ;;  %v1587_v32 = vsub.f32 1.0, %v1586_v14  ;;  %vm1590_vm3 = vweird.f32 %v4350_v23  ;;  %v1594_v12 = vand.u32 2147483647, %v4350_v23  ;;  %v1596_v8 = vand.u32 2147483648, %v4350_v23 }
 0x33c   : > { %v3120_v58 = vpop.eup %3119  ;;  %v3007_v27 = vmul.f32 -1.442695, %v1168_v41  ;;  %v1075_v59 = vadd.f32 %v1074_v55, %v975_v38  ;;  %v2054_v33 = vadd.f32 %v4392_v15, %v2053_v45  ;;  %vm1591_vm5 = vweird.f32 %v4410_v22  ;;  %v1008_v38 = vld [vmem:[%s5989_s4 + $0x150] sm:$0xff] }
 0x33d   : > { %v4452_v62 = vpop.eup %3121  ;;  %v4454_v52 = vadd.f32 1.0, %v3120_v58  ;;  %v1588_v60 = vmul.f32 %v4410_v22, %v1587_v32  ;;  %vm4466_vm6 = vcmp.eq.f32.partialorder %v1594_v12, 8.507059e+37  ;;  %vm1605_vm7 = vweird.f32 %v4413_v25  ;;  %vm1592_vm8 = vmor %vm1590_vm3, %vm1591_vm5 }
 0x33e   : > { %v3124_v51 = vpop.eup %3123  ;;  %3127 = vpow2.f32 %v3007_v27  ;;  %v2976_v19 = vmul.f32 -1.442695, %v1075_v59  ;;  %1121 = vmatmul.f32.gmra.mxu0 %v927_v16  ;;  %1217 = vmatmul.f32.gmra.mxu2 %v959_v56  ;;  %v2058_v53 = vsel %vm4460_vm4, %v4392_v15, %v2054_v33  ;;  %v1597_v5 = vor.u32 1.1754944e-38, %v1596_v8  ;;  %v977_v16 = vld [vmem:[%s5989_s4 + $0x58] sm:$0xff] }
 0x33f   : > { %v4474_v36 = vpop.eup %3125  ;;  %3129 = vrcp.f32 %v4454_v52  ;;  %v4477_v9 = vadd.f32 1.0, %v3124_v51  ;;  %v1589_v7 = vadd.f32 %v4410_v22, %v1588_v60  ;;  %v2063_v1 = vsel %vm4438_vm2, %v2062_v54, %v2058_v53  ;;  %v929_v27 = vld [vmem:[%s5988_s3 + $0xd8] sm:$0xff] }
 0x340   : > { %3131 = vpow2.f32 %v2976_v19  ;;  %v1601_v39 = vmul.f32 %v4474_v36, %v4413_v25  ;;  %v1609_v35 = vand.u32 2147483647, %v4413_v25  ;;  %vm1606_vm9 = vweird.f32 %v4474_v36  ;;  %v961_v59 = vld [vmem:[%s5988_s3 + $0x1d8] sm:$0xff] }
 0x341   : > { %v1170_v46 = vpop.f32.mrf.mxu2  ;;  %v1593_v37 = vsel %vm1592_vm8, %v4410_v22, %v1589_v7  ;;  %v1611_v49 = vand.u32 2147483648, %v4413_v25  ;;  %v2066_v23 = vmul.f32 %v4452_v62, %v4394_v3  ;;  %3133 = vrcp.f32 %v4477_v9  ;;  %vm1607_vm15 = vmor %vm1605_vm7, %vm1606_vm9 }
 0x342   : > { %v1171_v47 = vadd.f32 %v1170_v46, %v1007_v11  ;;  %v1598_v6 = vsel %vm4466_vm6, %v1597_v5, %v1593_v37  ;;  %v1602_v40 = vsub.f32 1.0, %v1601_v39  ;;  %vm4509_vm10 = vcmp.eq.f32.partialorder %v1609_v35, 8.507059e+37 }
 0x343   : > { %2642 = vperm.xlu2 %3061, %v2063_v1   ;;  %2487 = vperm.xlu1 %3060, %v1598_v6   ;;  %v1077_v63 = vpop.f32.mrf.mxu0  ;;  %v1612_v15 = vor.u32 1.1754944e-38, %v1611_v49  ;;  %v2067_v0 = vsub.f32 1.0, %v2066_v23  ;;  %vm2070_vm11 = vweird.f32 %v4394_v3  ;;  %v2074_v26 = vand.u32 2147483647, %v4394_v3 }
 0x344   : > { %v3128_v18 = vpop.eup %3127  ;;  %v3008_v43 = vmul.f32 -1.442695, %v1171_v47  ;;  %v1078_v44 = vadd.f32 %v1077_v63, %v976_v61  ;;  %v1603_v21 = vmul.f32 %v4474_v36, %v1602_v40  ;;  %vm2071_vm12 = vweird.f32 %v4452_v62  ;;  %v1009_v61 = vld [vmem:[%s5989_s4 + $0x158] sm:$0xff] }
 0x345   : > { %v4516_v57 = vpop.eup %3129  ;;  %v4518_v22 = vadd.f32 1.0, %v3128_v18  ;;  %v2068_v29 = vmul.f32 %v4452_v62, %v2067_v0  ;;  %v2076_v48 = vand.u32 2147483648, %v4394_v3  ;;  %vm4524_vm13 = vcmp.eq.f32.partialorder %v2074_v26, 8.507059e+37  ;;  %vm2072_vm1 = vmor %vm2070_vm11, %vm2071_vm12 }
 0x346   : > { %v3132_v30 = vpop.eup %3131  ;;  %3135 = vpow2.f32 %v3008_v43  ;;  %v2977_v31 = vmul.f32 -1.442695, %v1078_v44  ;;  %1124 = vmatmul.f32.gmra.mxu0 %v928_v10  ;;  %1220 = vmatmul.f32.gmra.mxu2 %v960_v13  ;;  %v1604_v24 = vadd.f32 %v4474_v36, %v1603_v21  ;;  %vm2085_vm14 = vweird.f32 %v4454_v52  ;;  %v978_v13 = vld [vmem:[%s5989_s4 + $0x60] sm:$0xff] }
 0x347   : > { %3137 = vrcp.f32 %v4518_v22  ;;  %v4530_v34 = vadd.f32 1.0, %v3132_v30  ;;  %v2069_v20 = vadd.f32 %v4452_v62, %v2068_v29  ;;  %v2077_v14 = vor.u32 1.1754944e-38, %v2076_v48  ;;  %v4540_v41 = vpop.eup %3133  ;;  %v930_v44 = vld [vmem:[%s5988_s3 + $0xe0] sm:$0xff] }
 0x348   : > { %3139 = vpow2.f32 %v2977_v31  ;;  %v1608_v42 = vsel %vm1607_vm15, %v4474_v36, %v1604_v24  ;;  %v2081_v45 = vmul.f32 %v4516_v57, %v4454_v52  ;;  %vm2086_vm2 = vweird.f32 %v4516_v57  ;;  %v962_v21 = vld [vmem:[%s5988_s3 + $0x1e0] sm:$0xff] }
 0x349   : > { %3141 = vrcp.f32 %v4530_v34  ;;  %v1173_v25 = vpop.f32.mrf.mxu2  ;;  %v1613_v50 = vsel %vm4509_vm10, %v1612_v15, %v1608_v42  ;;  %v2073_v55 = vsel %vm2072_vm1, %v4452_v62, %v2069_v20  ;;  %v2089_v3 = vand.u32 2147483647, %v4454_v52  ;;  %vm2087_vm6 = vmor %vm2085_vm14, %vm2086_vm2 }
 0x34a   : > { %v1174_v56 = vadd.f32 %v1173_v25, %v1008_v38  ;;  %v2078_v54 = vsel %vm4524_vm13, %v2077_v14, %v2073_v55  ;;  %v2082_v32 = vsub.f32 1.0, %v2081_v45  ;;  %v2091_v12 = vand.u32 2147483648, %v4454_v52 }
 0x34b   : > { %2492 = vperm.xlu2 %3061, %v1613_v50   ;;  %2647 = vperm.xlu1 %3060, %v2078_v54   ;;  %v1080_v58 = vpop.f32.mrf.mxu0  ;;  %vm4567_vm3 = vcmp.eq.f32.partialorder %v2089_v3, 8.507059e+37  ;;  %v1616_v8 = vmul.f32 %v4540_v41, %v4477_v9  ;;  %vm1620_vm4 = vweird.f32 %v4477_v9  ;;  %vm1621_vm5 = vweird.f32 %v4540_v41  ;;  %v1010_v50 = vld [vmem:[%s5989_s4 + $0x160] sm:$0xff] }
 0x34c   : > { %v3136_v62 = vpop.eup %3135  ;;  %v3009_v4 = vmul.f32 -1.442695, %v1174_v56  ;;  %v1081_v60 = vadd.f32 %v1080_v58, %v977_v16  ;;  %v2083_v2 = vmul.f32 %v4516_v57, %v2082_v32  ;;  %v2092_v51 = vor.u32 1.1754944e-38, %v2091_v12  ;;  %vm1622_vm9 = vmor %vm1620_vm4, %vm1621_vm5  ;;  %v979_v12 = vld [vmem:[%s5989_s4 + $0x68] sm:$0xff] }
 0x34d   : > { %v4576_v19 = vpop.eup %3137  ;;  %v4578_v53 = vadd.f32 1.0, %v3136_v62  ;;  %v1617_v36 = vsub.f32 1.0, %v1616_v8  ;;  %v1624_v11 = vand.u32 2147483647, %v4477_v9  ;;  %v1626_v7 = vand.u32 2147483648, %v4477_v9  ;;  %v931_v62 = vld [vmem:[%s5988_s3 + $0xe8] sm:$0xff] }
 0x34e   : > { %v3140_v5 = vpop.eup %3139  ;;  %3143 = vpow2.f32 %v3009_v4  ;;  %v2978_v1 = vmul.f32 -1.442695, %v1081_v60  ;;  %1127 = vmatmul.f32.gmra.mxu0 %v929_v27  ;;  %1223 = vmatmul.f32.gmra.mxu2 %v961_v59  ;;  %v2084_v39 = vadd.f32 %v4516_v57, %v2083_v2  ;;  %v2096_v35 = vmul.f32 %v4576_v19, %v4518_v22  ;;  %v963_v4 = vld [vmem:[%s5988_s3 + $0x1e8] sm:$0xff] }
 0x34f   : > { %v4585_v46 = vpop.eup %3141  ;;  %3145 = vrcp.f32 %v4578_v53  ;;  %v4588_v37 = vadd.f32 1.0, %v3140_v5  ;;  %v1618_v49 = vmul.f32 %v4540_v41, %v1617_v36  ;;  %vm4598_vm7 = vcmp.eq.f32.partialorder %v1624_v11, 8.507059e+37 }
 0x350   : > { %3147 = vpow2.f32 %v2978_v1  ;;  %v2088_v47 = vsel %vm2087_vm6, %v4516_v57, %v2084_v39  ;;  %v1627_v6 = vor.u32 1.1754944e-38, %v1626_v7  ;;  %v2097_v40 = vsub.f32 1.0, %v2096_v35 }
 0x351   : > { %3149 = vrcp.f32 %v4588_v37  ;;  %v2093_v52 = vsel %vm4567_vm3, %v2092_v51, %v2088_v47  ;;  %v1176_v63 = vpop.f32.mrf.mxu2  ;;  %v1619_v10 = vadd.f32 %v4540_v41, %v1618_v49  ;;  %vm2100_vm8 = vweird.f32 %v4518_v22 }
 0x352   : > { %2652 = vperm.xlu0 %3062, %v2093_v52   ;;  %v1177_v17 = vadd.f32 %v1176_v63, %v1009_v61  ;;  %v2098_v15 = vmul.f32 %v4576_v19, %v2097_v40  ;;  %vm2101_vm10 = vweird.f32 %v4576_v19  ;;  %v2104_v0 = vand.u32 2147483647, %v4518_v22  ;;  %v1011_v40 = vld [vmem:[%s5989_s4 + $0x168] sm:$0xff] }
 0x353   : > { %v1623_v18 = vsel %vm1622_vm9, %v4540_v41, %v1619_v10  ;;  %v1083_v43 = vpop.f32.mrf.mxu0  ;;  %v2106_v9 = vand.u32 2147483648, %v4518_v22  ;;  %v1631_v26 = vmul.f32 %v4585_v46, %v4530_v34  ;;  %vm1635_vm11 = vweird.f32 %v4530_v34  ;;  %vm2102_vm12 = vmor %vm2100_vm8, %vm2101_vm10 }
 0x354   : > { %v3144_v57 = vpop.eup %3143  ;;  %v3010_v29 = vmul.f32 -1.442695, %v1177_v17  ;;  %v1628_v48 = vsel %vm4598_vm7, %v1627_v6, %v1623_v18  ;;  %v1084_v30 = vadd.f32 %v1083_v43, %v978_v13  ;;  %v2099_v31 = vadd.f32 %v4576_v19, %v2098_v15 }
 0x355   : > { %v4632_v24 = vpop.eup %3145  ;;  %v4634_v28 = vadd.f32 1.0, %v3144_v57  ;;  %2497 = vperm.xlu1 %3060, %v1628_v48   ;;  %vm2105_vm13 = vcmp.eq.f32.partialorder %v2104_v0, 8.507059e+37  ;;  %v2107_v38 = vor.u32 1.1754944e-38, %v2106_v9  ;;  %v1632_v20 = vsub.f32 1.0, %v1631_v26  ;;  %v980_v0 = vld [vmem:[%s5989_s4 + $0x70] sm:$0xff] }
 0x356   : > { %v3148_v14 = vpop.eup %3147  ;;  %3151 = vpow2.f32 %v3010_v29  ;;  %v2979_v41 = vmul.f32 -1.442695, %v1084_v30  ;;  %1130 = vmatmul.f32.gmra.mxu0 %v930_v44  ;;  %1226 = vmatmul.f32.gmra.mxu2 %v962_v21  ;;  %v2103_v42 = vsel %vm2102_vm12, %v4576_v19, %v2099_v31  ;;  %vm1636_vm14 = vweird.f32 %v4585_v46  ;;  %v932_v26 = vld [vmem:[%s5988_s3 + $0xf0] sm:$0xff] }
 0x357   : > { %v4642_v45 = vpop.eup %3149  ;;  %3153 = vrcp.f32 %v4634_v28  ;;  %v4645_v25 = vadd.f32 1.0, %v3148_v14  ;;  %v2108_v22 = vsel %vm2105_vm13, %v2107_v38, %v2103_v42  ;;  %v1633_v55 = vmul.f32 %v4585_v46, %v1632_v20  ;;  %vm1637_vm2 = vmor %vm1635_vm11, %vm1636_vm14  ;;  %v964_v57 = vld [vmem:[%s5988_s3 + $0x1f0] sm:$0xff] }
 0x358   : > { %3155 = vpow2.f32 %v2979_v41  ;;  %2657 = vperm.xlu2 %3061, %v2108_v22   ;;  %v1639_v16 = vand.u32 2147483647, %v4530_v34  ;;  %v1641_v3 = vand.u32 2147483648, %v4530_v34  ;;  %v2111_v56 = vmul.f32 %v4632_v24, %v4578_v53 }
 0x359   : > { %3157 = vrcp.f32 %v4645_v25  ;;  %v1179_v54 = vpop.f32.mrf.mxu2  ;;  %v1634_v32 = vadd.f32 %v4585_v46, %v1633_v55  ;;  %vm2115_vm15 = vweird.f32 %v4578_v53  ;;  %vm2116_vm1 = vweird.f32 %v4632_v24 }
 0x35a   : > { %v1180_v58 = vadd.f32 %v1179_v54, %v1010_v50  ;;  %vm1640_vm3 = vcmp.eq.f32.partialorder %v1639_v16, 8.507059e+37  ;;  %v1642_v27 = vor.u32 1.1754944e-38, %v1641_v3  ;;  %v2112_v59 = vsub.f32 1.0, %v2111_v56  ;;  %vm2117_vm6 = vmor %vm2115_vm15, %vm2116_vm1  ;;  %v1012_v56 = vld [vmem:[%s5989_s4 + $0x170] sm:$0xff]  ;;  %v3319_v50 = vld [vmem:[%s3438_s23 + $0x8] sm:$0xff] }
 0x35b   : > { %v1638_v33 = vsel %vm1637_vm2, %v4585_v46, %v1634_v32  ;;  %v1086_v8 = vpop.f32.mrf.mxu0  ;;  %v2119_v60 = vand.u32 2147483647, %v4578_v53  ;;  %v2121_v2 = vand.u32 2147483648, %v4578_v53  ;;  %v1646_v34 = vmul.f32 %v4642_v45, %v4588_v37 }
 0x35c   : > { %v3152_v51 = vpop.eup %3151  ;;  %v3011_v19 = vmul.f32 -1.442695, %v1180_v58  ;;  %v1643_v36 = vsel %vm1640_vm3, %v1642_v27, %v1638_v33  ;;  %v1087_v11 = vadd.f32 %v1086_v8, %v979_v12  ;;  %v2113_v7 = vmul.f32 %v4632_v24, %v2112_v59  ;;  %v981_v8 = vld [vmem:[%s5989_s4 + $0x78] sm:$0xff] }
 0x35d   : > { %v4678_v5 = vpop.eup %3153  ;;  %v4680_v1 = vadd.f32 1.0, %v3152_v51  ;;  %2502 = vperm.xlu0 %3062, %v1643_v36   ;;  %vm4682_vm4 = vcmp.eq.f32.partialorder %v2119_v60, 8.507059e+37  ;;  %v2122_v35 = vor.u32 1.1754944e-38, %v2121_v2  ;;  %v1647_v46 = vsub.f32 1.0, %v1646_v34  ;;  %v965_v36 = vld [vmem:[%s5988_s3 + $0x1f8] sm:$0xff]  ;;  %v983_v60 = vld [vmem:[%s5989_s4 + $0x88] sm:$0xff] }
 0x35e   : > { %v3156_v61 = vpop.eup %3155  ;;  %3159 = vpow2.f32 %v3011_v19  ;;  %v2980_v49 = vmul.f32 -1.442695, %v1087_v11  ;;  %1133 = vmatmul.f32.gmra.mxu0 %v931_v62  ;;  %1229 = vmatmul.f32.gmra.mxu2 %v963_v4  ;;  %v2114_v23 = vadd.f32 %v4632_v24, %v2113_v7  ;;  %vm1650_vm5 = vweird.f32 %v4588_v37  ;;  %v933_v19 = vld [vmem:[%s5988_s3 + $0xf8] sm:$0xff] }
 0x35f   : > { %v4688_v47 = vpop.eup %3157  ;;  %3161 = vrcp.f32 %v4680_v1  ;;  %v4691_v6 = vadd.f32 1.0, %v3156_v61  ;;  %v1648_v52 = vmul.f32 %v4642_v45, %v1647_v46  ;;  %vm1651_vm7 = vweird.f32 %v4642_v45 }
 0x360   : > { %3163 = vpow2.f32 %v2980_v49  ;;  %v2118_v63 = vsel %vm2117_vm6, %v4632_v24, %v2114_v23  ;;  %v1654_v10 = vand.u32 2147483647, %v4588_v37  ;;  %v1656_v13 = vand.u32 2147483648, %v4588_v37  ;;  %vm1652_vm8 = vmor %vm1650_vm5, %vm1651_vm7 }
 0x361   : > { %v2123_v17 = vsel %vm4682_vm4, %v2122_v35, %v2118_v63  ;;  %v1182_v53 = vpop.f32.mrf.mxu2  ;;  %v1649_v15 = vadd.f32 %v4642_v45, %v1648_v52  ;;  %v2126_v18 = vmul.f32 %v4678_v5, %v4634_v28  ;;  %3165 = vrcp.f32 %v4691_v6 }
 0x362   : > { %2662 = vperm.xlu1 %3060, %v2123_v17   ;;  %v1183_v43 = vadd.f32 %v1182_v53, %v1011_v40  ;;  %vm1655_vm9 = vcmp.eq.f32.partialorder %v1654_v10, 8.507059e+37  ;;  %v1657_v44 = vor.u32 1.1754944e-38, %v1656_v13  ;;  %vm2130_vm10 = vweird.f32 %v4634_v28  ;;  %v1013_v17 = vld [vmem:[%s5989_s4 + $0x178] sm:$0xff] }
 0x363   : > { %v1653_v21 = vsel %vm1652_vm8, %v4642_v45, %v1649_v15  ;;  %v1089_v9 = vpop.f32.mrf.mxu0  ;;  %v2127_v29 = vsub.f32 1.0, %v2126_v18  ;;  %v2134_v48 = vand.u32 2147483647, %v4634_v28  ;;  %v2136_v38 = vand.u32 2147483648, %v4634_v28 }
 0x364   : > { %v3160_v37 = vpop.eup %3159  ;;  %v3012_v30 = vmul.f32 -1.442695, %v1183_v43  ;;  %v1658_v31 = vsel %vm1655_vm9, %v1657_v44, %v1653_v21  ;;  %v1090_v24 = vadd.f32 %v1089_v9, %v980_v0  ;;  %vm2131_vm11 = vweird.f32 %v4678_v5  ;;  %v982_v21 = vld [vmem:[%s5989_s4 + $0x80] sm:$0xff] }
 0x365   : > { %v4726_v20 = vpop.eup %3161  ;;  %v4728_v14 = vadd.f32 1.0, %v3160_v37  ;;  %2507 = vperm.xlu2 %3061, %v1658_v31   ;;  %v2128_v41 = vmul.f32 %v4678_v5, %v2127_v29  ;;  %v1661_v42 = vmul.f32 %v4688_v47, %v4645_v25  ;;  %vm4734_vm12 = vcmp.eq.f32.partialorder %v2134_v48, 8.507059e+37  ;;  %vm2132_vm13 = vmor %vm2130_vm10, %vm2131_vm11 }
 0x366   : > { %v3164_v45 = vpop.eup %3163  ;;  %3167 = vpow2.f32 %v3012_v30  ;;  %v2981_v22 = vmul.f32 -1.442695, %v1090_v24  ;;  %1136 = vmatmul.f32.gmra.mxu0 %v932_v26  ;;  %1232 = vmatmul.f32.gmra.mxu2 %v964_v57  ;;  %v2137_v55 = vor.u32 1.1754944e-38, %v2136_v38  ;;  %vm1665_vm14 = vweird.f32 %v4645_v25 }
 0x367   : > { %3169 = vrcp.f32 %v4728_v14  ;;  %v4739_v16 = vadd.f32 1.0, %v3164_v45  ;;  %v2129_v3 = vadd.f32 %v4678_v5, %v2128_v41  ;;  %v1662_v54 = vsub.f32 1.0, %v1661_v42  ;;  %v4745_v32 = vpop.eup %3165 }
 0x368   : > { %3171 = vpow2.f32 %v2981_v22  ;;  %v1669_v12 = vand.u32 2147483647, %v4645_v25  ;;  %v1671_v58 = vand.u32 2147483648, %v4645_v25  ;;  %vm1666_vm15 = vweird.f32 %v4688_v47 }
 0x369   : > { %v2133_v27 = vsel %vm2132_vm13, %v4678_v5, %v2129_v3  ;;  %v1185_v59 = vpop.f32.mrf.mxu2  ;;  %v1663_v33 = vmul.f32 %v4688_v47, %v1662_v54  ;;  %v2141_v28 = vmul.f32 %v4726_v20, %v4680_v1  ;;  %3173 = vrcp.f32 %v4739_v16  ;;  %vm1667_vm3 = vmor %vm1665_vm14, %vm1666_vm15 }
 0x36a   : > { %v2138_v62 = vsel %vm4734_vm12, %v2137_v55, %v2133_v27  ;;  %v1186_v4 = vadd.f32 %v1185_v59, %v1012_v56  ;;  %vm4765_vm1 = vcmp.eq.f32.partialorder %v1669_v12, 8.507059e+37  ;;  %v1672_v34 = vor.u32 1.1754944e-38, %v1671_v58 }
 0x36b   : > { %2667 = vperm.xlu0 %3062, %v2138_v62   ;;  %v1664_v2 = vadd.f32 %v4688_v47, %v1663_v33  ;;  %v1092_v51 = vpop.f32.mrf.mxu0  ;;  %v2142_v11 = vsub.f32 1.0, %v2141_v28  ;;  %vm2146_vm2 = vweird.f32 %v4726_v20  ;;  %v2149_v35 = vand.u32 2147483647, %v4680_v1  ;;  %v1014_v33 = vld [vmem:[%s5989_s4 + $0x180] sm:$0xff] }
 0x36c   : > { %v3168_v7 = vpop.eup %3167  ;;  %v3013_v5 = vmul.f32 -1.442695, %v1186_v4  ;;  %v1093_v39 = vadd.f32 %v1092_v51, %v981_v8  ;;  %v2151_v46 = vand.u32 2147483648, %v4680_v1  ;;  %v1676_v52 = vmul.f32 %v4745_v32, %v4691_v6 }
 0x36d   : > { %v4783_v61 = vpop.eup %3169  ;;  %v4785_v49 = vadd.f32 1.0, %v3168_v7  ;;  %v1668_v23 = vsel %vm1667_vm3, %v4688_v47, %v1664_v2  ;;  %v2143_v40 = vmul.f32 %v4726_v20, %v2142_v11  ;;  %vm2145_vm4 = vweird.f32 %v4680_v1 }
 0x36e   : > { %v3172_v63 = vpop.eup %3171  ;;  %3175 = vpow2.f32 %v3013_v5  ;;  %v1673_v25 = vsel %vm4765_vm1, %v1672_v34, %v1668_v23  ;;  %v2982_v10 = vmul.f32 -1.442695, %v1093_v39  ;;  %1139 = vmatmul.f32.gmra.mxu0 %v933_v19  ;;  %1235 = vmatmul.f32.gmra.mxu2 %v965_v36  ;;  %vm2150_vm5 = vcmp.eq.f32.partialorder %v2149_v35, 8.507059e+37  ;;  %vm2147_vm6 = vmor %vm2145_vm4, %vm2146_vm2 }
 0x36f   : > { %3177 = vrcp.f32 %v4785_v49  ;;  %v4795_v13 = vadd.f32 1.0, %v3172_v63  ;;  %2512 = vperm.xlu1 %3060, %v1673_v25   ;;  %v2144_v47 = vadd.f32 %v4726_v20, %v2143_v40  ;;  %v4801_v53 = vpop.eup %3173  ;;  %v2152_v15 = vor.u32 1.1754944e-38, %v2151_v46 }
 0x370   : > { %3179 = vpow2.f32 %v2982_v10  ;;  %v1677_v1 = vsub.f32 1.0, %v1676_v52  ;;  %vm1680_vm7 = vweird.f32 %v4691_v6  ;;  %vm1681_vm8 = vweird.f32 %v4745_v32 }
 0x371   : > { %v2148_v0 = vsel %vm2147_vm6, %v4726_v20, %v2144_v47  ;;  %v1188_v18 = vpop.f32.mrf.mxu2  ;;  %v1684_v43 = vand.u32 2147483647, %v4691_v6  ;;  %v1686_v44 = vand.u32 2147483648, %v4691_v6  ;;  %v2156_v29 = vmul.f32 %v4783_v61, %v4728_v14  ;;  %vm1682_vm11 = vmor %vm1680_vm7, %vm1681_vm8 }
 0x372   : > { %v2153_v9 = vsel %vm2150_vm5, %v2152_v15, %v2148_v0  ;;  %v1189_v26 = vadd.f32 %v1188_v18, %v1013_v17  ;;  %v1678_v57 = vmul.f32 %v4745_v32, %v1677_v1  ;;  %3181 = vrcp.f32 %v4795_v13 }
 0x373   : > { %2672 = vperm.xlu2 %3061, %v2153_v9   ;;  %vm4817_vm9 = vcmp.eq.f32.partialorder %v1684_v43, 8.507059e+37  ;;  %v1687_v37 = vor.u32 1.1754944e-38, %v1686_v44  ;;  %v1095_v30 = vpop.f32.mrf.mxu0  ;;  %vm2161_vm10 = vweird.f32 %v4783_v61  ;;  %v2157_v42 = vsub.f32 1.0, %v2156_v29  ;;  %v1015_v43 = vld [vmem:[%s5989_s4 + $0x188] sm:$0xff] }
 0x374   : > { %v3176_v31 = vpop.eup %3175  ;;  %v3014_v24 = vmul.f32 -1.442695, %v1189_v26  ;;  %v1679_v38 = vadd.f32 %v4745_v32, %v1678_v57  ;;  %v1096_v20 = vadd.f32 %v1095_v30, %v982_v21  ;;  %v2463_v41 = vpop.permute.xlu2 %2462  ;;  %v2164_v3 = vand.u32 2147483647, %v4728_v14 }
 0x375   : > { %v4830_v45 = vpop.eup %3177  ;;  %v4832_v22 = vadd.f32 1.0, %v3176_v31  ;;  %v2776_v55 = vmul.f32 %v3319_v50, %v2463_v41  ;;  %v2166_v56 = vand.u32 2147483648, %v4728_v14  ;;  %v2158_v27 = vmul.f32 %v4783_v61, %v2157_v42  ;;  %v984_v31 = vld [vmem:[%s5989_s4 + $0x90] sm:$0xff] }
 0x376   : > { %v3180_v54 = vpop.eup %3179  ;;  %3183 = vpow2.f32 %v3014_v24  ;;  %v1683_v12 = vsel %vm1682_vm11, %v4745_v32, %v1679_v38  ;;  %v2983_v58 = vmul.f32 -1.442695, %v1096_v20  ;;  %vm2160_vm12 = vweird.f32 %v4728_v14  ;;  %v3320_v38 = vld [vmem:[%s3438_s23 + $0x110] sm:$0xff] }
 0x377   : > { %3185 = vrcp.f32 %v4832_v22  ;;  %v4844_v59 = vadd.f32 1.0, %v3180_v54  ;;  %v1688_v6 = vsel %vm4817_vm9, %v1687_v37, %v1683_v12  ;;  %2840 = vst.msk [vmem:[%s4827_s22 + $0x8] sm:$0xff] %vm289_vm0, %v2776_v55  ;;  %v2159_v32 = vadd.f32 %v4783_v61, %v2158_v27  ;;  %vm2162_vm14 = vmor %vm2160_vm12, %vm2161_vm10 }
 0x378   : > { %2517 = vperm.xlu0 %3062, %v1688_v6   ;;  %3187 = vpow2.f32 %v2983_v58  ;;  %vm2165_vm13 = vcmp.eq.f32.partialorder %v2164_v3, 8.507059e+37  ;;  %v1691_v8 = vmul.f32 %v4801_v53, %v4739_v16  ;;  %v4857_v28 = vpop.eup %3181  ;;  %v2167_v14 = vor.u32 1.1754944e-38, %v2166_v56  ;;  %v3321_v6 = vld [vmem:[%s3438_s23] sm:$0xff] }
 0x379   : > { %3189 = vrcp.f32 %v4844_v59  ;;  %v1191_v62 = vpop.f32.mrf.mxu2  ;;  %vm1695_vm15 = vweird.f32 %v4739_v16  ;;  %v1699_v4 = vand.u32 2147483647, %v4739_v16  ;;  %v2163_v2 = vsel %vm2162_vm14, %v4783_v61, %v2159_v32 }
 0x37a   : > { %v1192_v34 = vadd.f32 %v1191_v62, %v1014_v33  ;;  %v1692_v51 = vsub.f32 1.0, %v1691_v8  ;;  %v1701_v19 = vand.u32 2147483648, %v4739_v16  ;;  %v2168_v36 = vsel %vm2165_vm13, %v2167_v14, %v2163_v2 }
 0x37b   : > { %vm1696_vm1 = vweird.f32 %v4801_v53  ;;  %vm4870_vm2 = vcmp.eq.f32.partialorder %v1699_v4, 8.507059e+37  ;;  %v1098_v7 = vpop.f32.mrf.mxu0  ;;  %v2171_v5 = vmul.f32 %v4830_v45, %v4785_v49  ;;  %2677 = vperm.xlu1 %3060, %v2168_v36   ;;  %vm2175_vm3 = vweird.f32 %v4785_v49 }
 0x37c   : > { %v3184_v39 = vpop.eup %3183  ;;  %v3015_v35 = vmul.f32 -1.442695, %v1192_v34  ;;  %v1693_v46 = vmul.f32 %v4801_v53, %v1692_v51  ;;  %v1099_v61 = vadd.f32 %v1098_v7, %v983_v60  ;;  %v1702_v52 = vor.u32 1.1754944e-38, %v1701_v19  ;;  %vm1697_vm4 = vmor %vm1695_vm15, %vm1696_vm1 }
 0x37d   : > { %v4878_v23 = vpop.eup %3185  ;;  %v4880_v40 = vadd.f32 1.0, %v3184_v39  ;;  %v2172_v63 = vsub.f32 1.0, %v2171_v5  ;;  %v2179_v25 = vand.u32 2147483647, %v4785_v49  ;;  %v2181_v15 = vand.u32 2147483648, %v4785_v49 }
 0x37e   : > { %v3188_v10 = vpop.eup %3187  ;;  %3191 = vpow2.f32 %v3015_v35  ;;  %v1694_v47 = vadd.f32 %v4801_v53, %v1693_v46  ;;  %v2984_v17 = vmul.f32 -1.442695, %v1099_v61  ;;  %vm2176_vm5 = vweird.f32 %v4830_v45 }
 0x37f   : > { %v4885_v1 = vpop.eup %3189  ;;  %3193 = vrcp.f32 %v4880_v40  ;;  %v4888_v0 = vadd.f32 1.0, %v3188_v10  ;;  %v2173_v18 = vmul.f32 %v4830_v45, %v2172_v63  ;;  %vm4900_vm6 = vcmp.eq.f32.partialorder %v2179_v25, 8.507059e+37  ;;  %vm2177_vm7 = vmor %vm2175_vm3, %vm2176_vm5 }
 0x380   : > { %v1698_v44 = vsel %vm1697_vm4, %v4801_v53, %v1694_v47  ;;  %3195 = vpow2.f32 %v2984_v17  ;;  %v1706_v16 = vmul.f32 %v4857_v28, %v4795_v13  ;;  %v2182_v57 = vor.u32 1.1754944e-38, %v2181_v15 }
 0x381   : > { %3197 = vrcp.f32 %v4888_v0  ;;  %v1703_v9 = vsel %vm4870_vm2, %v1702_v52, %v1698_v44  ;;  %v2174_v26 = vadd.f32 %v4830_v45, %v2173_v18  ;;  %v1194_v29 = vpop.f32.mrf.mxu2  ;;  %vm1710_vm8 = vweird.f32 %v4795_v13  ;;  %v3322_v18 = vld [vmem:[%s3438_s23 + $0x18] sm:$0xff] }
 0x382   : > { %2522 = vperm.xlu2 %3061, %v1703_v9   ;;  %v1195_v53 = vadd.f32 %v1194_v29, %v1015_v43  ;;  %v2628_v48 = vpop.permute.xlu2 %2627  ;;  %v1707_v37 = vsub.f32 1.0, %v1706_v16  ;;  %v1714_v30 = vand.u32 2147483647, %v4795_v13  ;;  %v1716_v49 = vand.u32 2147483648, %v4795_v13  ;;  %v1016_v13 = vld [vmem:[%s5989_s4 + $0x190] sm:$0xff] }
 0x383   : > { %v2178_v24 = vsel %vm2177_vm7, %v4830_v45, %v2174_v26  ;;  %v2809_v20 = vmul.f32 %v3320_v38, %v2628_v48  ;;  %v1101_v41 = vpop.f32.mrf.mxu0  ;;  %v2186_v42 = vmul.f32 %v4878_v23, %v4832_v22  ;;  %vm1711_vm9 = vweird.f32 %v4857_v28  ;;  %v3323_v48 = vld [vmem:[%s3438_s23 + $0x100] sm:$0xff]  ;;  %v1017_v38 = vld [vmem:[%s5989_s4 + $0x198] sm:$0xff] }
 0x384   : > { %v3192_v50 = vpop.eup %3191  ;;  %v2183_v55 = vsel %vm4900_vm6, %v2182_v57, %v2178_v24  ;;  %v3016_v3 = vmul.f32 -1.442695, %v1195_v53  ;;  %v1708_v56 = vmul.f32 %v4857_v28, %v1707_v37  ;;  %v2458_v54 = vpop.permute.xlu1 %2457  ;;  %vm4932_vm10 = vcmp.eq.f32.partialorder %v1714_v30, 8.507059e+37  ;;  %vm1712_vm11 = vmor %vm1710_vm8, %vm1711_vm9 }
 0x385   : > { %v4926_v45 = vpop.eup %3193  ;;  %v4928_v12 = vadd.f32 1.0, %v3192_v50  ;;  %2682 = vperm.xlu0 %3062, %v2183_v55   ;;  %2873 = vst.msk [vmem:[%s4827_s22 + $0x110] sm:$0xff] %vm289_vm0, %v2809_v20  ;;  %v1102_v27 = vadd.f32 %v1101_v41, %v984_v31  ;;  %v2775_v33 = vmul.f32 %v3321_v6, %v2458_v54  ;;  %v1717_v14 = vor.u32 1.1754944e-38, %v1716_v49 }
 0x386   : > { %v3196_v32 = vpop.eup %3195  ;;  %3199 = vpow2.f32 %v3016_v3  ;;  %v1709_v8 = vadd.f32 %v4857_v28, %v1708_v56  ;;  %v2187_v62 = vsub.f32 1.0, %v2186_v42  ;;  %vm2190_vm12 = vweird.f32 %v4832_v22 }
 0x387   : > { %v4938_v4 = vpop.eup %3197  ;;  %3201 = vrcp.f32 %v4928_v12  ;;  %v2985_v60 = vmul.f32 -1.442695, %v1102_v27  ;;  %2839 = vst.msk [vmem:[%s4827_s22] sm:$0xff] %vm289_vm0, %v2775_v33  ;;  %vm2191_vm13 = vweird.f32 %v4878_v23  ;;  %v2194_v51 = vand.u32 2147483647, %v4832_v22  ;;  %v986_v27 = vld [vmem:[%s5989_s4 + $0xa0] sm:$0xff] }
 0x388   : > { %v1713_v2 = vsel %vm1712_vm11, %v4857_v28, %v1709_v8  ;;  %v2188_v34 = vmul.f32 %v4878_v23, %v2187_v62  ;;  %v2196_v19 = vand.u32 2147483648, %v4832_v22  ;;  %v4956_v36 = vadd.f32 1.0, %v3196_v32  ;;  %v985_v28 = vld [vmem:[%s5989_s4 + $0x98] sm:$0xff]  ;;  %vm4975_vm1 = vmor %vm2190_vm12, %vm2191_vm13  ;;  %v3324_v33 = vld [vmem:[%s3438_s23 + $0x108] sm:$0xff] }
 0x389   : > { %v1718_v11 = vsel %vm4932_vm10, %v1717_v14, %v1713_v2  ;;  %v1197_v7 = vpop.f32.mrf.mxu2  ;;  %v1721_v5 = vmul.f32 %v4885_v1, %v4844_v59  ;;  %vm1725_vm14 = vweird.f32 %v4844_v59  ;;  %3203 = vpow2.f32 %v2985_v60 }
 0x38a   : > { %2527 = vperm.xlu1 %3060, %v1718_v11   ;;  %v2189_v39 = vadd.f32 %v4878_v23, %v2188_v34  ;;  %vm4967_vm15 = vcmp.eq.f32.partialorder %v2194_v51, 8.507059e+37  ;;  %v2197_v46 = vor.u32 1.1754944e-38, %v2196_v19  ;;  %v2473_v61 = vpop.permute.xlu2 %2472  ;;  %v1198_v63 = vadd.f32 %v1197_v7, %v1016_v13 }
 0x38b   : > { %v1722_v25 = vsub.f32 1.0, %v1721_v5  ;;  %vm1726_vm2 = vweird.f32 %v4885_v1  ;;  %v1729_v10 = vand.u32 2147483647, %v4844_v59  ;;  %v1104_v47 = vpop.f32.mrf.mxu0  ;;  %v1731_v22 = vand.u32 2147483648, %v4844_v59 }
 0x38c   : > { %v3200_v17 = vpop.eup %3199  ;;  %v2193_v15 = vsel %vm4975_vm1, %v4878_v23, %v2189_v39  ;;  %v2778_v43 = vmul.f32 %v3322_v18, %v2473_v61  ;;  %v1105_v44 = vadd.f32 %v1104_v47, %v985_v28  ;;  %v2618_v21 = vpop.permute.xlu1 %2617  ;;  %v3017_v57 = vmul.f32 -1.442695, %v1198_v63  ;;  %vm1727_vm4 = vmor %vm1725_vm14, %vm1726_vm2  ;;  %v3325_v28 = vld [vmem:[%s3438_s23 + $0x28] sm:$0xff] }
 0x38d   : > { %v4986_v16 = vpop.eup %3201  ;;  %v4988_v9 = vadd.f32 1.0, %v3200_v17  ;;  %v2198_v26 = vsel %vm4967_vm15, %v2197_v46, %v2193_v15  ;;  %v1723_v29 = vmul.f32 %v4885_v1, %v1722_v25  ;;  %3205 = vrcp.f32 %v4956_v36  ;;  %v1018_v15 = vld [vmem:[%s5989_s4 + $0x1a0] sm:$0xff] }
 0x38e   : > { %2687 = vperm.xlu2 %3061, %v2198_v26   ;;  %vm4994_vm3 = vcmp.eq.f32.partialorder %v1729_v10, 8.507059e+37  ;;  %2842 = vst.msk [vmem:[%s4827_s22 + $0x18] sm:$0xff] %vm289_vm0, %v2778_v43  ;;  %v2986_v53 = vmul.f32 -1.442695, %v1105_v44  ;;  %v2807_v37 = vmul.f32 %v3323_v48, %v2618_v21  ;;  %v1732_v31 = vor.u32 1.1754944e-38, %v1731_v22 }
 0x38f   : > { %3207 = vrcp.f32 %v4988_v9  ;;  %v1724_v30 = vadd.f32 %v4885_v1, %v1723_v29  ;;  %v2201_v24 = vmul.f32 %v4926_v45, %v4880_v40  ;;  %v3204_v20 = vpop.eup %3203  ;;  %vm2205_vm5 = vweird.f32 %v4880_v40 }
 0x390   : > { %3209 = vpow2.f32 %v3017_v57  ;;  %2871 = vst.msk [vmem:[%s4827_s22 + $0x100] sm:$0xff] %vm289_vm0, %v2807_v37  ;;  %v2209_v49 = vand.u32 2147483647, %v4880_v40  ;;  %v2211_v41 = vand.u32 2147483648, %v4880_v40  ;;  %v5017_v42 = vadd.f32 1.0, %v3204_v20 }
 0x391   : > { %v1728_v50 = vsel %vm1727_vm4, %v4885_v1, %v1724_v30  ;;  %3211 = vpow2.f32 %v2986_v53  ;;  %v2202_v55 = vsub.f32 1.0, %v2201_v24  ;;  %v1200_v3 = vpop.f32.mrf.mxu2  ;;  %vm2206_vm6 = vweird.f32 %v4926_v45  ;;  %v3326_v53 = vld [vmem:[%s3438_s23 + $0x10] sm:$0xff] }
 0x392   : > { %v1733_v59 = vsel %vm4994_vm3, %v1732_v31, %v1728_v50  ;;  %vm5023_vm7 = vcmp.eq.f32.partialorder %v2209_v49, 8.507059e+37  ;;  %v1201_v54 = vadd.f32 %v1200_v3, %v1017_v38  ;;  %v2623_v58 = vpop.permute.xlu0 %2622  ;;  %v2212_v6 = vor.u32 1.1754944e-38, %v2211_v41  ;;  %vm2207_vm9 = vmor %vm2205_vm5, %vm2206_vm6  ;;  %v1020_v24 = vld [vmem:[%s5989_s4 + $0x1b0] sm:$0xff] }
 0x393   : > { %2532 = vperm.xlu0 %3062, %v1733_v59   ;;  %v2203_v1 = vmul.f32 %v4926_v45, %v2202_v55  ;;  %v2808_v32 = vmul.f32 %v3324_v33, %v2623_v58  ;;  %v1736_v8 = vmul.f32 %v4938_v4, %v4888_v0  ;;  %v1107_v14 = vpop.f32.mrf.mxu0  ;;  %v5034_v62 = vpop.eup %3205  ;;  %3213 = vrcp.f32 %v5017_v42 }
 0x394   : > { %v3018_v60 = vmul.f32 -1.442695, %v1201_v54  ;;  %vm1740_vm8 = vweird.f32 %v4888_v0  ;;  %v1744_v2 = vand.u32 2147483647, %v4888_v0  ;;  %v1746_v13 = vand.u32 2147483648, %v4888_v0 }
 0x395   : > { %v5039_v34 = vpop.eup %3207  ;;  %v2204_v51 = vadd.f32 %v4926_v45, %v2203_v1  ;;  %2872 = vst.msk [vmem:[%s4827_s22 + $0x108] sm:$0xff] %vm289_vm0, %v2808_v32  ;;  %v1737_v19 = vsub.f32 1.0, %v1736_v8  ;;  %v1108_v11 = vadd.f32 %v1107_v14, %v986_v27  ;;  %v2483_v7 = vpop.permute.xlu2 %2482  ;;  %vm1741_vm10 = vweird.f32 %v4938_v4  ;;  %v3327_v27 = vld [vmem:[%s3438_s23 + $0x128] sm:$0xff] }
 0x396   : > { %v3210_v5 = vpop.eup %3209  ;;  %3215 = vpow2.f32 %v3018_v60  ;;  %v2780_v39 = vmul.f32 %v3325_v28, %v2483_v7  ;;  %v2216_v35 = vmul.f32 %v4986_v16, %v4928_v12  ;;  %vm5057_vm11 = vcmp.eq.f32.partialorder %v1744_v2, 8.507059e+37  ;;  %vm1742_vm13 = vmor %vm1740_vm8, %vm1741_vm10 }
 0x397   : > { %v3212_v46 = vpop.eup %3211  ;;  %v5053_v61 = vadd.f32 1.0, %v3210_v5  ;;  %v2208_v52 = vsel %vm2207_vm9, %v4926_v45, %v2204_v51  ;;  %v1738_v63 = vmul.f32 %v4938_v4, %v1737_v19  ;;  %v2987_v47 = vmul.f32 -1.442695, %v1108_v11 }
 0x398   : > { %v5061_v40 = vadd.f32 1.0, %v3212_v46  ;;  %v2213_v10 = vsel %vm5023_vm7, %v2212_v6, %v2208_v52  ;;  %2844 = vst.msk [vmem:[%s4827_s22 + $0x28] sm:$0xff] %vm289_vm0, %v2780_v39  ;;  %v2217_v17 = vsub.f32 1.0, %v2216_v35  ;;  %v1747_v22 = vor.u32 1.1754944e-38, %v1746_v13  ;;  %v1019_v6 = vld [vmem:[%s5989_s4 + $0x1a8] sm:$0xff] }
 0x399   : > { %3217 = vrcp.f32 %v5053_v61  ;;  %2692 = vperm.xlu1 %3060, %v2213_v10   ;;  %v1739_v45 = vadd.f32 %v4938_v4, %v1738_v63  ;;  %vm2220_vm12 = vweird.f32 %v4928_v12  ;;  %v1203_v18 = vpop.f32.mrf.mxu2  ;;  %v5073_v43 = vpop.eup %3213  ;;  %vm2221_vm14 = vweird.f32 %v4986_v16 }
 0x39a   : > { %v2218_v44 = vmul.f32 %v4986_v16, %v2217_v17  ;;  %v2224_v21 = vand.u32 2147483647, %v4928_v12  ;;  %v2226_v26 = vand.u32 2147483648, %v4928_v12  ;;  %v2468_v57 = vpop.permute.xlu0 %2467  ;;  %3219 = vpow2.f32 %v2987_v47  ;;  %vm2222_vm1 = vmor %vm2220_vm12, %vm2221_vm14 }
 0x39b   : > { %v1743_v29 = vsel %vm1742_vm13, %v4938_v4, %v1739_v45  ;;  %v1204_v23 = vadd.f32 %v1203_v18, %v1018_v15  ;;  %v2777_v48 = vmul.f32 %v3326_v53, %v2468_v57  ;;  %v1110_v37 = vpop.f32.mrf.mxu0  ;;  %3221 = vrcp.f32 %v5061_v40  ;;  %v987_v4 = vld [vmem:[%s5989_s4 + $0xa8] sm:$0xff] }
 0x39c   : > { %v3216_v30 = vpop.eup %3215  ;;  %v1748_v0 = vsel %vm5057_vm11, %v1747_v22, %v1743_v29  ;;  %v2219_v31 = vadd.f32 %v4986_v16, %v2218_v44  ;;  %vm5089_vm15 = vcmp.eq.f32.partialorder %v2224_v21, 8.507059e+37  ;;  %v2227_v20 = vor.u32 1.1754944e-38, %v2226_v26 }
 0x39d   : > { %v5096_v38 = vadd.f32 1.0, %v3216_v30  ;;  %2537 = vperm.xlu2 %3061, %v1748_v0   ;;  %v3019_v49 = vmul.f32 -1.442695, %v1204_v23  ;;  %2841 = vst.msk [vmem:[%s4827_s22 + $0x10] sm:$0xff] %vm289_vm0, %v2777_v48  ;;  %v1751_v41 = vmul.f32 %v5034_v62, %v4956_v36  ;;  %v2643_v50 = vpop.permute.xlu2 %2642  ;;  %vm1755_vm2 = vweird.f32 %v4956_v36  ;;  %v3328_v23 = vld [vmem:[%s3438_s23 + $0x118] sm:$0xff] }
 0x39e   : > { %v2223_v55 = vsel %vm2222_vm1, %v4986_v16, %v2219_v31  ;;  %v1759_v3 = vand.u32 2147483647, %v4956_v36  ;;  %v1761_v59 = vand.u32 2147483648, %v4956_v36  ;;  %v1111_v58 = vadd.f32 %v1110_v37, %v987_v4  ;;  %v988_v36 = vld [vmem:[%s5989_s4 + $0xb0] sm:$0xff]  ;;  %v3329_v0 = vld [vmem:[%s3438_s23 + $0x38] sm:$0xff] }
 0x39f   : > { %v5110_v56 = vpop.eup %3217  ;;  %3223 = vrcp.f32 %v5096_v38  ;;  %v2228_v12 = vsel %vm5089_vm15, %v2227_v20, %v2223_v55  ;;  %v1752_v54 = vsub.f32 1.0, %v1751_v41  ;;  %vm1756_vm3 = vweird.f32 %v5034_v62 }
 0x3a0   : > { %2697 = vperm.xlu0 %3062, %v2228_v12   ;;  %3225 = vpow2.f32 %v3019_v49  ;;  %vm5116_vm4 = vcmp.eq.f32.partialorder %v1759_v3, 8.507059e+37  ;;  %v2812_v1 = vmul.f32 %v3327_v27, %v2643_v50  ;;  %v3220_v33 = vpop.eup %3219  ;;  %v1762_v8 = vor.u32 1.1754944e-38, %v1761_v59  ;;  %vm1757_vm6 = vmor %vm1755_vm2, %vm1756_vm3 }
 0x3a1   : > { %v1753_v32 = vmul.f32 %v5034_v62, %v1752_v54  ;;  %v2988_v14 = vmul.f32 -1.442695, %v1111_v58  ;;  %v2231_v60 = vmul.f32 %v5039_v34, %v4988_v9  ;;  %v1206_v2 = vpop.f32.mrf.mxu2  ;;  %v5127_v51 = vpop.eup %3221  ;;  %v5129_v19 = vadd.f32 1.0, %v3220_v33 }
 0x3a2   : > { %2876 = vst.msk [vmem:[%s4827_s22 + $0x128] sm:$0xff] %vm289_vm0, %v2812_v1  ;;  %vm2235_vm5 = vweird.f32 %v4988_v9  ;;  %v2239_v13 = vand.u32 2147483647, %v4988_v9  ;;  %v2241_v11 = vand.u32 2147483648, %v4988_v9  ;;  %v1207_v28 = vadd.f32 %v1206_v2, %v1019_v6  ;;  %v989_v2 = vld [vmem:[%s5989_s4 + $0xb8] sm:$0xff] }
 0x3a3   : > { %v1754_v7 = vadd.f32 %v5034_v62, %v1753_v32  ;;  %3227 = vpow2.f32 %v2988_v14  ;;  %v2232_v5 = vsub.f32 1.0, %v2231_v60  ;;  %v2633_v39 = vpop.permute.xlu1 %2632  ;;  %v1113_v35 = vpop.f32.mrf.mxu0  ;;  %vm2236_vm7 = vweird.f32 %v5039_v34  ;;  %v3330_v14 = vld [vmem:[%s3438_s23 + $0x120] sm:$0xff] }
 0x3a4   : > { %3229 = vrcp.f32 %v5129_v19  ;;  %vm5143_vm8 = vcmp.eq.f32.partialorder %v2239_v13, 8.507059e+37  ;;  %v1766_v52 = vmul.f32 %v5073_v43, %v5017_v42  ;;  %v2242_v47 = vor.u32 1.1754944e-38, %v2241_v11  ;;  %vm5168_vm10 = vmor %vm2235_vm5, %vm2236_vm7 }
 0x3a5   : > { %v5149_v63 = vpop.eup %3223  ;;  %v1758_v25 = vsel %vm1757_vm6, %v5034_v62, %v1754_v7  ;;  %v2233_v10 = vmul.f32 %v5039_v34, %v2232_v5  ;;  %v3020_v17 = vmul.f32 -1.442695, %v1207_v28  ;;  %vm1770_vm9 = vweird.f32 %v5017_v42  ;;  %v2493_v44 = vpop.permute.xlu2 %2492 }
 0x3a6   : > { %v3226_v15 = vpop.eup %3225  ;;  %v1763_v45 = vsel %vm5116_vm4, %v1762_v8, %v1758_v25  ;;  %v1767_v22 = vsub.f32 1.0, %v1766_v52  ;;  %v1774_v18 = vand.u32 2147483647, %v5017_v42  ;;  %v1776_v26 = vand.u32 2147483648, %v5017_v42 }
 0x3a7   : > { %v5160_v62 = vadd.f32 1.0, %v3226_v15  ;;  %2542 = vperm.xlu1 %3060, %v1763_v45   ;;  %v2234_v21 = vadd.f32 %v5039_v34, %v2233_v10  ;;  %3231 = vpow2.f32 %v3020_v17  ;;  %vm1771_vm11 = vweird.f32 %v5073_v43 }
 0x3a8   : > { %v1768_v29 = vmul.f32 %v5073_v43, %v1767_v22  ;;  %v2810_v53 = vmul.f32 %v3328_v23, %v2633_v39  ;;  %v1114_v48 = vadd.f32 %v1113_v35, %v988_v36  ;;  %vm5179_vm12 = vcmp.eq.f32.partialorder %v1774_v18, 8.507059e+37  ;;  %vm1772_vm13 = vmor %vm1770_vm9, %vm1771_vm11  ;;  %v3331_v35 = vld [vmem:[%s3438_s23 + $0x20] sm:$0xff]  ;;  %v1021_v22 = vld [vmem:[%s5989_s4 + $0x1b8] sm:$0xff] }
 0x3a9   : > { %v3228_v37 = vpop.eup %3227  ;;  %3233 = vrcp.f32 %v5160_v62  ;;  %v2238_v9 = vsel %vm5168_vm10, %v5039_v34, %v2234_v21  ;;  %v2782_v31 = vmul.f32 %v3329_v0, %v2493_v44  ;;  %v1209_v4 = vpop.f32.mrf.mxu2  ;;  %v1777_v55 = vor.u32 1.1754944e-38, %v1776_v26 }
 0x3aa   : > { %v5187_v20 = vpop.eup %3229  ;;  %v5189_v49 = vadd.f32 1.0, %v3228_v37  ;;  %v2243_v41 = vsel %vm5143_vm8, %v2242_v47, %v2238_v9  ;;  %v1769_v34 = vadd.f32 %v5073_v43, %v1768_v29  ;;  %2874 = vst.msk [vmem:[%s4827_s22 + $0x118] sm:$0xff] %vm289_vm0, %v2810_v53  ;;  %v2989_v50 = vmul.f32 -1.442695, %v1114_v48  ;;  %v2638_v12 = vpop.permute.xlu0 %2637 }
 0x3ab   : > { %2702 = vperm.xlu2 %3061, %v2243_v41   ;;  %2846 = vst.msk [vmem:[%s4827_s22 + $0x38] sm:$0xff] %vm289_vm0, %v2782_v31  ;;  %v2246_v3 = vmul.f32 %v5110_v56, %v5053_v61  ;;  %vm2250_vm14 = vweird.f32 %v5053_v61  ;;  %v2254_v59 = vand.u32 2147483647, %v5053_v61  ;;  %v1116_v54 = vpop.f32.mrf.mxu0  ;;  %v2256_v42 = vand.u32 2147483648, %v5053_v61  ;;  %v2478_v33 = vpop.permute.xlu1 %2477  ;;  %v3332_v31 = vld [vmem:[%s3438_s23 + $0x140] sm:$0xff] }
 0x3ac   : > { %3235 = vrcp.f32 %v5189_v49  ;;  %v1773_v58 = vsel %vm1772_vm13, %v5073_v43, %v1769_v34  ;;  %v1210_v16 = vadd.f32 %v1209_v4, %v1020_v24  ;;  %vm2251_vm15 = vweird.f32 %v5110_v56 }
 0x3ad   : > { %v3232_v27 = vpop.eup %3231  ;;  %v1778_v1 = vsel %vm5179_vm12, %v1777_v55, %v1773_v58  ;;  %3237 = vpow2.f32 %v2989_v50  ;;  %v2247_v6 = vsub.f32 1.0, %v2246_v3  ;;  %vm5214_vm1 = vcmp.eq.f32.partialorder %v2254_v59, 8.507059e+37  ;;  %vm2252_vm4 = vmor %vm2250_vm14, %vm2251_vm15 }
 0x3ae   : > { %v5212_v32 = vadd.f32 1.0, %v3232_v27  ;;  %2547 = vperm.xlu0 %3062, %v1778_v1   ;;  %v3021_v43 = vmul.f32 -1.442695, %v1210_v16  ;;  %v2811_v60 = vmul.f32 %v3330_v14, %v2638_v12  ;;  %v2257_v7 = vor.u32 1.1754944e-38, %v2256_v42 }
 0x3af   : > { %v5222_v13 = vpop.eup %3233  ;;  %v2248_v11 = vmul.f32 %v5110_v56, %v2247_v6  ;;  %v1781_v5 = vmul.f32 %v5127_v51, %v5061_v40  ;;  %vm1785_vm2 = vweird.f32 %v5061_v40  ;;  %vm1786_vm3 = vweird.f32 %v5127_v51 }
 0x3b0   : > { %2875 = vst.msk [vmem:[%s4827_s22 + $0x120] sm:$0xff] %vm289_vm0, %v2811_v60  ;;  %v1789_v28 = vand.u32 2147483647, %v5061_v40  ;;  %v1791_v39 = vand.u32 2147483648, %v5061_v40  ;;  %v2779_v46 = vmul.f32 %v3331_v35, %v2478_v33  ;;  %3239 = vpow2.f32 %v3021_v43  ;;  %vm1787_vm7 = vmor %vm1785_vm2, %vm1786_vm3  ;;  %v990_v40 = vld [vmem:[%s5989_s4 + $0xc0] sm:$0xff]  ;;  %v3333_v43 = vld [vmem:[%s3438_s23 + $0x30] sm:$0xff] }
 0x3b1   : > { %v2249_v52 = vadd.f32 %v5110_v56, %v2248_v11  ;;  %v1782_v25 = vsub.f32 1.0, %v1781_v5  ;;  %v1117_v10 = vadd.f32 %v1116_v54, %v989_v2  ;;  %v1212_v47 = vpop.f32.mrf.mxu2  ;;  %3241 = vrcp.f32 %v5212_v32 }
 0x3b2   : > { %v5235_v17 = vpop.eup %3235  ;;  %vm5242_vm5 = vcmp.eq.f32.partialorder %v1789_v28, 8.507059e+37  ;;  %v1792_v15 = vor.u32 1.1754944e-38, %v1791_v39  ;;  %2843 = vst.msk [vmem:[%s4827_s22 + $0x20] sm:$0xff] %vm289_vm0, %v2779_v46  ;;  %v2261_v45 = vmul.f32 %v5149_v63, %v5096_v38  ;;  %vm2265_vm6 = vweird.f32 %v5096_v38  ;;  %v2658_v26 = vpop.permute.xlu2 %2657 }
 0x3b3   : > { %v3238_v18 = vpop.eup %3237  ;;  %v2253_v44 = vsel %vm2252_vm4, %v5110_v56, %v2249_v52  ;;  %v1783_v61 = vmul.f32 %v5127_v51, %v1782_v25  ;;  %v2990_v21 = vmul.f32 -1.442695, %v1117_v10  ;;  %v1119_v57 = vpop.f32.mrf.mxu0  ;;  %v2269_v48 = vand.u32 2147483647, %v5096_v38 }
 0x3b4   : > { %v5256_v29 = vadd.f32 1.0, %v3238_v18  ;;  %v2258_v23 = vsel %vm5214_vm1, %v2257_v7, %v2253_v44  ;;  %v2262_v53 = vsub.f32 1.0, %v2261_v45  ;;  %v2271_v56 = vand.u32 2147483648, %v5096_v38  ;;  %v992_v7 = vld [vmem:[%s5989_s4 + $0xd0] sm:$0xff] }
 0x3b5   : > { %2707 = vperm.xlu1 %3060, %v2258_v23   ;;  %v1784_v37 = vadd.f32 %v5127_v51, %v1783_v61  ;;  %3243 = vpow2.f32 %v2990_v21  ;;  %v1213_v9 = vadd.f32 %v1212_v47, %v1021_v22  ;;  %v2488_v30 = vpop.permute.xlu1 %2487  ;;  %vm2266_vm8 = vweird.f32 %v5149_v63 }
 0x3b6   : > { %3245 = vrcp.f32 %v5256_v29  ;;  %v2263_v0 = vmul.f32 %v5149_v63, %v2262_v53  ;;  %v2815_v24 = vmul.f32 %v3332_v31, %v2658_v26  ;;  %v3240_v4 = vpop.eup %3239  ;;  %vm5272_vm9 = vcmp.eq.f32.partialorder %v2269_v48, 8.507059e+37  ;;  %vm2267_vm10 = vmor %vm2265_vm6, %vm2266_vm8 }
 0x3b7   : > { %v1788_v41 = vsel %vm1787_vm7, %v5127_v51, %v1784_v37  ;;  %v3022_v50 = vmul.f32 -1.442695, %v1213_v9  ;;  %v1796_v55 = vmul.f32 %v5187_v20, %v5129_v19  ;;  %v5281_v3 = vpop.eup %3241  ;;  %v5283_v59 = vadd.f32 1.0, %v3240_v4 }
 0x3b8   : > { %v1793_v12 = vsel %vm5242_vm5, %v1792_v15, %v1788_v41  ;;  %v2264_v51 = vadd.f32 %v5149_v63, %v2263_v0  ;;  %v2272_v54 = vor.u32 1.1754944e-38, %v2271_v56  ;;  %2879 = vst.msk [vmem:[%s4827_s22 + $0x140] sm:$0xff] %vm289_vm0, %v2815_v24  ;;  %vm1800_vm11 = vweird.f32 %v5129_v19  ;;  %v3334_v0 = vld [vmem:[%s3438_s23 + $0x50] sm:$0xff] }
 0x3b9   : > { %2552 = vperm.xlu2 %3061, %v1793_v12   ;;  %3247 = vpow2.f32 %v3022_v50  ;;  %v1797_v58 = vsub.f32 1.0, %v1796_v55  ;;  %v1804_v42 = vand.u32 2147483647, %v5129_v19  ;;  %v1215_v16 = vpop.f32.mrf.mxu2  ;;  %vm1801_vm12 = vweird.f32 %v5187_v20 }
 0x3ba   : > { %v2268_v27 = vsel %vm2267_vm10, %v5149_v63, %v2264_v51  ;;  %v1806_v1 = vand.u32 2147483648, %v5129_v19  ;;  %v1120_v6 = vadd.f32 %v1119_v57, %v990_v40  ;;  %3249 = vrcp.f32 %v5283_v59  ;;  %v1022_v63 = vld [vmem:[%s5989_s4 + $0x1c0] sm:$0xff]  ;;  %vm1802_vm15 = vmor %vm1800_vm11, %vm1801_vm12 }
 0x3bb   : > { %v3244_v33 = vpop.eup %3243  ;;  %v2273_v38 = vsel %vm5272_vm9, %v2272_v54, %v2268_v27  ;;  %v1798_v8 = vmul.f32 %v5187_v20, %v1797_v58  ;;  %v2781_v14 = vmul.f32 %v3333_v43, %v2488_v30  ;;  %v1122_v60 = vpop.f32.mrf.mxu0  ;;  %vm5311_vm13 = vcmp.eq.f32.partialorder %v1804_v42, 8.507059e+37  ;;  %v1023_v54 = vld [vmem:[%s5989_s4 + $0x1c8] sm:$0xff] }
 0x3bc   : > { %v5307_v2 = vpop.eup %3245  ;;  %v5309_v11 = vadd.f32 1.0, %v3244_v33  ;;  %2712 = vperm.xlu0 %3062, %v2273_v38   ;;  %v2991_v5 = vmul.f32 -1.442695, %v1120_v6  ;;  %v2276_v28 = vmul.f32 %v5222_v13, %v5160_v62  ;;  %v1807_v35 = vor.u32 1.1754944e-38, %v1806_v1 }
 0x3bd   : > { %v1799_v39 = vadd.f32 %v5187_v20, %v1798_v8  ;;  %2845 = vst.msk [vmem:[%s4827_s22 + $0x30] sm:$0xff] %vm289_vm0, %v2781_v14  ;;  %vm2280_vm14 = vweird.f32 %v5160_v62  ;;  %v2284_v46 = vand.u32 2147483647, %v5160_v62  ;;  %v2286_v25 = vand.u32 2147483648, %v5160_v62  ;;  %v2648_v45 = vpop.permute.xlu1 %2647  ;;  %v3335_v62 = vld [vmem:[%s3438_s23 + $0x130] sm:$0xff] }
 0x3be   : > { %3251 = vrcp.f32 %v5309_v11  ;;  %v2277_v52 = vsub.f32 1.0, %v2276_v28  ;;  %v1216_v10 = vadd.f32 %v1215_v16, %v1022_v63  ;;  %vm2281_vm1 = vweird.f32 %v5222_v13 }
 0x3bf   : > { %v3248_v47 = vpop.eup %3247  ;;  %v1803_v36 = vsel %vm1802_vm15, %v5187_v20, %v1799_v39  ;;  %3253 = vpow2.f32 %v2991_v5  ;;  %v1811_v15 = vmul.f32 %v5235_v17, %v5189_v49  ;;  %vm5337_vm2 = vcmp.eq.f32.partialorder %v2284_v46, 8.507059e+37  ;;  %v991_v20 = vld [vmem:[%s5989_s4 + $0xc8] sm:$0xff]  ;;  %v2508_v61 = vpop.permute.xlu2 %2507  ;;  %vm2282_vm5 = vmor %vm2280_vm14, %vm2281_vm1 }
 0x3c0   : > { %v5332_v22 = vadd.f32 1.0, %v3248_v47  ;;  %v1808_v19 = vsel %vm5311_vm13, %v1807_v35, %v1803_v36  ;;  %v2278_v18 = vmul.f32 %v5222_v13, %v2277_v52  ;;  %v5344_v21 = vpop.eup %3249  ;;  %v2287_v26 = vor.u32 1.1754944e-38, %v2286_v25 }
 0x3c1   : > { %2557 = vperm.xlu1 %3060, %v1808_v19   ;;  %v3023_v57 = vmul.f32 -1.442695, %v1216_v10  ;;  %v1812_v23 = vsub.f32 1.0, %v1811_v15  ;;  %vm1815_vm3 = vweird.f32 %v5189_v49  ;;  %v1218_v53 = vpop.f32.mrf.mxu2  ;;  %vm1816_vm4 = vweird.f32 %v5235_v17 }
 0x3c2   : > { %v2279_v48 = vadd.f32 %v5222_v13, %v2278_v18  ;;  %v1819_v37 = vand.u32 2147483647, %v5189_v49  ;;  %v1821_v56 = vand.u32 2147483648, %v5189_v49  ;;  %v1123_v30 = vadd.f32 %v1122_v60, %v991_v20  ;;  %vm1817_vm7 = vmor %vm1815_vm3, %vm1816_vm4 }
 0x3c3   : > { %3255 = vpow2.f32 %v3023_v57  ;;  %v1813_v9 = vmul.f32 %v5235_v17, %v1812_v23  ;;  %v2785_v31 = vmul.f32 %v3334_v0, %v2508_v61  ;;  %v2813_v34 = vmul.f32 %v3335_v62, %v2648_v45  ;;  %v1125_v50 = vpop.f32.mrf.mxu0  ;;  %v3337_v45 = vld [vmem:[%s3438_s23 + $0x40] sm:$0xff] }
 0x3c4   : > { %v5357_v24 = vpop.eup %3251  ;;  %3257 = vrcp.f32 %v5332_v22  ;;  %v2283_v4 = vsel %vm2282_vm5, %v5222_v13, %v2279_v48  ;;  %vm5361_vm6 = vcmp.eq.f32.partialorder %v1819_v37, 8.507059e+37  ;;  %v2992_v51 = vmul.f32 -1.442695, %v1123_v30  ;;  %v2653_v27 = vpop.permute.xlu0 %2652 }
 0x3c5   : > { %v3254_v55 = vpop.eup %3253  ;;  %v2288_v40 = vsel %vm5337_vm2, %v2287_v26, %v2283_v4  ;;  %v1814_v12 = vadd.f32 %v5235_v17, %v1813_v9  ;;  %2849 = vst.msk [vmem:[%s4827_s22 + $0x50] sm:$0xff] %vm289_vm0, %v2785_v31  ;;  %v2291_v13 = vmul.f32 %v5281_v3, %v5212_v32  ;;  %v1822_v42 = vor.u32 1.1754944e-38, %v1821_v56 }
 0x3c6   : > { %v5376_v58 = vadd.f32 1.0, %v3254_v55  ;;  %2717 = vperm.xlu2 %3061, %v2288_v40   ;;  %2877 = vst.msk [vmem:[%s4827_s22 + $0x130] sm:$0xff] %vm289_vm0, %v2813_v34  ;;  %vm2295_vm8 = vweird.f32 %v5212_v32  ;;  %v2299_v16 = vand.u32 2147483647, %v5212_v32  ;;  %3259 = vpow2.f32 %v2992_v51  ;;  %v3338_v34 = vld [vmem:[%s3438_s23 + $0x158] sm:$0xff] }
 0x3c7   : > { %v1818_v1 = vsel %vm1817_vm7, %v5235_v17, %v1814_v12  ;;  %v2292_v6 = vsub.f32 1.0, %v2291_v13  ;;  %v2301_v33 = vand.u32 2147483648, %v5212_v32  ;;  %vm2296_vm9 = vweird.f32 %v5281_v3  ;;  %v3336_v17 = vld [vmem:[%s3438_s23 + $0x138] sm:$0xff]  ;;  %v2498_v5 = vpop.permute.xlu1 %2497  ;;  %v1024_v32 = vld [vmem:[%s5989_s4 + $0x1d0] sm:$0xff] }
 0x3c8   : > { %3261 = vrcp.f32 %v5376_v58  ;;  %v1823_v49 = vsel %vm5361_vm6, %v1822_v42, %v1818_v1  ;;  %v1219_v38 = vadd.f32 %v1218_v53, %v1023_v54  ;;  %vm5393_vm10 = vcmp.eq.f32.partialorder %v2299_v16, 8.507059e+37  ;;  %vm2297_vm12 = vmor %vm2295_vm8, %vm2296_vm9 }
 0x3c9   : > { %v3256_v8 = vpop.eup %3255  ;;  %2562 = vperm.xlu0 %3062, %v1823_v49   ;;  %v2293_v43 = vmul.f32 %v5281_v3, %v2292_v6  ;;  %v2814_v63 = vmul.f32 %v3336_v17, %v2653_v27  ;;  %v1826_v60 = vmul.f32 %v5307_v2, %v5256_v29  ;;  %v1221_v28 = vpop.f32.mrf.mxu2  ;;  %v2302_v46 = vor.u32 1.1754944e-38, %v2301_v33 }
 0x3ca   : > { %v5403_v39 = vpop.eup %3257  ;;  %v5405_v35 = vadd.f32 1.0, %v3256_v8  ;;  %v3024_v52 = vmul.f32 -1.442695, %v1219_v38  ;;  %vm1830_vm11 = vweird.f32 %v5256_v29  ;;  %v1834_v47 = vand.u32 2147483647, %v5256_v29 }
 0x3cb   : > { %v2294_v25 = vadd.f32 %v5281_v3, %v2293_v43  ;;  %2878 = vst.msk [vmem:[%s4827_s22 + $0x138] sm:$0xff] %vm289_vm0, %v2814_v63  ;;  %v1827_v10 = vsub.f32 1.0, %v1826_v60  ;;  %v1836_v36 = vand.u32 2147483648, %v5256_v29  ;;  %v1126_v15 = vadd.f32 %v1125_v50, %v992_v7  ;;  %v1128_v37 = vpop.f32.mrf.mxu0  ;;  %v3339_v43 = vld [vmem:[%s3438_s23 + $0x48] sm:$0xff]  ;;  %v1025_v63 = vld [vmem:[%s5989_s4 + $0x1d8] sm:$0xff] }
 0x3cc   : > { %3263 = vrcp.f32 %v5405_v35  ;;  %v2783_v19 = vmul.f32 %v3337_v45, %v2498_v5  ;;  %v2306_v18 = vmul.f32 %v5344_v21, %v5283_v59  ;;  %v3260_v44 = vpop.eup %3259  ;;  %vm1831_vm13 = vweird.f32 %v5307_v2 }
 0x3cd   : > { %v2298_v20 = vsel %vm2297_vm12, %v5281_v3, %v2294_v25  ;;  %3265 = vpow2.f32 %v3024_v52  ;;  %v1828_v61 = vmul.f32 %v5307_v2, %v1827_v10  ;;  %v5429_v57 = vadd.f32 1.0, %v3260_v44  ;;  %v2673_v48 = vpop.permute.xlu2 %2672  ;;  %vm1832_vm1 = vmor %vm1830_vm11, %vm1831_vm13 }
 0x3ce   : > { %v5427_v26 = vpop.eup %3261  ;;  %v2303_v23 = vsel %vm5393_vm10, %v2302_v46, %v2298_v20  ;;  %vm5433_vm14 = vcmp.eq.f32.partialorder %v1834_v47, 8.507059e+37  ;;  %v2993_v3 = vmul.f32 -1.442695, %v1126_v15  ;;  %2847 = vst.msk [vmem:[%s4827_s22 + $0x40] sm:$0xff] %vm289_vm0, %v2783_v19  ;;  %v1837_v9 = vor.u32 1.1754944e-38, %v1836_v36 }
 0x3cf   : > { %2722 = vperm.xlu1 %3060, %v2303_v23   ;;  %v1829_v56 = vadd.f32 %v5307_v2, %v1828_v61  ;;  %v2307_v30 = vsub.f32 1.0, %v2306_v18  ;;  %vm2310_vm15 = vweird.f32 %v5283_v59  ;;  %vm2311_vm2 = vweird.f32 %v5344_v21  ;;  %v2503_v51 = vpop.permute.xlu0 %2502 }
 0x3d0   : > { %v2314_v0 = vand.u32 2147483647, %v5283_v59  ;;  %v2316_v31 = vand.u32 2147483648, %v5283_v59  ;;  %v1222_v4 = vadd.f32 %v1221_v28, %v1024_v32  ;;  %3267 = vpow2.f32 %v2993_v3  ;;  %vm2312_vm5 = vmor %vm2310_vm15, %vm2311_vm2 }
 0x3d1   : > { %v1833_v41 = vsel %vm1832_vm1, %v5307_v2, %v1829_v56  ;;  %v2308_v62 = vmul.f32 %v5344_v21, %v2307_v30  ;;  %v2818_v50 = vmul.f32 %v3338_v34, %v2673_v48  ;;  %3269 = vrcp.f32 %v5429_v57  ;;  %v993_v2 = vld [vmem:[%s5989_s4 + $0xd8] sm:$0xff]  ;;  %v1224_v27 = vpop.f32.mrf.mxu2 }
 0x3d2   : > { %v5451_v55 = vpop.eup %3263  ;;  %v1838_v29 = vsel %vm5433_vm14, %v1837_v9, %v1833_v41  ;;  %vm5456_vm3 = vcmp.eq.f32.partialorder %v2314_v0, 8.507059e+37  ;;  %v3025_v12 = vmul.f32 -1.442695, %v1222_v4  ;;  %v2317_v42 = vor.u32 1.1754944e-38, %v2316_v31 }
 0x3d3   : > { %v3266_v13 = vpop.eup %3265  ;;  %2567 = vperm.xlu2 %3061, %v1838_v29   ;;  %v2309_v54 = vadd.f32 %v5344_v21, %v2308_v62  ;;  %2882 = vst.msk [vmem:[%s4827_s22 + $0x158] sm:$0xff] %vm289_vm0, %v2818_v50  ;;  %v1841_v16 = vmul.f32 %v5357_v24, %v5309_v11  ;;  %vm1845_vm4 = vweird.f32 %v5309_v11  ;;  %v1849_v6 = vand.u32 2147483647, %v5309_v11  ;;  %v1131_v47 = vpop.f32.mrf.mxu0  ;;  %v3340_v62 = vld [vmem:[%s3438_s23 + $0x148] sm:$0xff] }
 0x3d4   : > { %v5469_v1 = vadd.f32 1.0, %v3266_v13  ;;  %3271 = vpow2.f32 %v3025_v12  ;;  %v1851_v33 = vand.u32 2147483648, %v5309_v11  ;;  %v1129_v8 = vadd.f32 %v1128_v37, %v993_v2  ;;  %v2663_v53 = vpop.permute.xlu1 %2662  ;;  %v994_v11 = vld [vmem:[%s5989_s4 + $0xe0] sm:$0xff]  ;;  %v3341_v12 = vld [vmem:[%s3438_s23 + $0x68] sm:$0xff] }
 0x3d5   : > { %v2313_v49 = vsel %vm2312_vm5, %v5344_v21, %v2309_v54  ;;  %v1842_v38 = vsub.f32 1.0, %v1841_v16  ;;  %v2784_v14 = vmul.f32 %v3339_v43, %v2503_v51  ;;  %vm1846_vm6 = vweird.f32 %v5357_v24  ;;  %v1026_v51 = vld [vmem:[%s5989_s4 + $0x1e0] sm:$0xff] }
 0x3d6   : > { %3273 = vrcp.f32 %v5469_v1  ;;  %v2318_v17 = vsel %vm5456_vm3, %v2317_v42, %v2313_v49  ;;  %vm5483_vm7 = vcmp.eq.f32.partialorder %v1849_v6, 8.507059e+37  ;;  %v3268_v21 = vpop.eup %3267  ;;  %v1852_v7 = vor.u32 1.1754944e-38, %v1851_v33  ;;  %vm1847_vm9 = vmor %vm1845_vm4, %vm1846_vm6 }
 0x3d7   : > { %2727 = vperm.xlu0 %3062, %v2318_v17   ;;  %v1843_v60 = vmul.f32 %v5357_v24, %v1842_v38  ;;  %v2994_v5 = vmul.f32 -1.442695, %v1129_v8  ;;  %2848 = vst.msk [vmem:[%s4827_s22 + $0x48] sm:$0xff] %vm289_vm0, %v2784_v14  ;;  %v2321_v28 = vmul.f32 %v5403_v39, %v5332_v22  ;;  %v5495_v46 = vpop.eup %3269  ;;  %v5497_v52 = vadd.f32 1.0, %v3268_v21 }
 0x3d8   : > { %vm2325_vm8 = vweird.f32 %v5332_v22  ;;  %v2329_v25 = vand.u32 2147483647, %v5332_v22  ;;  %v2331_v10 = vand.u32 2147483648, %v5332_v22  ;;  %v1225_v45 = vadd.f32 %v1224_v27, %v1025_v63 }
 0x3d9   : > { %v1844_v36 = vadd.f32 %v5357_v24, %v1843_v60  ;;  %3275 = vpow2.f32 %v2994_v5  ;;  %v2322_v15 = vsub.f32 1.0, %v2321_v28  ;;  %vm2326_vm10 = vweird.f32 %v5403_v39  ;;  %v1227_v31 = vpop.f32.mrf.mxu2  ;;  %v995_v5 = vld [vmem:[%s5989_s4 + $0xe8] sm:$0xff] }
 0x3da   : > { %v3272_v19 = vpop.eup %3271  ;;  %3277 = vrcp.f32 %v5497_v52  ;;  %vm5509_vm11 = vcmp.eq.f32.partialorder %v2329_v25, 8.507059e+37  ;;  %v1856_v44 = vmul.f32 %v5427_v26, %v5376_v58  ;;  %v3026_v23 = vmul.f32 -1.442695, %v1225_v45  ;;  %vm5535_vm14 = vmor %vm2325_vm8, %vm2326_vm10 }
 0x3db   : > { %v5515_v20 = vadd.f32 1.0, %v3272_v19  ;;  %v1848_v61 = vsel %vm1847_vm9, %v5357_v24, %v1844_v36  ;;  %v2323_v32 = vmul.f32 %v5403_v39, %v2322_v15  ;;  %v2332_v37 = vor.u32 1.1754944e-38, %v2331_v10  ;;  %v1134_v43 = vpop.f32.mrf.mxu0 }
 0x3dc   : > { %v5522_v3 = vpop.eup %3273  ;;  %v1853_v48 = vsel %vm5483_vm7, %v1852_v7, %v1848_v61  ;;  %v1857_v56 = vsub.f32 1.0, %v1856_v44  ;;  %vm1860_vm12 = vweird.f32 %v5376_v58  ;;  %v2523_v9 = vpop.permute.xlu2 %2522  ;;  %vm1861_vm13 = vweird.f32 %v5427_v26  ;;  %v3343_v61 = vld [vmem:[%s3438_s23 + $0x58] sm:$0xff] }
 0x3dd   : > { %2572 = vperm.xlu1 %3060, %v1853_v48   ;;  %v2324_v24 = vadd.f32 %v5403_v39, %v2323_v32  ;;  %v1864_v30 = vand.u32 2147483647, %v5376_v58  ;;  %v1866_v0 = vand.u32 2147483648, %v5376_v58  ;;  %3279 = vpow2.f32 %v3026_v23  ;;  %vm1862_vm1 = vmor %vm1860_vm12, %vm1861_vm13  ;;  %v2668_v49 = vpop.permute.xlu0 %2667 }
 0x3de   : > { %v1858_v41 = vmul.f32 %v5427_v26, %v1857_v56  ;;  %v2816_v34 = vmul.f32 %v3340_v62, %v2663_v53  ;;  %v1132_v50 = vadd.f32 %v1131_v47, %v994_v11  ;;  %3281 = vrcp.f32 %v5515_v20  ;;  %v1027_v56 = vld [vmem:[%s5989_s4 + $0x1e8] sm:$0xff] }
 0x3df   : > { %v3276_v29 = vpop.eup %3275  ;;  %v2328_v40 = vsel %vm5535_vm14, %v5403_v39, %v2324_v24  ;;  %vm5545_vm15 = vcmp.eq.f32.partialorder %v1864_v30, 8.507059e+37  ;;  %v2788_v2 = vmul.f32 %v3341_v12, %v2523_v9  ;;  %v1867_v27 = vor.u32 1.1754944e-38, %v1866_v0  ;;  %v3344_v12 = vld [vmem:[%s3438_s23 + $0x170] sm:$0xff] }
 0x3e0   : > { %v5553_v13 = vpop.eup %3277  ;;  %v5555_v54 = vadd.f32 1.0, %v3276_v29  ;;  %v2333_v42 = vsel %vm5509_vm11, %v2332_v37, %v2328_v40  ;;  %v1859_v16 = vadd.f32 %v5427_v26, %v1858_v41  ;;  %2880 = vst.msk [vmem:[%s4827_s22 + $0x148] sm:$0xff] %vm289_vm0, %v2816_v34  ;;  %v2995_v39 = vmul.f32 -1.442695, %v1132_v50 }
 0x3e1   : > { %2732 = vperm.xlu2 %3061, %v2333_v42   ;;  %2852 = vst.msk [vmem:[%s4827_s22 + $0x68] sm:$0xff] %vm289_vm0, %v2788_v2  ;;  %v2336_v6 = vmul.f32 %v5451_v55, %v5405_v35  ;;  %vm2340_vm2 = vweird.f32 %v5405_v35  ;;  %v2344_v33 = vand.u32 2147483647, %v5405_v35  ;;  %v2346_v8 = vand.u32 2147483648, %v5405_v35  ;;  %v2513_v28 = vpop.permute.xlu1 %2512  ;;  %v1230_v23 = vpop.f32.mrf.mxu2 }
 0x3e2   : > { %3283 = vrcp.f32 %v5555_v54  ;;  %v1863_v38 = vsel %vm1862_vm1, %v5427_v26, %v1859_v16  ;;  %v1228_v58 = vadd.f32 %v1227_v31, %v1026_v51  ;;  %vm2341_vm3 = vweird.f32 %v5451_v55  ;;  %v3342_v26 = vld [vmem:[%s3438_s23 + $0x150] sm:$0xff] }
 0x3e3   : > { %v1868_v14 = vsel %vm5545_vm15, %v1867_v27, %v1863_v38  ;;  %3285 = vpow2.f32 %v2995_v39  ;;  %v2337_v17 = vsub.f32 1.0, %v2336_v6  ;;  %v3280_v59 = vpop.eup %3279  ;;  %vm5578_vm4 = vcmp.eq.f32.partialorder %v2344_v33, 8.507059e+37  ;;  %vm2342_vm7 = vmor %vm2340_vm2, %vm2341_vm3  ;;  %v1137_v51 = vpop.f32.mrf.mxu0 }
 0x3e4   : > { %2577 = vperm.xlu0 %3062, %v1868_v14   ;;  %v3027_v21 = vmul.f32 -1.442695, %v1228_v58  ;;  %v2817_v60 = vmul.f32 %v3342_v26, %v2668_v49  ;;  %v1871_v7 = vmul.f32 %v5495_v46, %v5429_v57  ;;  %v5588_v25 = vpop.eup %3281  ;;  %v5590_v10 = vadd.f32 1.0, %v3280_v59 }
 0x3e5   : > { %v2338_v47 = vmul.f32 %v5451_v55, %v2337_v17  ;;  %v2347_v36 = vor.u32 1.1754944e-38, %v2346_v8  ;;  %vm1875_vm5 = vweird.f32 %v5429_v57  ;;  %v1879_v45 = vand.u32 2147483647, %v5429_v57 }
 0x3e6   : > { %3287 = vpow2.f32 %v3027_v21  ;;  %2881 = vst.msk [vmem:[%s4827_s22 + $0x150] sm:$0xff] %vm289_vm0, %v2817_v60  ;;  %v1872_v15 = vsub.f32 1.0, %v1871_v7  ;;  %v1881_v19 = vand.u32 2147483648, %v5429_v57  ;;  %vm1876_vm6 = vweird.f32 %v5495_v46  ;;  %v3345_v21 = vld [vmem:[%s3438_s23 + $0x60] sm:$0xff] }
 0x3e7   : > { %v2339_v18 = vadd.f32 %v5451_v55, %v2338_v47  ;;  %v1135_v44 = vadd.f32 %v1134_v43, %v995_v5  ;;  %v2786_v32 = vmul.f32 %v3343_v61, %v2513_v28  ;;  %3289 = vrcp.f32 %v5590_v10  ;;  %vm1877_vm10 = vmor %vm1875_vm5, %vm1876_vm6 }
 0x3e8   : > { %v5601_v53 = vpop.eup %3283  ;;  %v1873_v11 = vmul.f32 %v5495_v46, %v1872_v15  ;;  %vm5609_vm8 = vcmp.eq.f32.partialorder %v1879_v45, 8.507059e+37  ;;  %v2351_v37 = vmul.f32 %v5522_v3, %v5469_v1  ;;  %v1882_v30 = vor.u32 1.1754944e-38, %v1881_v19  ;;  %v2688_v35 = vpop.permute.xlu2 %2687 }
 0x3e9   : > { %v3286_v9 = vpop.eup %3285  ;;  %v2343_v24 = vsel %vm2342_vm7, %v5451_v55, %v2339_v18  ;;  %v2996_v0 = vmul.f32 -1.442695, %v1135_v44  ;;  %2850 = vst.msk [vmem:[%s4827_s22 + $0x58] sm:$0xff] %vm289_vm0, %v2786_v32  ;;  %vm2355_vm9 = vweird.f32 %v5469_v1  ;;  %v2359_v55 = vand.u32 2147483647, %v5469_v1  ;;  %v1233_v60 = vpop.f32.mrf.mxu2 }
 0x3ea   : > { %v5622_v31 = vadd.f32 1.0, %v3286_v9  ;;  %v2348_v4 = vsel %vm5578_vm4, %v2347_v36, %v2343_v24  ;;  %v1874_v41 = vadd.f32 %v5495_v46, %v1873_v11  ;;  %v2352_v62 = vsub.f32 1.0, %v2351_v37  ;;  %v2518_v38 = vpop.permute.xlu0 %2517 }
 0x3eb   : > { %2737 = vperm.xlu1 %3060, %v2348_v4   ;;  %3291 = vpow2.f32 %v2996_v0  ;;  %v2361_v34 = vand.u32 2147483648, %v5469_v1  ;;  %v1231_v50 = vadd.f32 %v1230_v23, %v1027_v56  ;;  %vm2356_vm11 = vweird.f32 %v5522_v3  ;;  %v1140_v0 = vpop.f32.mrf.mxu0  ;;  %v3349_v23 = vld [vmem:[%s3438_s23 + $0x70] sm:$0xff] }
 0x3ec   : > { %v3288_v29 = vpop.eup %3287  ;;  %v1878_v40 = vsel %vm1877_vm10, %v5495_v46, %v1874_v41  ;;  %v2353_v22 = vmul.f32 %v5522_v3, %v2352_v62  ;;  %v2821_v2 = vmul.f32 %v3344_v12, %v2688_v35  ;;  %3293 = vrcp.f32 %v5622_v31  ;;  %v996_v46 = vld [vmem:[%s5989_s4 + $0xf0] sm:$0xff]  ;;  %vm2357_vm13 = vmor %vm2355_vm9, %vm2356_vm11 }
 0x3ed   : > { %v5638_v57 = vadd.f32 1.0, %v3288_v29  ;;  %v1883_v42 = vsel %vm5609_vm8, %v1882_v30, %v1878_v40  ;;  %vm5642_vm12 = vcmp.eq.f32.partialorder %v2359_v55, 8.507059e+37  ;;  %v5649_v39 = vpop.eup %3289  ;;  %v2362_v6 = vor.u32 1.1754944e-38, %v2361_v34  ;;  %v2678_v30 = vpop.permute.xlu1 %2677  ;;  %v3346_v29 = vld [vmem:[%s3438_s23 + $0x160] sm:$0xff] }
 0x3ee   : > { %2582 = vperm.xlu2 %3061, %v1883_v42   ;;  %v2354_v27 = vadd.f32 %v5522_v3, %v2353_v22  ;;  %v3028_v33 = vmul.f32 -1.442695, %v1231_v50  ;;  %2885 = vst.msk [vmem:[%s4827_s22 + $0x170] sm:$0xff] %vm289_vm0, %v2821_v2  ;;  %v1886_v49 = vmul.f32 %v5553_v13, %v5497_v52  ;;  %vm1890_vm14 = vweird.f32 %v5497_v52 }
 0x3ef   : > { %3295 = vrcp.f32 %v5638_v57  ;;  %v1894_v8 = vand.u32 2147483647, %v5497_v52  ;;  %v1896_v58 = vand.u32 2147483648, %v5497_v52  ;;  %v1138_v17 = vadd.f32 %v1137_v51, %v996_v46  ;;  %v997_v52 = vld [vmem:[%s5989_s4 + $0xf8] sm:$0xff] }
 0x3f0   : > { %v2358_v43 = vsel %vm2357_vm13, %v5522_v3, %v2354_v27  ;;  %3297 = vpow2.f32 %v3028_v33  ;;  %v1887_v14 = vsub.f32 1.0, %v1886_v49  ;;  %vm1891_vm15 = vweird.f32 %v5553_v13  ;;  %v1028_v3 = vld [vmem:[%s5989_s4 + $0x1f0] sm:$0xff] }
 0x3f1   : > { %v3292_v59 = vpop.eup %3291  ;;  %v2363_v63 = vsel %vm5642_vm12, %v2362_v6, %v2358_v43  ;;  %vm5668_vm1 = vcmp.eq.f32.partialorder %v1894_v8, 8.507059e+37  ;;  %v2787_v26 = vmul.f32 %v3345_v21, %v2518_v38  ;;  %v2997_v28 = vmul.f32 -1.442695, %v1138_v17  ;;  %vm1892_vm3 = vmor %vm1890_vm14, %vm1891_vm15  ;;  %v1236_v49 = vpop.f32.mrf.mxu2 }
 0x3f2   : > { %v5676_v7 = vadd.f32 1.0, %v3292_v59  ;;  %2742 = vperm.xlu0 %3062, %v2363_v63   ;;  %v1888_v5 = vmul.f32 %v5553_v13, %v1887_v14  ;;  %v2366_v47 = vmul.f32 %v5588_v25, %v5515_v20  ;;  %v5681_v36 = vpop.eup %3293  ;;  %v1897_v15 = vor.u32 1.1754944e-38, %v1896_v58 }
 0x3f3   : > { %2851 = vst.msk [vmem:[%s4827_s22 + $0x60] sm:$0xff] %vm289_vm0, %v2787_v26  ;;  %vm2370_vm2 = vweird.f32 %v5515_v20  ;;  %v2374_v45 = vand.u32 2147483647, %v5515_v20  ;;  %v2376_v19 = vand.u32 2147483648, %v5515_v20  ;;  %v1234_v61 = vadd.f32 %v1233_v60, %v1028_v3  ;;  %v3347_v20 = vld [vmem:[%s3438_s23 + $0x80] sm:$0xff]  ;;  %v3348_v3 = vld [vmem:[%s3438_s23 + $0x168] sm:$0xff] }
 0x3f4   : > { %3299 = vrcp.f32 %v5676_v7  ;;  %v1889_v18 = vadd.f32 %v5553_v13, %v1888_v5  ;;  %v2367_v44 = vsub.f32 1.0, %v2366_v47  ;;  %vm2371_vm4 = vweird.f32 %v5588_v25 }
 0x3f5   : > { %v5690_v32 = vpop.eup %3295  ;;  %3301 = vpow2.f32 %v2997_v28  ;;  %vm5697_vm5 = vcmp.eq.f32.partialorder %v2374_v45, 8.507059e+37  ;;  %v1901_v11 = vmul.f32 %v5601_v53, %v5555_v54  ;;  %v2377_v9 = vor.u32 1.1754944e-38, %v2376_v19  ;;  %vm2372_vm7 = vmor %vm2370_vm2, %vm2371_vm4 }
 0x3f6   : > { %v3298_v48 = vpop.eup %3297  ;;  %v1893_v37 = vsel %vm1892_vm3, %v5553_v13, %v1889_v18  ;;  %v2368_v56 = vmul.f32 %v5588_v25, %v2367_v44  ;;  %v3029_v24 = vmul.f32 -1.442695, %v1234_v61  ;;  %vm1905_vm6 = vweird.f32 %v5555_v54 }
 0x3f7   : > { %v5708_v35 = vadd.f32 1.0, %v3298_v48  ;;  %v1898_v4 = vsel %vm5668_vm1, %v1897_v15, %v1893_v37  ;;  %v1902_v41 = vsub.f32 1.0, %v1901_v11  ;;  %v2538_v13 = vpop.permute.xlu2 %2537  ;;  %v1909_v55 = vand.u32 2147483647, %v5555_v54  ;;  %v2683_v43 = vpop.permute.xlu0 %2682 }
 0x3f8   : > { %2587 = vperm.xlu1 %3060, %v1898_v4   ;;  %v2369_v62 = vadd.f32 %v5588_v25, %v2368_v56  ;;  %3303 = vpow2.f32 %v3029_v24  ;;  %v1911_v34 = vand.u32 2147483648, %v5555_v54  ;;  %vm1906_vm8 = vweird.f32 %v5601_v53 }
 0x3f9   : > { %v1903_v50 = vmul.f32 %v5601_v53, %v1902_v41  ;;  %v2819_v40 = vmul.f32 %v3346_v29, %v2678_v30  ;;  %v1141_v22 = vadd.f32 %v1140_v0, %v997_v52  ;;  %3305 = vrcp.f32 %v5708_v35  ;;  %vm1907_vm10 = vmor %vm1905_vm6, %vm1906_vm8 }
 0x3fa   : > { %v5723_v12 = vpop.eup %3299  ;;  %v2373_v2 = vsel %vm2372_vm7, %v5588_v25, %v2369_v62  ;;  %vm5727_vm9 = vcmp.eq.f32.partialorder %v1909_v55, 8.507059e+37  ;;  %v2791_v42 = vmul.f32 %v3347_v20, %v2538_v13  ;;  %v2381_v33 = vmul.f32 %v5649_v39, %v5590_v10  ;;  %v1029_v25 = vld [vmem:[%s5989_s4 + $0x1f8] sm:$0xff] }
 0x3fb   : > { %v3302_v16 = vpop.eup %3301  ;;  %v2378_v46 = vsel %vm5697_vm5, %v2377_v9, %v2373_v2  ;;  %v1904_v27 = vadd.f32 %v5601_v53, %v1903_v50  ;;  %2883 = vst.msk [vmem:[%s4827_s22 + $0x160] sm:$0xff] %vm289_vm0, %v2819_v40  ;;  %v2998_v6 = vmul.f32 -1.442695, %v1141_v22  ;;  %v1912_v8 = vor.u32 1.1754944e-38, %v1911_v34  ;;  %v3350_v50 = vld [vmem:[%s3438_s23 + $0x188] sm:$0xff] }
 0x3fc   : > { %v5742_v38 = vadd.f32 1.0, %v3302_v16  ;;  %2747 = vperm.xlu2 %3061, %v2378_v46   ;;  %2855 = vst.msk [vmem:[%s4827_s22 + $0x80] sm:$0xff] %vm289_vm0, %v2791_v42  ;;  %vm2385_vm11 = vweird.f32 %v5590_v10  ;;  %v2389_v58 = vand.u32 2147483647, %v5590_v10  ;;  %v2382_v17 = vsub.f32 1.0, %v2381_v33  ;;  %v2528_v5 = vpop.permute.xlu1 %2527 }
 0x3fd   : > { %v1908_v14 = vsel %vm1907_vm10, %v5601_v53, %v1904_v27  ;;  %3307 = vpow2.f32 %v2998_v6  ;;  %v2391_v59 = vand.u32 2147483648, %v5590_v10  ;;  %vm2386_vm12 = vweird.f32 %v5649_v39 }
 0x3fe   : > { %v3304_v63 = vpop.eup %3303  ;;  %3309 = vrcp.f32 %v5742_v38  ;;  %v1913_v54 = vsel %vm5727_vm9, %v1912_v8, %v1908_v14  ;;  %v1237_v1 = vadd.f32 %v1236_v49, %v1029_v25  ;;  %v2383_v26 = vmul.f32 %v5649_v39, %v2382_v17  ;;  %vm2387_vm1 = vmor %vm2385_vm11, %vm2386_vm12  ;;  %v3351_v25 = vld [vmem:[%s3438_s23 + $0x78] sm:$0xff] }
 0x3ff   : > { %v5758_v21 = vadd.f32 1.0, %v3304_v63  ;;  %2592 = vperm.xlu0 %3062, %v1913_v54   ;;  %vm5761_vm13 = vcmp.eq.f32.partialorder %v2389_v58, 8.507059e+37  ;;  %v2820_v60 = vmul.f32 %v3348_v3, %v2683_v43  ;;  %v5766_v28 = vpop.eup %3305  ;;  %v2392_v47 = vor.u32 1.1754944e-38, %v2391_v59 }
 0x400   : > { %v3030_v15 = vmul.f32 -1.442695, %v1237_v1  ;;  %v1916_v45 = vmul.f32 %v5681_v36, %v5622_v31  ;;  %vm1920_vm14 = vweird.f32 %v5622_v31  ;;  %v2384_v19 = vadd.f32 %v5649_v39, %v2383_v26  ;;  %v3352_v1 = vld [vmem:[%s3438_s23 + $0x178] sm:$0xff] }
 0x401   : > { %2884 = vst.msk [vmem:[%s4827_s22 + $0x168] sm:$0xff] %vm289_vm0, %v2820_v60  ;;  %vm1921_vm15 = vweird.f32 %v5681_v36  ;;  %v1924_v18 = vand.u32 2147483647, %v5622_v31  ;;  %v1926_v44 = vand.u32 2147483648, %v5622_v31  ;;  %v2789_v11 = vmul.f32 %v3349_v23, %v2528_v5 }
 0x402   : > { %3311 = vpow2.f32 %v3030_v15  ;;  %v1917_v61 = vsub.f32 1.0, %v1916_v45  ;;  %v2396_v48 = vmul.f32 %v5690_v32, %v5638_v57  ;;  %v2388_v56 = vsel %vm2387_vm1, %v5649_v39, %v2384_v19  ;;  %vm1922_vm5 = vmor %vm1920_vm14, %vm1921_vm15 }
 0x403   : > { %v3308_v37 = vpop.eup %3307  ;;  %3313 = vrcp.f32 %v5758_v21  ;;  %vm5786_vm2 = vcmp.eq.f32.partialorder %v1924_v18, 8.507059e+37  ;;  %v1927_v24 = vor.u32 1.1754944e-38, %v1926_v44  ;;  %v2393_v52 = vsel %vm5761_vm13, %v2392_v47, %v2388_v56  ;;  %2853 = vst.msk [vmem:[%s4827_s22 + $0x70] sm:$0xff] %vm289_vm0, %v2789_v11 }
 0x404   : > { %v5790_v10 = vpop.eup %3309  ;;  %v5792_v30 = vadd.f32 1.0, %v3308_v37  ;;  %v1918_v0 = vmul.f32 %v5681_v36, %v1917_v61  ;;  %v2397_v4 = vsub.f32 1.0, %v2396_v48  ;;  %2752 = vperm.xlu1 %3060, %v2393_v52   ;;  %vm2400_vm3 = vweird.f32 %v5638_v57 }
 0x405   : > { %vm2401_vm4 = vweird.f32 %v5690_v32  ;;  %v2406_v39 = vand.u32 2147483648, %v5638_v57  ;;  %v2703_v41 = vpop.permute.xlu2 %2702  ;;  %v1931_v13 = vmul.f32 %v5723_v12, %v5676_v7  ;;  %v2404_v34 = vand.u32 2147483647, %v5638_v57  ;;  %v2533_v2 = vpop.permute.xlu0 %2532 }
 0x406   : > { %v1919_v62 = vadd.f32 %v5681_v36, %v1918_v0  ;;  %v2398_v55 = vmul.f32 %v5690_v32, %v2397_v4  ;;  %v2824_v29 = vmul.f32 %v3350_v50, %v2703_v41  ;;  %3315 = vrcp.f32 %v5792_v30  ;;  %vm2402_vm8 = vmor %vm2400_vm3, %vm2401_vm4 }
 0x407   : > { %v2407_v40 = vor.u32 1.1754944e-38, %v2406_v39  ;;  %v1932_v22 = vsub.f32 1.0, %v1931_v13  ;;  %vm1935_vm6 = vweird.f32 %v5676_v7  ;;  %vm1936_vm7 = vweird.f32 %v5723_v12 }
 0x408   : > { %v3312_v51 = vpop.eup %3311  ;;  %v1923_v20 = vsel %vm1922_vm5, %v5681_v36, %v1919_v62  ;;  %v2399_v42 = vadd.f32 %v5690_v32, %v2398_v55  ;;  %2888 = vst.msk [vmem:[%s4827_s22 + $0x188] sm:$0xff] %vm289_vm0, %v2824_v29  ;;  %v1939_v16 = vand.u32 2147483647, %v5676_v7  ;;  %v1941_v6 = vand.u32 2147483648, %v5676_v7  ;;  %vm1937_vm10 = vmor %vm1935_vm6, %vm1936_vm7 }
 0x409   : > { %v5820_v46 = vpop.eup %3313  ;;  %v5822_v31 = vadd.f32 1.0, %v3312_v51  ;;  %v1928_v27 = vsel %vm5786_vm2, %v1927_v24, %v1923_v20  ;;  %v1933_v36 = vmul.f32 %v5723_v12, %v1932_v22  ;;  %vm2405_vm9 = vcmp.eq.f32.partialorder %v2404_v34, 8.507059e+37  ;;  %v3353_v24 = vld [vmem:[%s3438_s23 + $0x180] sm:$0xff] }
 0x40a   : > { %2597 = vperm.xlu2 %3061, %v1928_v27   ;;  %v2403_v33 = vsel %vm2402_vm8, %v5690_v32, %v2399_v42  ;;  %v2790_v49 = vmul.f32 %v3351_v25, %v2533_v2  ;;  %v1946_v8 = vmul.f32 %v5790_v10, %v5742_v38  ;;  %vm1940_vm11 = vcmp.eq.f32.partialorder %v1939_v16, 8.507059e+37  ;;  %v3355_v42 = vld [vmem:[%s3438_s23 + $0x88] sm:$0xff] }
 0x40b   : > { %3317 = vrcp.f32 %v5822_v31  ;;  %v2408_v58 = vsel %vm2405_vm9, %v2407_v40, %v2403_v33  ;;  %v1934_v57 = vadd.f32 %v5723_v12, %v1933_v36  ;;  %v2693_v43 = vpop.permute.xlu1 %2692  ;;  %v1942_v32 = vor.u32 1.1754944e-38, %v1941_v6 }
 0x40c   : > { %2757 = vperm.xlu0 %3062, %v2408_v58   ;;  %2854 = vst.msk [vmem:[%s4827_s22 + $0x78] sm:$0xff] %vm289_vm0, %v2790_v49  ;;  %v1947_v14 = vsub.f32 1.0, %v1946_v8  ;;  %v1954_v17 = vand.u32 2147483647, %v5742_v38  ;;  %v3316_v59 = vpop.eup %3315  ;;  %v1956_v54 = vand.u32 2147483648, %v5742_v38  ;;  %v2822_v26 = vmul.f32 %v3352_v1, %v2693_v43 }
 0x40d   : > { %v1938_v63 = vsel %vm1937_vm10, %v5723_v12, %v1934_v57  ;;  %v2426_v53 = vmul.f32 %v5820_v46, %v5758_v21  ;;  %vm1950_vm12 = vweird.f32 %v5742_v38  ;;  %vm1951_vm13 = vweird.f32 %v5790_v10 }
 0x40e   : > { %v1943_v7 = vsel %vm1940_vm11, %v1942_v32, %v1938_v63  ;;  %v1948_v3 = vmul.f32 %v5790_v10, %v1947_v14  ;;  %vm5853_vm14 = vcmp.eq.f32.partialorder %v1954_v17, 8.507059e+37  ;;  %v1957_v12 = vor.u32 1.1754944e-38, %v1956_v54  ;;  %2886 = vst.msk [vmem:[%s4827_s22 + $0x178] sm:$0xff] %vm289_vm0, %v2822_v26  ;;  %vm1952_vm1 = vmor %vm1950_vm12, %vm1951_vm13  ;;  %v3356_v14 = vld [vmem:[%s3438_s23 + $0x1a0] sm:$0xff]  ;;  %v3359_v26 = vld [vmem:[%s3438_s23 + $0xb0] sm:$0xff] }
 0x40f   : > { %2602 = vperm.xlu1 %3060, %v1943_v7   ;;  %v2427_v5 = vsub.f32 1.0, %v2426_v53  ;;  %vm2431_vm15 = vweird.f32 %v5820_v46  ;;  %v2436_v15 = vand.u32 2147483648, %v5758_v21  ;;  %v1961_v45 = vmul.f32 %v3316_v59, %v5792_v30 }
 0x410   : > { %v1949_v47 = vadd.f32 %v5790_v10, %v1948_v3  ;;  %v2434_v18 = vand.u32 2147483647, %v5758_v21  ;;  %vm1965_vm2 = vweird.f32 %v5792_v30  ;;  %vm1966_vm3 = vweird.f32 %v3316_v59  ;;  %v3360_v3 = vld [vmem:[%s3438_s23 + $0x198] sm:$0xff] }
 0x411   : > { %v3318_v38 = vpop.eup %3317  ;;  %v2428_v19 = vmul.f32 %v5820_v46, %v2427_v5  ;;  %v1962_v23 = vsub.f32 1.0, %v1961_v45  ;;  %v1969_v11 = vand.u32 2147483647, %v5792_v30  ;;  %v1971_v48 = vand.u32 2147483648, %v5792_v30  ;;  %vm1967_vm7 = vmor %vm1965_vm2, %vm1966_vm3  ;;  %v3361_v5 = vld [vmem:[%s3438_s23 + $0xa0] sm:$0xff] }
 0x412   : > { %v1953_v44 = vsel %vm1952_vm1, %v5790_v10, %v1949_v47  ;;  %v2698_v61 = vpop.permute.xlu0 %2697  ;;  %vm2430_vm4 = vweird.f32 %v5758_v21  ;;  %v3354_v10 = vld [vmem:[%s3438_s23 + $0x98] sm:$0xff]  ;;  %v2437_v4 = vor.u32 1.1754944e-38, %v2436_v15  ;;  %v2441_v41 = vmul.f32 %v3318_v38, %v5822_v31 }
 0x413   : > { %v1958_v37 = vsel %vm5853_vm14, %v1957_v12, %v1953_v44  ;;  %v2553_v56 = vpop.permute.xlu2 %2552  ;;  %v2429_v9 = vadd.f32 %v5820_v46, %v2428_v19  ;;  %v2823_v52 = vmul.f32 %v3353_v24, %v2698_v61  ;;  %vm2432_vm5 = vmor %vm2430_vm4, %vm2431_vm15  ;;  %v1963_v39 = vmul.f32 %v3316_v59, %v1962_v23  ;;  %v3364_v23 = vld [vmem:[%s3438_s23 + $0x1a8] sm:$0xff]  ;;  %v3366_v24 = vld [vmem:[%s3438_s23 + $0x1b0] sm:$0xff] }
 0x414   : > { %2607 = vperm.xlu0 %3062, %v1958_v37   ;;  %v2794_v0 = vmul.f32 %v3354_v10, %v2553_v56  ;;  %vm2435_vm6 = vcmp.eq.f32.partialorder %v2434_v18, 8.507059e+37  ;;  %v1972_v21 = vor.u32 1.1754944e-38, %v1971_v48  ;;  %vm1970_vm8 = vcmp.eq.f32.partialorder %v1969_v11, 8.507059e+37  ;;  %v3363_v18 = vld [vmem:[%s3438_s23 + $0xa8] sm:$0xff] }
 0x415   : > { %v2433_v13 = vsel %vm2432_vm5, %v5820_v46, %v2429_v9  ;;  %2887 = vst.msk [vmem:[%s4827_s22 + $0x180] sm:$0xff] %vm289_vm0, %v2823_v52  ;;  %v1964_v55 = vadd.f32 %v3316_v59, %v1963_v39  ;;  %v2442_v34 = vsub.f32 1.0, %v2441_v41  ;;  %v2451_v50 = vand.u32 2147483648, %v5822_v31  ;;  %v3365_v37 = vld [vmem:[%s3438_s23 + $0xc8] sm:$0xff] }
 0x416   : > { %2858 = vst.msk [vmem:[%s4827_s22 + $0x98] sm:$0xff] %vm289_vm0, %v2794_v0  ;;  %v2438_v62 = vsel %vm2435_vm6, %v2437_v4, %v2433_v13  ;;  %v2411_v29 = vmul.f32 %v5766_v28, %v5708_v35  ;;  %vm2446_vm9 = vweird.f32 %v3318_v38  ;;  %v2449_v30 = vand.u32 2147483647, %v5822_v31  ;;  %v3367_v0 = vld [vmem:[%s3438_s23 + $0xb8] sm:$0xff]  ;;  %v3368_v13 = vld [vmem:[%s3438_s23 + $0x1d0] sm:$0xff] }
 0x417   : > { %2767 = vperm.xlu1 %3060, %v2438_v62   ;;  %v1968_v40 = vsel %vm1967_vm7, %v3316_v59, %v1964_v55  ;;  %v2443_v22 = vmul.f32 %v3318_v38, %v2442_v34  ;;  %vm2445_vm10 = vweird.f32 %v5822_v31  ;;  %v2452_v27 = vor.u32 1.1754944e-38, %v2451_v50  ;;  %v3357_v59 = vld [vmem:[%s3438_s23 + $0x90] sm:$0xff]  ;;  %v3369_v62 = vld [vmem:[%s3438_s23 + $0xc0] sm:$0xff] }
 0x418   : > { %v1973_v2 = vsel %vm1970_vm8, %v1972_v21, %v1968_v40  ;;  %v2412_v20 = vsub.f32 1.0, %v2411_v29  ;;  %vm2447_vm11 = vmor %vm2445_vm10, %vm2446_vm9  ;;  %vm2416_vm12 = vweird.f32 %v5766_v28  ;;  %v2421_v6 = vand.u32 2147483648, %v5708_v35  ;;  %v3370_v50 = vld [vmem:[%s3438_s23 + $0x1c0] sm:$0xff] }
 0x419   : > { %v2543_v51 = vpop.permute.xlu1 %2542  ;;  %2612 = vperm.xlu2 %3061, %v1973_v2   ;;  %v2444_v46 = vadd.f32 %v3318_v38, %v2443_v22  ;;  %vm2450_vm13 = vcmp.eq.f32.partialorder %v2449_v30, 8.507059e+37  ;;  %v2419_v25 = vand.u32 2147483647, %v5708_v35  ;;  %vm2415_vm14 = vweird.f32 %v5708_v35  ;;  %v3371_v30 = vld [vmem:[%s3438_s23 + $0xe0] sm:$0xff] }
 0x41a   : > { %v2792_v16 = vmul.f32 %v3355_v42, %v2543_v51  ;;  %v2413_v36 = vmul.f32 %v5766_v28, %v2412_v20  ;;  %vm2417_vm15 = vmor %vm2415_vm14, %vm2416_vm12  ;;  %v2422_v58 = vor.u32 1.1754944e-38, %v2421_v6  ;;  %v3372_v51 = vld [vmem:[%s3438_s23 + $0x1c8] sm:$0xff] }
 0x41b   : > { %v2448_v33 = vsel %vm2447_vm11, %v3318_v38, %v2444_v46  ;;  %vm2420_vm1 = vcmp.eq.f32.partialorder %v2419_v25, 8.507059e+37  ;;  %v3362_v38 = vld [vmem:[%s3438_s23 + $0x1b8] sm:$0xff] }
 0x41c   : > { %2856 = vst.msk [vmem:[%s4827_s22 + $0x88] sm:$0xff] %vm289_vm0, %v2792_v16  ;;  %v2453_v49 = vsel %vm2450_vm13, %v2452_v27, %v2448_v33  ;;  %v2414_v31 = vadd.f32 %v5766_v28, %v2413_v36  ;;  %v3373_v16 = vld [vmem:[%s3438_s23 + $0xd0] sm:$0xff]  ;;  %v3374_v36 = vld [vmem:[%s3438_s23 + $0xd8] sm:$0xff] }
 0x41d   : > { %2772 = vperm.xlu0 %3062, %v2453_v49   ;;  %v3375_v25 = vld [vmem:[%s3438_s23 + $0xf8] sm:$0xff] }
 0x41e   : > { %v2418_v8 = vsel %vm2417_vm15, %v5766_v28, %v2414_v31  ;;  %v3358_v28 = vld [vmem:[%s3438_s23 + $0x190] sm:$0xff] }
 0x41f   : > { %v2423_v32 = vsel %vm2420_vm1, %v2422_v58, %v2418_v8  ;;  %v3376_v8 = vld [vmem:[%s3438_s23 + $0x1d8] sm:$0xff] }
 0x420   : > { %v2718_v57 = vpop.permute.xlu2 %2717  ;;  %v2548_v43 = vpop.permute.xlu0 %2547 }
 0x421   : > { %v2827_v17 = vmul.f32 %v3356_v14, %v2718_v57  ;;  %v2793_v63 = vmul.f32 %v3357_v59, %v2548_v43  ;;  %2762 = vperm.xlu2 %3061, %v2423_v32   ;;  %v3377_v43 = vld [vmem:[%s3438_s23 + $0x1e8] sm:$0xff] }
 0x423   : > { %2891 = vst.msk [vmem:[%s4827_s22 + $0x1a0] sm:$0xff] %vm289_vm0, %v2827_v17  ;;  %v3378_v17 = vld [vmem:[%s3438_s23 + $0x1e0] sm:$0xff] }
 0x424   : > { %2857 = vst.msk [vmem:[%s4827_s22 + $0x90] sm:$0xff] %vm289_vm0, %v2793_v63 }
 0x427   : > { %v2708_v35 = vpop.permute.xlu1 %2707 }
 0x428   : > { %v2825_v54 = vmul.f32 %v3358_v28, %v2708_v35  ;;  %v3379_v35 = vld [vmem:[%s3438_s23 + $0xe8] sm:$0xff] }
 0x42a   : > { %2889 = vst.msk [vmem:[%s4827_s22 + $0x190] sm:$0xff] %vm289_vm0, %v2825_v54 }
 0x42d   : > { %v2568_v1 = vpop.permute.xlu2 %2567 }
 0x42e   : > { %v2797_v53 = vmul.f32 %v3359_v26, %v2568_v1  ;;  %v2713_v7 = vpop.permute.xlu0 %2712  ;;  %v3380_v1 = vld [vmem:[%s3438_s23 + $0xf0] sm:$0xff] }
 0x42f   : > { %v2826_v60 = vmul.f32 %v3360_v3, %v2713_v7  ;;  %v3381_v7 = vld [vmem:[%s3438_s23 + $0x1f0] sm:$0xff] }
 0x430   : > { %2861 = vst.msk [vmem:[%s4827_s22 + $0xb0] sm:$0xff] %vm289_vm0, %v2797_v53 }
 0x431   : > { %2890 = vst.msk [vmem:[%s4827_s22 + $0x198] sm:$0xff] %vm289_vm0, %v2826_v60 }
 0x433   : > { %v2558_v12 = vpop.permute.xlu1 %2557 }
 0x434   : > { %v2795_v47 = vmul.f32 %v3361_v5, %v2558_v12  ;;  %v3382_v12 = vld [vmem:[%s3438_s23 + $0x1f8] sm:$0xff] }
 0x436   : > { %2859 = vst.msk [vmem:[%s4827_s22 + $0xa0] sm:$0xff] %vm289_vm0, %v2795_v47 }
 0x43b   : > { %v2733_v15 = vpop.permute.xlu2 %2732  ;;  %v2563_v45 = vpop.permute.xlu0 %2562 }
 0x43c   : > { %v2830_v19 = vmul.f32 %v3362_v38, %v2733_v15  ;;  %v2796_v44 = vmul.f32 %v3363_v18, %v2563_v45 }
 0x43e   : > { %2894 = vst.msk [vmem:[%s4827_s22 + $0x1b8] sm:$0xff] %vm289_vm0, %v2830_v19 }
 0x43f   : > { %2860 = vst.msk [vmem:[%s4827_s22 + $0xa8] sm:$0xff] %vm289_vm0, %v2796_v44 }
 0x441   : > { %v2723_v61 = vpop.permute.xlu1 %2722 }
 0x442   : > { %v2828_v11 = vmul.f32 %v3364_v23, %v2723_v61 }
 0x444   : > { %2892 = vst.msk [vmem:[%s4827_s22 + $0x1a8] sm:$0xff] %vm289_vm0, %v2828_v11 }
 0x448   : > { %v2583_v48 = vpop.permute.xlu2 %2582 }
 0x449   : > { %v2800_v56 = vmul.f32 %v3365_v37, %v2583_v48  ;;  %v2728_v9 = vpop.permute.xlu0 %2727 }
 0x44a   : > { %v2829_v52 = vmul.f32 %v3366_v24, %v2728_v9 }
 0x44b   : > { %2864 = vst.msk [vmem:[%s4827_s22 + $0xc8] sm:$0xff] %vm289_vm0, %v2800_v56 }
 0x44c   : > { %2893 = vst.msk [vmem:[%s4827_s22 + $0x1b0] sm:$0xff] %vm289_vm0, %v2829_v52 }
 0x44f   : > { %v2573_v10 = vpop.permute.xlu1 %2572 }
 0x450   : > { %v2798_v4 = vmul.f32 %v3367_v0, %v2573_v10 }
 0x452   : > { %2862 = vst.msk [vmem:[%s4827_s22 + $0xb8] sm:$0xff] %vm289_vm0, %v2798_v4 }
 0x456   : > { %v2748_v39 = vpop.permute.xlu2 %2747  ;;  %v2578_v41 = vpop.permute.xlu0 %2577 }
 0x457   : > { %v2833_v21 = vmul.f32 %v3368_v13, %v2748_v39  ;;  %v2799_v55 = vmul.f32 %v3369_v62, %v2578_v41 }
 0x459   : > { %2897 = vst.msk [vmem:[%s4827_s22 + $0x1d0] sm:$0xff] %vm289_vm0, %v2833_v21 }
 0x45a   : > { %2863 = vst.msk [vmem:[%s4827_s22 + $0xc0] sm:$0xff] %vm289_vm0, %v2799_v55 }
 0x45d   : > { %v2738_v34 = vpop.permute.xlu1 %2737 }
 0x45e   : > { %v2831_v29 = vmul.f32 %v3370_v50, %v2738_v34 }
 0x460   : > { %2895 = vst.msk [vmem:[%s4827_s22 + $0x1c0] sm:$0xff] %vm289_vm0, %v2831_v29 }
 0x464   : > { %v2598_v40 = vpop.permute.xlu2 %2597  ;;  %v2743_v22 = vpop.permute.xlu0 %2742 }
 0x465   : > { %v2803_v2 = vmul.f32 %v3371_v30, %v2598_v40  ;;  %v2832_v20 = vmul.f32 %v3372_v51, %v2743_v22 }
 0x467   : > { %2867 = vst.msk [vmem:[%s4827_s22 + $0xe0] sm:$0xff] %vm289_vm0, %v2803_v2 }
 0x468   : > { %2896 = vst.msk [vmem:[%s4827_s22 + $0x1c8] sm:$0xff] %vm289_vm0, %v2832_v20 }
 0x46a   : > { %v2588_v42 = vpop.permute.xlu1 %2587 }
 0x46b   : > { %v2801_v46 = vmul.f32 %v3373_v16, %v2588_v42 }
 0x46d   : > { %2865 = vst.msk [vmem:[%s4827_s22 + $0xd0] sm:$0xff] %vm289_vm0, %v2801_v46 }
 0x471   : > { %v2593_v27 = vpop.permute.xlu0 %2592 }
 0x472   : > { %v2802_v6 = vmul.f32 %v3374_v36, %v2593_v27 }
 0x473   : > { %v2613_v33 = vpop.permute.xlu2 %2612 }
 0x474   : > { %2866 = vst.msk [vmem:[%s4827_s22 + $0xd8] sm:$0xff] %vm289_vm0, %v2802_v6  ;;  %v2806_v49 = vmul.f32 %v3375_v25, %v2613_v33 }
 0x476   : > { %v2753_v31 = vpop.permute.xlu1 %2752  ;;  %2870 = vst.msk [vmem:[%s4827_s22 + $0xf8] sm:$0xff] %vm289_vm0, %v2806_v49 }
 0x477   : > { %v2834_v58 = vmul.f32 %v3376_v8, %v2753_v31 }
 0x479   : > { %2898 = vst.msk [vmem:[%s4827_s22 + $0x1d8] sm:$0xff] %vm289_vm0, %v2834_v58 }
 0x47b   : > { %v2763_v57 = vpop.permute.xlu2 %2762 }
 0x47c   : > { %v2836_v32 = vmul.f32 %v3377_v43, %v2763_v57 }
 0x47e   : > { %v2758_v14 = vpop.permute.xlu0 %2757  ;;  %2900 = vst.msk [vmem:[%s4827_s22 + $0x1e8] sm:$0xff] %vm289_vm0, %v2836_v32 }
 0x47f   : > { %v2835_v59 = vmul.f32 %v3378_v17, %v2758_v14 }
 0x481   : > { %2899 = vst.msk [vmem:[%s4827_s22 + $0x1e0] sm:$0xff] %vm289_vm0, %v2835_v59  ;;  %v2603_v63 = vpop.permute.xlu1 %2602 }
 0x482   : > { %v2804_v28 = vmul.f32 %v3379_v35, %v2603_v63 }
 0x484   : > { %2868 = vst.msk [vmem:[%s4827_s22 + $0xe8] sm:$0xff] %vm289_vm0, %v2804_v28 }
 0x486   : > { %v2608_v54 = vpop.permute.xlu0 %2607 }
 0x487   : > { %v2805_v26 = vmul.f32 %v3380_v1, %v2608_v54 }
 0x489   : > { %2869 = vst.msk [vmem:[%s4827_s22 + $0xf0] sm:$0xff] %vm289_vm0, %v2805_v26  ;;  %v2768_v53 = vpop.permute.xlu1 %2767 }
 0x48a   : > { %v2837_v3 = vmul.f32 %v3381_v7, %v2768_v53 }
 0x48c   : > { %2901 = vst.msk [vmem:[%s4827_s22 + $0x1f0] sm:$0xff] %vm289_vm0, %v2837_v3 }
 0x48f   : > { %v2773_v60 = vpop.permute.xlu0 %2772 }
 0x490   : > { %v2838_v5 = vmul.f32 %v3382_v12, %v2773_v60 }
 0x492   : > { %2902 = vst.msk [vmem:[%s4827_s22 + $0x1f8] sm:$0xff] %vm289_vm0, %v2838_v5 }
 0x493 PF: > { %s15_s18 = sadd.s32 1, %s3389_s18  }
 0x494   : > { %p12_p4 = scmp.ge.s32.totalorder %s15_s18, 4  }
 0x496   :  { %14 = sbr.rel (!%p12_p4) target bundleno = 1 (0x1), region = 70 }

</bundles_post_ra>
